<compile_context>
chip_gen: v7x
topology: tpu7x:2x2x1
jax: 0.10.0
libtpu: 0.0.40
codegen_flags: <defaults>
</compile_context>

<pallas_src>
import jax
import jax.numpy as jnp
from jax import lax
from jax.experimental import pallas as pl
from jax.experimental.pallas import tpu as pltpu

# ---- deterministic stand-ins for the module's random hyper-params ----
IN_DIM = 16
OUT_DIM = 10
HS = 96      # hidden_size     (range [64, 128))
NL = 2       # num_layers      (range {1, 2})
L0 = 48      # fc hidden 0     (range [30, 80))
L1 = 16      # fc hidden 1     (range [10, 30))
B = 2        # batch
T = 8        # sequence length

# ---- hardware-friendly padded dims (zero-padded, exact results) ----
HSP = 128    # hidden padded to one lane tile
L0P = 128
L1P = 128
OUTP = 128
BP = 8       # batch rows padded to one sublane group


# ---------------------------------------------------------------------------
# Single fused kernel: NL stacked LSTM layers + Linear/ReLU/Linear/ReLU/Linear
# ---------------------------------------------------------------------------
def make_fused_kernel(nl, t_steps, bp, hsp):
    def kernel(*refs):
        x_ref = refs[0]                                   # (T*BP, D)  f32
        lstm_refs = refs[1:1 + 3 * nl]                    # per layer: wih, whh, b
        (w1_ref, c1_ref, w2_ref, c2_ref,
         w3_ref, c3_ref) = refs[1 + 3 * nl:1 + 3 * nl + 6]
        o_ref = refs[1 + 3 * nl + 6]                      # (BP, OUTP) f32
        xw_ref = refs[1 + 3 * nl + 7]                     # (T*BP, 4*HSP) scratch
        hseq_ref = refs[1 + 3 * nl + 8]                   # (T*BP, HSP)   scratch

        def sig(v):
            # one EUP tanh push instead of exp + reciprocal
            return 0.5 * jnp.tanh(0.5 * v) + 0.5

        h_lasts = []
        for l in range(nl):
            wih_ref, whh_ref, b_ref = lstm_refs[3 * l:3 * l + 3]

            # Hoisted input projection over all timesteps, staged through VMEM
            # scratch so the (T*BP, 4*HSP) slab is not live across the unroll.
            lhs = (x_ref[...] if l == 0 else hseq_ref[...]).astype(jnp.bfloat16)
            xw_ref[...] = (jnp.dot(lhs, wih_ref[...],
                                   preferred_element_type=jnp.float32)
                           + b_ref[...])

            h = jnp.zeros((bp, hsp), jnp.float32)
            c = jnp.zeros((bp, hsp), jnp.float32)
            for t in range(t_steps):                      # fully unrolled
                gates = xw_ref[t * bp:(t + 1) * bp, :] + jnp.dot(
                    h.astype(jnp.bfloat16), whh_ref[...],
                    preferred_element_type=jnp.float32)   # (BP, 4*HSP) f32
                i = sig(gates[:, 0 * hsp:1 * hsp])
                f = sig(gates[:, 1 * hsp:2 * hsp])
                g = jnp.tanh(gates[:, 2 * hsp:3 * hsp])
                o = sig(gates[:, 3 * hsp:4 * hsp])
                c = f * c + i * g
                h = o * jnp.tanh(c)
                if l + 1 < nl:                 # last layer's h_seq never needed
                    hseq_ref[t * bp:(t + 1) * bp, :] = h
            h_lasts.append(h)
            # inter-layer dropout is identity at inference

        feat = jnp.concatenate(h_lasts, axis=1) if nl > 1 else h_lasts[0]

        # Classifier head (Dropout layers are identity at inference).
        h1 = jnp.maximum(
            jnp.dot(feat.astype(jnp.bfloat16), w1_ref[...],
                    preferred_element_type=jnp.float32) + c1_ref[...], 0.0)
        h2 = jnp.maximum(
            jnp.dot(h1.astype(jnp.bfloat16), w2_ref[...],
                    preferred_element_type=jnp.float32) + c2_ref[...], 0.0)
        o_ref[...] = (jnp.dot(h2.astype(jnp.bfloat16), w3_ref[...],
                              preferred_element_type=jnp.float32) + c3_ref[...])
    return kernel


def forward(padded, features):
    # features: (B, T, IN_DIM), batch_first like the PyTorch module.
    bsz = features.shape[0]
    x = jnp.transpose(features, (1, 0, 2)).astype(jnp.float32)   # (T, B, D)
    x = jnp.pad(x, ((0, 0), (0, BP - bsz), (0, 0)))              # (T, BP, D)
    x = x.reshape(T * BP, IN_DIM)                                # flatten in wrapper

    vmem = pl.BlockSpec(memory_space=pltpu.MemorySpace.VMEM)
    args = [x] + padded["lstm"] + padded["fc"]

    # Advisory cost estimate for XLA's scheduler.
    flops = 2 * T * BP * IN_DIM * 4 * HSP                        # layer-0 in-proj
    if NL > 1:
        flops += 2 * (NL - 1) * T * BP * HSP * 4 * HSP           # layer-l in-proj
    flops += 2 * NL * T * BP * HSP * 4 * HSP                     # recurrence
    flops += 2 * BP * (NL * HSP * L0P + L0P * L1P + L1P * OUTP)  # head
    transcendentals = NL * T * 5 * BP * HSP                      # 5 tanh/step
    bytes_accessed = sum(int(a.nbytes) for a in args) + BP * OUTP * 4

    out = pl.pallas_call(
        make_fused_kernel(NL, T, BP, HSP),
        out_shape=jax.ShapeDtypeStruct((BP, OUTP), jnp.float32),
        in_specs=[vmem] * len(args),
        out_specs=vmem,
        scratch_shapes=[pltpu.VMEM((T * BP, 4 * HSP), jnp.float32),   # xw
                        pltpu.VMEM((T * BP, HSP), jnp.float32)],      # h_seq
        cost_estimate=pl.CostEstimate(flops=flops,
                                      transcendentals=transcendentals,
                                      bytes_accessed=bytes_accessed),
    )(*args)
    return out[:bsz, :OUT_DIM]


# ---------------------------------------------------------------------------
# Deterministic parameter initialization (PyTorch-style uniform ranges),
# in "logical" (unpadded) f32 layout; then fused / padded / bf16-cast
# for the kernel.
# ---------------------------------------------------------------------------
def init_params(key):
    params = {"lstm": [], "fc": []}
    bound = 1.0 / jnp.sqrt(float(HS))
    for l in range(NL):
        d_in = IN_DIM if l == 0 else HS
        key, k1, k2, k3, k4 = jax.random.split(key, 5)
        w_ih = jax.random.uniform(k1, (4, d_in, HS), jnp.float32, -bound, bound)
        w_hh = jax.random.uniform(k2, (4, HS, HS), jnp.float32, -bound, bound)
        b_ih = jax.random.uniform(k3, (4, 1, HS), jnp.float32, -bound, bound)
        b_hh = jax.random.uniform(k4, (4, 1, HS), jnp.float32, -bound, bound)
        params["lstm"].append((w_ih, w_hh, b_ih + b_hh))

    dims = [(NL * HS, L0), (L0, L1), (L1, OUT_DIM)]
    for fan_in, fan_out in dims:
        key, kw, kb = jax.random.split(key, 3)
        bnd = 1.0 / jnp.sqrt(float(fan_in))
        w = jax.random.uniform(kw, (fan_in, fan_out), jnp.float32, -bnd, bnd)
        bvec = jax.random.uniform(kb, (1, fan_out), jnp.float32, -bnd, bnd)
        params["fc"].append((w, bvec))
    return params


def pad_params(params):
    """Fused-gate, zero-padded, lane-dense weights; matmul weights in bf16."""
    padded = {"lstm": [], "fc": []}
    for l in range(NL):
        w_ih, w_hh, b = params["lstm"][l]
        d_in = w_ih.shape[1]
        d_in_p = d_in if l == 0 else HSP        # layer-1 input is padded hidden
        wih_f = jnp.zeros((d_in_p, 4 * HSP), jnp.float32)
        whh_f = jnp.zeros((HSP, 4 * HSP), jnp.float32)
        b_f = jnp.zeros((1, 4 * HSP), jnp.float32)
        for k in range(4):                       # gate order (i, f, g, o)
            wih_f = wih_f.at[:d_in, k * HSP:k * HSP + HS].set(w_ih[k])
            whh_f = whh_f.at[:HS, k * HSP:k * HSP + HS].set(w_hh[k])
            b_f = b_f.at[:, k * HSP:k * HSP + HS].set(b[k])
        padded["lstm"] += [wih_f.astype(jnp.bfloat16),
                           whh_f.astype(jnp.bfloat16),
                           b_f]                  # bias stays f32

    (w1, b1), (w2, b2), (w3, b3) = params["fc"]
    w1p = jnp.zeros((NL * HSP, L0P), jnp.float32)
    for l in range(NL):
        w1p = w1p.at[l * HSP:l * HSP + HS, :L0].set(w1[l * HS:(l + 1) * HS, :])
    b1p = jnp.zeros((1, L0P), jnp.float32).at[:, :L0].set(b1)
    w2p = jnp.zeros((L0P, L1P), jnp.float32).at[:L0, :L1].set(w2)
    b2p = jnp.zeros((1, L1P), jnp.float32).at[:, :L1].set(b2)
    w3p = jnp.zeros((L1P, OUTP), jnp.float32).at[:L1, :OUT_DIM].set(w3)
    b3p = jnp.zeros((1, OUTP), jnp.float32).at[:, :OUT_DIM].set(b3)
    padded["fc"] = [w1p.astype(jnp.bfloat16), b1p,
                    w2p.astype(jnp.bfloat16), b2p,
                    w3p.astype(jnp.bfloat16), b3p]
    return padded


# ---------------------------------------------------------------------------
# Pure-JAX f32 reference (unpadded) for a correctness sanity check.
# ---------------------------------------------------------------------------
def lstm_layer_ref(x_seq, w_ih, w_hh, b):
    bsz = x_seq.shape[1]
    hs = w_hh.shape[-1]

    def step(carry, x_t):
        h, c = carry

        def gate(k):
            return x_t @ w_ih[k] + h @ w_hh[k] + b[k]

        i = jax.nn.sigmoid(gate(0))
        f = jax.nn.sigmoid(gate(1))
        g = jnp.tanh(gate(2))
        o = jax.nn.sigmoid(gate(3))
        c = f * c + i * g
        h = o * jnp.tanh(c)
        return (h, c), h

    init = (jnp.zeros((bsz, hs), jnp.float32), jnp.zeros((bsz, hs), jnp.float32))
    (h, _), h_seq = lax.scan(step, init, x_seq)
    return h_seq, h


def forward_ref(params, features):
    x_seq = jnp.transpose(features, (1, 0, 2)).astype(jnp.float32)
    h_lasts = []
    layer_in = x_seq
    for l in range(NL):
        w_ih, w_hh, b = params["lstm"][l]
        h_seq, h_last = lstm_layer_ref(layer_in, w_ih, w_hh, b)
        h_lasts.append(h_last)
        layer_in = h_seq
    h_n = jnp.stack(h_lasts, axis=0)
    feat = jnp.transpose(h_n, (1, 0, 2)).reshape(features.shape[0], NL * HS)
    (w1, b1), (w2, b2), (w3, b3) = params["fc"]
    h1 = jnp.maximum(feat @ w1 + b1, 0.0)
    h2 = jnp.maximum(h1 @ w2 + b2, 0.0)
    return h2 @ w3 + b3


if __name__ == "__main__":
    key = jax.random.PRNGKey(0)
    kp, kx = jax.random.split(key)
    params = init_params(kp)
    padded = pad_params(params)
    features = jax.random.normal(kx, (B, T, IN_DIM), jnp.float32)

    out = jax.block_until_ready(forward(padded, features))
    ref = forward_ref(params, features)

    assert out.shape == (B, OUT_DIM)
    # bf16 matmul operands shift results at the ~1e-2 relative level.
    assert jnp.allclose(out, ref, rtol=5e-2, atol=5e-2), "mismatch vs JAX reference"

    print("KERNEL_OK")
</pallas_src>

<mosaic_0001>
module attributes {stable_mosaic.version = 11 : i64} {
  func.func @kernel(%arg0: memref<64x16xf32, #tpu.memory_space<vmem>>, %arg1: memref<16x512xbf16, #tpu.memory_space<vmem>>, %arg2: memref<128x512xbf16, #tpu.memory_space<vmem>>, %arg3: memref<1x512xf32, #tpu.memory_space<vmem>>, %arg4: memref<128x512xbf16, #tpu.memory_space<vmem>>, %arg5: memref<128x512xbf16, #tpu.memory_space<vmem>>, %arg6: memref<1x512xf32, #tpu.memory_space<vmem>>, %arg7: memref<256x128xbf16, #tpu.memory_space<vmem>>, %arg8: memref<1x128xf32, #tpu.memory_space<vmem>>, %arg9: memref<128x128xbf16, #tpu.memory_space<vmem>>, %arg10: memref<1x128xf32, #tpu.memory_space<vmem>>, %arg11: memref<128x128xbf16, #tpu.memory_space<vmem>>, %arg12: memref<1x128xf32, #tpu.memory_space<vmem>>, %arg13: memref<8x128xf32, #tpu.memory_space<vmem>>, %arg14: memref<64x512xf32, #tpu.memory_space<vmem>>, %arg15: memref<64x128xf32, #tpu.memory_space<vmem>>) attributes {dimension_semantics = [], scalar_prefetch = 0 : i64, scratch_operands = 2 : i64, tpu.core_type = #tpu.core_type<tc>} {
    %c0 = arith.constant 0 : index
    %c0_0 = arith.constant 0 : index
    %0 = vector.load %arg0[%c0, %c0_0] : memref<64x16xf32, #tpu.memory_space<vmem>>, vector<64x16xf32>
    %1 = arith.truncf %0 : vector<64x16xf32> to vector<64x16xbf16>
    %c0_1 = arith.constant 0 : index
    %c0_2 = arith.constant 0 : index
    %2 = vector.load %arg1[%c0_1, %c0_2] : memref<16x512xbf16, #tpu.memory_space<vmem>>, vector<16x512xbf16>
    %cst = arith.constant dense<0.000000e+00> : vector<64x512xf32>
    %3 = tpu.matmul %1, %2, %cst {dimension_numbers = #tpu.dot_dimension_numbers<[1], [0], [0], [1], [0, 0, 1, 1], [], []>} : vector<64x16xbf16>, vector<16x512xbf16>, vector<64x512xf32> -> vector<64x512xf32>
    %c0_3 = arith.constant 0 : index
    %c0_4 = arith.constant 0 : index
    %4 = vector.load %arg3[%c0_3, %c0_4] : memref<1x512xf32, #tpu.memory_space<vmem>>, vector<1x512xf32>
    %5 = vector.broadcast %4 : vector<1x512xf32> to vector<64x512xf32>
    %6 = arith.addf %3, %5 : vector<64x512xf32>
    %c0_5 = arith.constant 0 : index
    %c0_6 = arith.constant 0 : index
    %7 = vector.load %arg14[%c0_5, %c0_6] : memref<64x512xf32, #tpu.memory_space<vmem>>, vector<64x512xf32>
    tpu.vector_store %arg14[%c0_5, %c0_6], %6 {strides = array<i32>} : memref<64x512xf32, #tpu.memory_space<vmem>>, vector<64x512xf32>,
    %cst_7 = arith.constant 0.000000e+00 : f32
    %8 = vector.broadcast %cst_7 : f32 to vector<8x128xf32>
    %cst_8 = arith.constant 0.000000e+00 : f32
    %9 = vector.broadcast %cst_8 : f32 to vector<8x128xf32>
    %c0_9 = arith.constant 0 : index
    %c0_10 = arith.constant 0 : index
    %10 = vector.load %arg14[%c0_9, %c0_10] : memref<64x512xf32, #tpu.memory_space<vmem>>, vector<8x512xf32>
    %11 = arith.truncf %8 : vector<8x128xf32> to vector<8x128xbf16>
    %c0_11 = arith.constant 0 : index
    %c0_12 = arith.constant 0 : index
    %12 = vector.load %arg2[%c0_11, %c0_12] : memref<128x512xbf16, #tpu.memory_space<vmem>>, vector<128x512xbf16>
    %cst_13 = arith.constant dense<0.000000e+00> : vector<8x512xf32>
    %13 = tpu.matmul %11, %12, %cst_13 {dimension_numbers = #tpu.dot_dimension_numbers<[1], [0], [0], [1], [0, 0, 1, 1], [], []>} : vector<8x128xbf16>, vector<128x512xbf16>, vector<8x512xf32> -> vector<8x512xf32>
    %14 = arith.addf %10, %13 : vector<8x512xf32>
    %15 = vector.extract_strided_slice %14 {offsets = [0, 0], sizes = [8, 128], strides = [1, 1]} : vector<8x512xf32> to vector<8x128xf32>
    %cst_14 = arith.constant 5.000000e-01 : f32
    %16 = vector.broadcast %cst_14 : f32 to vector<8x128xf32>
    %17 = arith.mulf %16, %15 : vector<8x128xf32>
    %18 = math.tanh %17 : vector<8x128xf32>
    %cst_15 = arith.constant 5.000000e-01 : f32
    %19 = vector.broadcast %cst_15 : f32 to vector<8x128xf32>
    %20 = arith.mulf %19, %18 : vector<8x128xf32>
    %cst_16 = arith.constant 5.000000e-01 : f32
    %21 = vector.broadcast %cst_16 : f32 to vector<8x128xf32>
    %22 = arith.addf %20, %21 : vector<8x128xf32>
    %23 = vector.extract_strided_slice %14 {offsets = [0, 128], sizes = [8, 128], strides = [1, 1]} : vector<8x512xf32> to vector<8x128xf32>
    %cst_17 = arith.constant 5.000000e-01 : f32
    %24 = vector.broadcast %cst_17 : f32 to vector<8x128xf32>
    %25 = arith.mulf %24, %23 : vector<8x128xf32>
    %26 = math.tanh %25 : vector<8x128xf32>
    %cst_18 = arith.constant 5.000000e-01 : f32
    %27 = vector.broadcast %cst_18 : f32 to vector<8x128xf32>
    %28 = arith.mulf %27, %26 : vector<8x128xf32>
    %cst_19 = arith.constant 5.000000e-01 : f32
    %29 = vector.broadcast %cst_19 : f32 to vector<8x128xf32>
    %30 = arith.addf %28, %29 : vector<8x128xf32>
    %31 = vector.extract_strided_slice %14 {offsets = [0, 256], sizes = [8, 128], strides = [1, 1]} : vector<8x512xf32> to vector<8x128xf32>
    %32 = math.tanh %31 : vector<8x128xf32>
    %33 = vector.extract_strided_slice %14 {offsets = [0, 384], sizes = [8, 128], strides = [1, 1]} : vector<8x512xf32> to vector<8x128xf32>
    %cst_20 = arith.constant 5.000000e-01 : f32
    %34 = vector.broadcast %cst_20 : f32 to vector<8x128xf32>
    %35 = arith.mulf %34, %33 : vector<8x128xf32>
    %36 = math.tanh %35 : vector<8x128xf32>
    %cst_21 = arith.constant 5.000000e-01 : f32
    %37 = vector.broadcast %cst_21 : f32 to vector<8x128xf32>
    %38 = arith.mulf %37, %36 : vector<8x128xf32>
    %cst_22 = arith.constant 5.000000e-01 : f32
    %39 = vector.broadcast %cst_22 : f32 to vector<8x128xf32>
    %40 = arith.addf %38, %39 : vector<8x128xf32>
    %41 = arith.mulf %30, %9 : vector<8x128xf32>
    %42 = arith.mulf %22, %32 : vector<8x128xf32>
    %43 = arith.addf %41, %42 : vector<8x128xf32>
    %44 = math.tanh %43 : vector<8x128xf32>
    %45 = arith.mulf %40, %44 : vector<8x128xf32>
    %c0_23 = arith.constant 0 : index
    %c0_24 = arith.constant 0 : index
    %46 = vector.load %arg15[%c0_23, %c0_24] : memref<64x128xf32, #tpu.memory_space<vmem>>, vector<8x128xf32>
    tpu.vector_store %arg15[%c0_23, %c0_24], %45 {strides = array<i32>} : memref<64x128xf32, #tpu.memory_space<vmem>>, vector<8x128xf32>,
    %c8 = arith.constant 8 : index
    %c0_25 = arith.constant 0 : index
    %47 = vector.load %arg14[%c8, %c0_25] : memref<64x512xf32, #tpu.memory_space<vmem>>, vector<8x512xf32>
    %48 = arith.truncf %45 : vector<8x128xf32> to vector<8x128xbf16>
    %c0_26 = arith.constant 0 : index
    %c0_27 = arith.constant 0 : index
    %49 = vector.load %arg2[%c0_26, %c0_27] : memref<128x512xbf16, #tpu.memory_space<vmem>>, vector<128x512xbf16>
    %cst_28 = arith.constant dense<0.000000e+00> : vector<8x512xf32>
    %50 = tpu.matmul %48, %49, %cst_28 {dimension_numbers = #tpu.dot_dimension_numbers<[1], [0], [0], [1], [0, 0, 1, 1], [], []>} : vector<8x128xbf16>, vector<128x512xbf16>, vector<8x512xf32> -> vector<8x512xf32>
    %51 = arith.addf %47, %50 : vector<8x512xf32>
    %52 = vector.extract_strided_slice %51 {offsets = [0, 0], sizes = [8, 128], strides = [1, 1]} : vector<8x512xf32> to vector<8x128xf32>
    %cst_29 = arith.constant 5.000000e-01 : f32
    %53 = vector.broadcast %cst_29 : f32 to vector<8x128xf32>
    %54 = arith.mulf %53, %52 : vector<8x128xf32>
    %55 = math.tanh %54 : vector<8x128xf32>
    %cst_30 = arith.constant 5.000000e-01 : f32
    %56 = vector.broadcast %cst_30 : f32 to vector<8x128xf32>
    %57 = arith.mulf %56, %55 : vector<8x128xf32>
    %cst_31 = arith.constant 5.000000e-01 : f32
    %58 = vector.broadcast %cst_31 : f32 to vector<8x128xf32>
    %59 = arith.addf %57, %58 : vector<8x128xf32>
    %60 = vector.extract_strided_slice %51 {offsets = [0, 128], sizes = [8, 128], strides = [1, 1]} : vector<8x512xf32> to vector<8x128xf32>
    %cst_32 = arith.constant 5.000000e-01 : f32
    %61 = vector.broadcast %cst_32 : f32 to vector<8x128xf32>
    %62 = arith.mulf %61, %60 : vector<8x128xf32>
    %63 = math.tanh %62 : vector<8x128xf32>
    %cst_33 = arith.constant 5.000000e-01 : f32
    %64 = vector.broadcast %cst_33 : f32 to vector<8x128xf32>
    %65 = arith.mulf %64, %63 : vector<8x128xf32>
    %cst_34 = arith.constant 5.000000e-01 : f32
    %66 = vector.broadcast %cst_34 : f32 to vector<8x128xf32>
    %67 = arith.addf %65, %66 : vector<8x128xf32>
    %68 = vector.extract_strided_slice %51 {offsets = [0, 256], sizes = [8, 128], strides = [1, 1]} : vector<8x512xf32> to vector<8x128xf32>
    %69 = math.tanh %68 : vector<8x128xf32>
    %70 = vector.extract_strided_slice %51 {offsets = [0, 384], sizes = [8, 128], strides = [1, 1]} : vector<8x512xf32> to vector<8x128xf32>
    %cst_35 = arith.constant 5.000000e-01 : f32
    %71 = vector.broadcast %cst_35 : f32 to vector<8x128xf32>
    %72 = arith.mulf %71, %70 : vector<8x128xf32>
    %73 = math.tanh %72 : vector<8x128xf32>
    %cst_36 = arith.constant 5.000000e-01 : f32
    %74 = vector.broadcast %cst_36 : f32 to vector<8x128xf32>
    %75 = arith.mulf %74, %73 : vector<8x128xf32>
    %cst_37 = arith.constant 5.000000e-01 : f32
    %76 = vector.broadcast %cst_37 : f32 to vector<8x128xf32>
    %77 = arith.addf %75, %76 : vector<8x128xf32>
    %78 = arith.mulf %67, %43 : vector<8x128xf32>
    %79 = arith.mulf %59, %69 : vector<8x128xf32>
    %80 = arith.addf %78, %79 : vector<8x128xf32>
    %81 = math.tanh %80 : vector<8x128xf32>
    %82 = arith.mulf %77, %81 : vector<8x128xf32>
    %c8_38 = arith.constant 8 : index
    %c0_39 = arith.constant 0 : index
    %83 = vector.load %arg15[%c8_38, %c0_39] : memref<64x128xf32, #tpu.memory_space<vmem>>, vector<8x128xf32>
    tpu.vector_store %arg15[%c8_38, %c0_39], %82 {strides = array<i32>} : memref<64x128xf32, #tpu.memory_space<vmem>>, vector<8x128xf32>,
    %c16 = arith.constant 16 : index
    %c0_40 = arith.constant 0 : index
    %84 = vector.load %arg14[%c16, %c0_40] : memref<64x512xf32, #tpu.memory_space<vmem>>, vector<8x512xf32>
    %85 = arith.truncf %82 : vector<8x128xf32> to vector<8x128xbf16>
    %c0_41 = arith.constant 0 : index
    %c0_42 = arith.constant 0 : index
    %86 = vector.load %arg2[%c0_41, %c0_42] : memref<128x512xbf16, #tpu.memory_space<vmem>>, vector<128x512xbf16>
    %cst_43 = arith.constant dense<0.000000e+00> : vector<8x512xf32>
    %87 = tpu.matmul %85, %86, %cst_43 {dimension_numbers = #tpu.dot_dimension_numbers<[1], [0], [0], [1], [0, 0, 1, 1], [], []>} : vector<8x128xbf16>, vector<128x512xbf16>, vector<8x512xf32> -> vector<8x512xf32>
    %88 = arith.addf %84, %87 : vector<8x512xf32>
    %89 = vector.extract_strided_slice %88 {offsets = [0, 0], sizes = [8, 128], strides = [1, 1]} : vector<8x512xf32> to vector<8x128xf32>
    %cst_44 = arith.constant 5.000000e-01 : f32
    %90 = vector.broadcast %cst_44 : f32 to vector<8x128xf32>
    %91 = arith.mulf %90, %89 : vector<8x128xf32>
    %92 = math.tanh %91 : vector<8x128xf32>
    %cst_45 = arith.constant 5.000000e-01 : f32
    %93 = vector.broadcast %cst_45 : f32 to vector<8x128xf32>
    %94 = arith.mulf %93, %92 : vector<8x128xf32>
    %cst_46 = arith.constant 5.000000e-01 : f32
    %95 = vector.broadcast %cst_46 : f32 to vector<8x128xf32>
    %96 = arith.addf %94, %95 : vector<8x128xf32>
    %97 = vector.extract_strided_slice %88 {offsets = [0, 128], sizes = [8, 128], strides = [1, 1]} : vector<8x512xf32> to vector<8x128xf32>
    %cst_47 = arith.constant 5.000000e-01 : f32
    %98 = vector.broadcast %cst_47 : f32 to vector<8x128xf32>
    %99 = arith.mulf %98, %97 : vector<8x128xf32>
    %100 = math.tanh %99 : vector<8x128xf32>
    %cst_48 = arith.constant 5.000000e-01 : f32
    %101 = vector.broadcast %cst_48 : f32 to vector<8x128xf32>
    %102 = arith.mulf %101, %100 : vector<8x128xf32>
    %cst_49 = arith.constant 5.000000e-01 : f32
    %103 = vector.broadcast %cst_49 : f32 to vector<8x128xf32>
    %104 = arith.addf %102, %103 : vector<8x128xf32>
    %105 = vector.extract_strided_slice %88 {offsets = [0, 256], sizes = [8, 128], strides = [1, 1]} : vector<8x512xf32> to vector<8x128xf32>
    %106 = math.tanh %105 : vector<8x128xf32>
    %107 = vector.extract_strided_slice %88 {offsets = [0, 384], sizes = [8, 128], strides = [1, 1]} : vector<8x512xf32> to vector<8x128xf32>
    %cst_50 = arith.constant 5.000000e-01 : f32
    %108 = vector.broadcast %cst_50 : f32 to vector<8x128xf32>
    %109 = arith.mulf %108, %107 : vector<8x128xf32>
    %110 = math.tanh %109 : vector<8x128xf32>
    %cst_51 = arith.constant 5.000000e-01 : f32
    %111 = vector.broadcast %cst_51 : f32 to vector<8x128xf32>
    %112 = arith.mulf %111, %110 : vector<8x128xf32>
    %cst_52 = arith.constant 5.000000e-01 : f32
    %113 = vector.broadcast %cst_52 : f32 to vector<8x128xf32>
    %114 = arith.addf %112, %113 : vector<8x128xf32>
    %115 = arith.mulf %104, %80 : vector<8x128xf32>
    %116 = arith.mulf %96, %106 : vector<8x128xf32>
    %117 = arith.addf %115, %116 : vector<8x128xf32>
    %118 = math.tanh %117 : vector<8x128xf32>
    %119 = arith.mulf %114, %118 : vector<8x128xf32>
    %c16_53 = arith.constant 16 : index
    %c0_54 = arith.constant 0 : index
    %120 = vector.load %arg15[%c16_53, %c0_54] : memref<64x128xf32, #tpu.memory_space<vmem>>, vector<8x128xf32>
    tpu.vector_store %arg15[%c16_53, %c0_54], %119 {strides = array<i32>} : memref<64x128xf32, #tpu.memory_space<vmem>>, vector<8x128xf32>,
    %c24 = arith.constant 24 : index
    %c0_55 = arith.constant 0 : index
    %121 = vector.load %arg14[%c24, %c0_55] : memref<64x512xf32, #tpu.memory_space<vmem>>, vector<8x512xf32>
    %122 = arith.truncf %119 : vector<8x128xf32> to vector<8x128xbf16>
    %c0_56 = arith.constant 0 : index
    %c0_57 = arith.constant 0 : index
    %123 = vector.load %arg2[%c0_56, %c0_57] : memref<128x512xbf16, #tpu.memory_space<vmem>>, vector<128x512xbf16>
    %cst_58 = arith.constant dense<0.000000e+00> : vector<8x512xf32>
    %124 = tpu.matmul %122, %123, %cst_58 {dimension_numbers = #tpu.dot_dimension_numbers<[1], [0], [0], [1], [0, 0, 1, 1], [], []>} : vector<8x128xbf16>, vector<128x512xbf16>, vector<8x512xf32> -> vector<8x512xf32>
    %125 = arith.addf %121, %124 : vector<8x512xf32>
    %126 = vector.extract_strided_slice %125 {offsets = [0, 0], sizes = [8, 128], strides = [1, 1]} : vector<8x512xf32> to vector<8x128xf32>
    %cst_59 = arith.constant 5.000000e-01 : f32
    %127 = vector.broadcast %cst_59 : f32 to vector<8x128xf32>
    %128 = arith.mulf %127, %126 : vector<8x128xf32>
    %129 = math.tanh %128 : vector<8x128xf32>
    %cst_60 = arith.constant 5.000000e-01 : f32
    %130 = vector.broadcast %cst_60 : f32 to vector<8x128xf32>
    %131 = arith.mulf %130, %129 : vector<8x128xf32>
    %cst_61 = arith.constant 5.000000e-01 : f32
    %132 = vector.broadcast %cst_61 : f32 to vector<8x128xf32>
    %133 = arith.addf %131, %132 : vector<8x128xf32>
    %134 = vector.extract_strided_slice %125 {offsets = [0, 128], sizes = [8, 128], strides = [1, 1]} : vector<8x512xf32> to vector<8x128xf32>
    %cst_62 = arith.constant 5.000000e-01 : f32
    %135 = vector.broadcast %cst_62 : f32 to vector<8x128xf32>
    %136 = arith.mulf %135, %134 : vector<8x128xf32>
    %137 = math.tanh %136 : vector<8x128xf32>
    %cst_63 = arith.constant 5.000000e-01 : f32
    %138 = vector.broadcast %cst_63 : f32 to vector<8x128xf32>
    %139 = arith.mulf %138, %137 : vector<8x128xf32>
    %cst_64 = arith.constant 5.000000e-01 : f32
    %140 = vector.broadcast %cst_64 : f32 to vector<8x128xf32>
    %141 = arith.addf %139, %140 : vector<8x128xf32>
    %142 = vector.extract_strided_slice %125 {offsets = [0, 256], sizes = [8, 128], strides = [1, 1]} : vector<8x512xf32> to vector<8x128xf32>
    %143 = math.tanh %142 : vector<8x128xf32>
    %144 = vector.extract_strided_slice %125 {offsets = [0, 384], sizes = [8, 128], strides = [1, 1]} : vector<8x512xf32> to vector<8x128xf32>
    %cst_65 = arith.constant 5.000000e-01 : f32
    %145 = vector.broadcast %cst_65 : f32 to vector<8x128xf32>
    %146 = arith.mulf %145, %144 : vector<8x128xf32>
    %147 = math.tanh %146 : vector<8x128xf32>
    %cst_66 = arith.constant 5.000000e-01 : f32
    %148 = vector.broadcast %cst_66 : f32 to vector<8x128xf32>
    %149 = arith.mulf %148, %147 : vector<8x128xf32>
    %cst_67 = arith.constant 5.000000e-01 : f32
    %150 = vector.broadcast %cst_67 : f32 to vector<8x128xf32>
    %151 = arith.addf %149, %150 : vector<8x128xf32>
    %152 = arith.mulf %141, %117 : vector<8x128xf32>
    %153 = arith.mulf %133, %143 : vector<8x128xf32>
    %154 = arith.addf %152, %153 : vector<8x128xf32>
    %155 = math.tanh %154 : vector<8x128xf32>
    %156 = arith.mulf %151, %155 : vector<8x128xf32>
    %c24_68 = arith.constant 24 : index
    %c0_69 = arith.constant 0 : index
    %157 = vector.load %arg15[%c24_68, %c0_69] : memref<64x128xf32, #tpu.memory_space<vmem>>, vector<8x128xf32>
    tpu.vector_store %arg15[%c24_68, %c0_69], %156 {strides = array<i32>} : memref<64x128xf32, #tpu.memory_space<vmem>>, vector<8x128xf32>,
    %c32 = arith.constant 32 : index
    %c0_70 = arith.constant 0 : index
    %158 = vector.load %arg14[%c32, %c0_70] : memref<64x512xf32, #tpu.memory_space<vmem>>, vector<8x512xf32>
    %159 = arith.truncf %156 : vector<8x128xf32> to vector<8x128xbf16>
    %c0_71 = arith.constant 0 : index
    %c0_72 = arith.constant 0 : index
    %160 = vector.load %arg2[%c0_71, %c0_72] : memref<128x512xbf16, #tpu.memory_space<vmem>>, vector<128x512xbf16>
    %cst_73 = arith.constant dense<0.000000e+00> : vector<8x512xf32>
    %161 = tpu.matmul %159, %160, %cst_73 {dimension_numbers = #tpu.dot_dimension_numbers<[1], [0], [0], [1], [0, 0, 1, 1], [], []>} : vector<8x128xbf16>, vector<128x512xbf16>, vector<8x512xf32> -> vector<8x512xf32>
    %162 = arith.addf %158, %161 : vector<8x512xf32>
    %163 = vector.extract_strided_slice %162 {offsets = [0, 0], sizes = [8, 128], strides = [1, 1]} : vector<8x512xf32> to vector<8x128xf32>
    %cst_74 = arith.constant 5.000000e-01 : f32
    %164 = vector.broadcast %cst_74 : f32 to vector<8x128xf32>
    %165 = arith.mulf %164, %163 : vector<8x128xf32>
    %166 = math.tanh %165 : vector<8x128xf32>
    %cst_75 = arith.constant 5.000000e-01 : f32
    %167 = vector.broadcast %cst_75 : f32 to vector<8x128xf32>
    %168 = arith.mulf %167, %166 : vector<8x128xf32>
    %cst_76 = arith.constant 5.000000e-01 : f32
    %169 = vector.broadcast %cst_76 : f32 to vector<8x128xf32>
    %170 = arith.addf %168, %169 : vector<8x128xf32>
    %171 = vector.extract_strided_slice %162 {offsets = [0, 128], sizes = [8, 128], strides = [1, 1]} : vector<8x512xf32> to vector<8x128xf32>
    %cst_77 = arith.constant 5.000000e-01 : f32
    %172 = vector.broadcast %cst_77 : f32 to vector<8x128xf32>
    %173 = arith.mulf %172, %171 : vector<8x128xf32>
    %174 = math.tanh %173 : vector<8x128xf32>
    %cst_78 = arith.constant 5.000000e-01 : f32
    %175 = vector.broadcast %cst_78 : f32 to vector<8x128xf32>
    %176 = arith.mulf %175, %174 : vector<8x128xf32>
    %cst_79 = arith.constant 5.000000e-01 : f32
    %177 = vector.broadcast %cst_79 : f32 to vector<8x128xf32>
    %178 = arith.addf %176, %177 : vector<8x128xf32>
    %179 = vector.extract_strided_slice %162 {offsets = [0, 256], sizes = [8, 128], strides = [1, 1]} : vector<8x512xf32> to vector<8x128xf32>
    %180 = math.tanh %179 : vector<8x128xf32>
    %181 = vector.extract_strided_slice %162 {offsets = [0, 384], sizes = [8, 128], strides = [1, 1]} : vector<8x512xf32> to vector<8x128xf32>
    %cst_80 = arith.constant 5.000000e-01 : f32
    %182 = vector.broadcast %cst_80 : f32 to vector<8x128xf32>
    %183 = arith.mulf %182, %181 : vector<8x128xf32>
    %184 = math.tanh %183 : vector<8x128xf32>
    %cst_81 = arith.constant 5.000000e-01 : f32
    %185 = vector.broadcast %cst_81 : f32 to vector<8x128xf32>
    %186 = arith.mulf %185, %184 : vector<8x128xf32>
    %cst_82 = arith.constant 5.000000e-01 : f32
    %187 = vector.broadcast %cst_82 : f32 to vector<8x128xf32>
    %188 = arith.addf %186, %187 : vector<8x128xf32>
    %189 = arith.mulf %178, %154 : vector<8x128xf32>
    %190 = arith.mulf %170, %180 : vector<8x128xf32>
    %191 = arith.addf %189, %190 : vector<8x128xf32>
    %192 = math.tanh %191 : vector<8x128xf32>
    %193 = arith.mulf %188, %192 : vector<8x128xf32>
    %c32_83 = arith.constant 32 : index
    %c0_84 = arith.constant 0 : index
    %194 = vector.load %arg15[%c32_83, %c0_84] : memref<64x128xf32, #tpu.memory_space<vmem>>, vector<8x128xf32>
    tpu.vector_store %arg15[%c32_83, %c0_84], %193 {strides = array<i32>} : memref<64x128xf32, #tpu.memory_space<vmem>>, vector<8x128xf32>,
    %c40 = arith.constant 40 : index
    %c0_85 = arith.constant 0 : index
    %195 = vector.load %arg14[%c40, %c0_85] : memref<64x512xf32, #tpu.memory_space<vmem>>, vector<8x512xf32>
    %196 = arith.truncf %193 : vector<8x128xf32> to vector<8x128xbf16>
    %c0_86 = arith.constant 0 : index
    %c0_87 = arith.constant 0 : index
    %197 = vector.load %arg2[%c0_86, %c0_87] : memref<128x512xbf16, #tpu.memory_space<vmem>>, vector<128x512xbf16>
    %cst_88 = arith.constant dense<0.000000e+00> : vector<8x512xf32>
    %198 = tpu.matmul %196, %197, %cst_88 {dimension_numbers = #tpu.dot_dimension_numbers<[1], [0], [0], [1], [0, 0, 1, 1], [], []>} : vector<8x128xbf16>, vector<128x512xbf16>, vector<8x512xf32> -> vector<8x512xf32>
    %199 = arith.addf %195, %198 : vector<8x512xf32>
    %200 = vector.extract_strided_slice %199 {offsets = [0, 0], sizes = [8, 128], strides = [1, 1]} : vector<8x512xf32> to vector<8x128xf32>
    %cst_89 = arith.constant 5.000000e-01 : f32
    %201 = vector.broadcast %cst_89 : f32 to vector<8x128xf32>
    %202 = arith.mulf %201, %200 : vector<8x128xf32>
    %203 = math.tanh %202 : vector<8x128xf32>
    %cst_90 = arith.constant 5.000000e-01 : f32
    %204 = vector.broadcast %cst_90 : f32 to vector<8x128xf32>
    %205 = arith.mulf %204, %203 : vector<8x128xf32>
    %cst_91 = arith.constant 5.000000e-01 : f32
    %206 = vector.broadcast %cst_91 : f32 to vector<8x128xf32>
    %207 = arith.addf %205, %206 : vector<8x128xf32>
    %208 = vector.extract_strided_slice %199 {offsets = [0, 128], sizes = [8, 128], strides = [1, 1]} : vector<8x512xf32> to vector<8x128xf32>
    %cst_92 = arith.constant 5.000000e-01 : f32
    %209 = vector.broadcast %cst_92 : f32 to vector<8x128xf32>
    %210 = arith.mulf %209, %208 : vector<8x128xf32>
    %211 = math.tanh %210 : vector<8x128xf32>
    %cst_93 = arith.constant 5.000000e-01 : f32
    %212 = vector.broadcast %cst_93 : f32 to vector<8x128xf32>
    %213 = arith.mulf %212, %211 : vector<8x128xf32>
    %cst_94 = arith.constant 5.000000e-01 : f32
    %214 = vector.broadcast %cst_94 : f32 to vector<8x128xf32>
    %215 = arith.addf %213, %214 : vector<8x128xf32>
    %216 = vector.extract_strided_slice %199 {offsets = [0, 256], sizes = [8, 128], strides = [1, 1]} : vector<8x512xf32> to vector<8x128xf32>
    %217 = math.tanh %216 : vector<8x128xf32>
    %218 = vector.extract_strided_slice %199 {offsets = [0, 384], sizes = [8, 128], strides = [1, 1]} : vector<8x512xf32> to vector<8x128xf32>
    %cst_95 = arith.constant 5.000000e-01 : f32
    %219 = vector.broadcast %cst_95 : f32 to vector<8x128xf32>
    %220 = arith.mulf %219, %218 : vector<8x128xf32>
    %221 = math.tanh %220 : vector<8x128xf32>
    %cst_96 = arith.constant 5.000000e-01 : f32
    %222 = vector.broadcast %cst_96 : f32 to vector<8x128xf32>
    %223 = arith.mulf %222, %221 : vector<8x128xf32>
    %cst_97 = arith.constant 5.000000e-01 : f32
    %224 = vector.broadcast %cst_97 : f32 to vector<8x128xf32>
    %225 = arith.addf %223, %224 : vector<8x128xf32>
    %226 = arith.mulf %215, %191 : vector<8x128xf32>
    %227 = arith.mulf %207, %217 : vector<8x128xf32>
    %228 = arith.addf %226, %227 : vector<8x128xf32>
    %229 = math.tanh %228 : vector<8x128xf32>
    %230 = arith.mulf %225, %229 : vector<8x128xf32>
    %c40_98 = arith.constant 40 : index
    %c0_99 = arith.constant 0 : index
    %231 = vector.load %arg15[%c40_98, %c0_99] : memref<64x128xf32, #tpu.memory_space<vmem>>, vector<8x128xf32>
    tpu.vector_store %arg15[%c40_98, %c0_99], %230 {strides = array<i32>} : memref<64x128xf32, #tpu.memory_space<vmem>>, vector<8x128xf32>,
    %c48 = arith.constant 48 : index
    %c0_100 = arith.constant 0 : index
    %232 = vector.load %arg14[%c48, %c0_100] : memref<64x512xf32, #tpu.memory_space<vmem>>, vector<8x512xf32>
    %233 = arith.truncf %230 : vector<8x128xf32> to vector<8x128xbf16>
    %c0_101 = arith.constant 0 : index
    %c0_102 = arith.constant 0 : index
    %234 = vector.load %arg2[%c0_101, %c0_102] : memref<128x512xbf16, #tpu.memory_space<vmem>>, vector<128x512xbf16>
    %cst_103 = arith.constant dense<0.000000e+00> : vector<8x512xf32>
    %235 = tpu.matmul %233, %234, %cst_103 {dimension_numbers = #tpu.dot_dimension_numbers<[1], [0], [0], [1], [0, 0, 1, 1], [], []>} : vector<8x128xbf16>, vector<128x512xbf16>, vector<8x512xf32> -> vector<8x512xf32>
    %236 = arith.addf %232, %235 : vector<8x512xf32>
    %237 = vector.extract_strided_slice %236 {offsets = [0, 0], sizes = [8, 128], strides = [1, 1]} : vector<8x512xf32> to vector<8x128xf32>
    %cst_104 = arith.constant 5.000000e-01 : f32
    %238 = vector.broadcast %cst_104 : f32 to vector<8x128xf32>
    %239 = arith.mulf %238, %237 : vector<8x128xf32>
    %240 = math.tanh %239 : vector<8x128xf32>
    %cst_105 = arith.constant 5.000000e-01 : f32
    %241 = vector.broadcast %cst_105 : f32 to vector<8x128xf32>
    %242 = arith.mulf %241, %240 : vector<8x128xf32>
    %cst_106 = arith.constant 5.000000e-01 : f32
    %243 = vector.broadcast %cst_106 : f32 to vector<8x128xf32>
    %244 = arith.addf %242, %243 : vector<8x128xf32>
    %245 = vector.extract_strided_slice %236 {offsets = [0, 128], sizes = [8, 128], strides = [1, 1]} : vector<8x512xf32> to vector<8x128xf32>
    %cst_107 = arith.constant 5.000000e-01 : f32
    %246 = vector.broadcast %cst_107 : f32 to vector<8x128xf32>
    %247 = arith.mulf %246, %245 : vector<8x128xf32>
    %248 = math.tanh %247 : vector<8x128xf32>
    %cst_108 = arith.constant 5.000000e-01 : f32
    %249 = vector.broadcast %cst_108 : f32 to vector<8x128xf32>
    %250 = arith.mulf %249, %248 : vector<8x128xf32>
    %cst_109 = arith.constant 5.000000e-01 : f32
    %251 = vector.broadcast %cst_109 : f32 to vector<8x128xf32>
    %252 = arith.addf %250, %251 : vector<8x128xf32>
    %253 = vector.extract_strided_slice %236 {offsets = [0, 256], sizes = [8, 128], strides = [1, 1]} : vector<8x512xf32> to vector<8x128xf32>
    %254 = math.tanh %253 : vector<8x128xf32>
    %255 = vector.extract_strided_slice %236 {offsets = [0, 384], sizes = [8, 128], strides = [1, 1]} : vector<8x512xf32> to vector<8x128xf32>
    %cst_110 = arith.constant 5.000000e-01 : f32
    %256 = vector.broadcast %cst_110 : f32 to vector<8x128xf32>
    %257 = arith.mulf %256, %255 : vector<8x128xf32>
    %258 = math.tanh %257 : vector<8x128xf32>
    %cst_111 = arith.constant 5.000000e-01 : f32
    %259 = vector.broadcast %cst_111 : f32 to vector<8x128xf32>
    %260 = arith.mulf %259, %258 : vector<8x128xf32>
    %cst_112 = arith.constant 5.000000e-01 : f32
    %261 = vector.broadcast %cst_112 : f32 to vector<8x128xf32>
    %262 = arith.addf %260, %261 : vector<8x128xf32>
    %263 = arith.mulf %252, %228 : vector<8x128xf32>
    %264 = arith.mulf %244, %254 : vector<8x128xf32>
    %265 = arith.addf %263, %264 : vector<8x128xf32>
    %266 = math.tanh %265 : vector<8x128xf32>
    %267 = arith.mulf %262, %266 : vector<8x128xf32>
    %c48_113 = arith.constant 48 : index
    %c0_114 = arith.constant 0 : index
    %268 = vector.load %arg15[%c48_113, %c0_114] : memref<64x128xf32, #tpu.memory_space<vmem>>, vector<8x128xf32>
    tpu.vector_store %arg15[%c48_113, %c0_114], %267 {strides = array<i32>} : memref<64x128xf32, #tpu.memory_space<vmem>>, vector<8x128xf32>,
    %c56 = arith.constant 56 : index
    %c0_115 = arith.constant 0 : index
    %269 = vector.load %arg14[%c56, %c0_115] : memref<64x512xf32, #tpu.memory_space<vmem>>, vector<8x512xf32>
    %270 = arith.truncf %267 : vector<8x128xf32> to vector<8x128xbf16>
    %c0_116 = arith.constant 0 : index
    %c0_117 = arith.constant 0 : index
    %271 = vector.load %arg2[%c0_116, %c0_117] : memref<128x512xbf16, #tpu.memory_space<vmem>>, vector<128x512xbf16>
    %cst_118 = arith.constant dense<0.000000e+00> : vector<8x512xf32>
    %272 = tpu.matmul %270, %271, %cst_118 {dimension_numbers = #tpu.dot_dimension_numbers<[1], [0], [0], [1], [0, 0, 1, 1], [], []>} : vector<8x128xbf16>, vector<128x512xbf16>, vector<8x512xf32> -> vector<8x512xf32>
    %273 = arith.addf %269, %272 : vector<8x512xf32>
    %274 = vector.extract_strided_slice %273 {offsets = [0, 0], sizes = [8, 128], strides = [1, 1]} : vector<8x512xf32> to vector<8x128xf32>
    %cst_119 = arith.constant 5.000000e-01 : f32
    %275 = vector.broadcast %cst_119 : f32 to vector<8x128xf32>
    %276 = arith.mulf %275, %274 : vector<8x128xf32>
    %277 = math.tanh %276 : vector<8x128xf32>
    %cst_120 = arith.constant 5.000000e-01 : f32
    %278 = vector.broadcast %cst_120 : f32 to vector<8x128xf32>
    %279 = arith.mulf %278, %277 : vector<8x128xf32>
    %cst_121 = arith.constant 5.000000e-01 : f32
    %280 = vector.broadcast %cst_121 : f32 to vector<8x128xf32>
    %281 = arith.addf %279, %280 : vector<8x128xf32>
    %282 = vector.extract_strided_slice %273 {offsets = [0, 128], sizes = [8, 128], strides = [1, 1]} : vector<8x512xf32> to vector<8x128xf32>
    %cst_122 = arith.constant 5.000000e-01 : f32
    %283 = vector.broadcast %cst_122 : f32 to vector<8x128xf32>
    %284 = arith.mulf %283, %282 : vector<8x128xf32>
    %285 = math.tanh %284 : vector<8x128xf32>
    %cst_123 = arith.constant 5.000000e-01 : f32
    %286 = vector.broadcast %cst_123 : f32 to vector<8x128xf32>
    %287 = arith.mulf %286, %285 : vector<8x128xf32>
    %cst_124 = arith.constant 5.000000e-01 : f32
    %288 = vector.broadcast %cst_124 : f32 to vector<8x128xf32>
    %289 = arith.addf %287, %288 : vector<8x128xf32>
    %290 = vector.extract_strided_slice %273 {offsets = [0, 256], sizes = [8, 128], strides = [1, 1]} : vector<8x512xf32> to vector<8x128xf32>
    %291 = math.tanh %290 : vector<8x128xf32>
    %292 = vector.extract_strided_slice %273 {offsets = [0, 384], sizes = [8, 128], strides = [1, 1]} : vector<8x512xf32> to vector<8x128xf32>
    %cst_125 = arith.constant 5.000000e-01 : f32
    %293 = vector.broadcast %cst_125 : f32 to vector<8x128xf32>
    %294 = arith.mulf %293, %292 : vector<8x128xf32>
    %295 = math.tanh %294 : vector<8x128xf32>
    %cst_126 = arith.constant 5.000000e-01 : f32
    %296 = vector.broadcast %cst_126 : f32 to vector<8x128xf32>
    %297 = arith.mulf %296, %295 : vector<8x128xf32>
    %cst_127 = arith.constant 5.000000e-01 : f32
    %298 = vector.broadcast %cst_127 : f32 to vector<8x128xf32>
    %299 = arith.addf %297, %298 : vector<8x128xf32>
    %300 = arith.mulf %289, %265 : vector<8x128xf32>
    %301 = arith.mulf %281, %291 : vector<8x128xf32>
    %302 = arith.addf %300, %301 : vector<8x128xf32>
    %303 = math.tanh %302 : vector<8x128xf32>
    %304 = arith.mulf %299, %303 : vector<8x128xf32>
    %c56_128 = arith.constant 56 : index
    %c0_129 = arith.constant 0 : index
    %305 = vector.load %arg15[%c56_128, %c0_129] : memref<64x128xf32, #tpu.memory_space<vmem>>, vector<8x128xf32>
    tpu.vector_store %arg15[%c56_128, %c0_129], %304 {strides = array<i32>} : memref<64x128xf32, #tpu.memory_space<vmem>>, vector<8x128xf32>,
    %c0_130 = arith.constant 0 : index
    %c0_131 = arith.constant 0 : index
    %306 = vector.load %arg15[%c0_130, %c0_131] : memref<64x128xf32, #tpu.memory_space<vmem>>, vector<64x128xf32>
    %307 = arith.truncf %306 : vector<64x128xf32> to vector<64x128xbf16>
    %c0_132 = arith.constant 0 : index
    %c0_133 = arith.constant 0 : index
    %308 = vector.load %arg4[%c0_132, %c0_133] : memref<128x512xbf16, #tpu.memory_space<vmem>>, vector<128x512xbf16>
    %cst_134 = arith.constant dense<0.000000e+00> : vector<64x512xf32>
    %309 = tpu.matmul %307, %308, %cst_134 {dimension_numbers = #tpu.dot_dimension_numbers<[1], [0], [0], [1], [0, 0, 1, 1], [], []>} : vector<64x128xbf16>, vector<128x512xbf16>, vector<64x512xf32> -> vector<64x512xf32>
    %c0_135 = arith.constant 0 : index
    %c0_136 = arith.constant 0 : index
    %310 = vector.load %arg6[%c0_135, %c0_136] : memref<1x512xf32, #tpu.memory_space<vmem>>, vector<1x512xf32>
    %311 = vector.broadcast %310 : vector<1x512xf32> to vector<64x512xf32>
    %312 = arith.addf %309, %311 : vector<64x512xf32>
    %c0_137 = arith.constant 0 : index
    %c0_138 = arith.constant 0 : index
    %313 = vector.load %arg14[%c0_137, %c0_138] : memref<64x512xf32, #tpu.memory_space<vmem>>, vector<64x512xf32>
    tpu.vector_store %arg14[%c0_137, %c0_138], %312 {strides = array<i32>} : memref<64x512xf32, #tpu.memory_space<vmem>>, vector<64x512xf32>,
    %cst_139 = arith.constant 0.000000e+00 : f32
    %314 = vector.broadcast %cst_139 : f32 to vector<8x128xf32>
    %cst_140 = arith.constant 0.000000e+00 : f32
    %315 = vector.broadcast %cst_140 : f32 to vector<8x128xf32>
    %c0_141 = arith.constant 0 : index
    %c0_142 = arith.constant 0 : index
    %316 = vector.load %arg14[%c0_141, %c0_142] : memref<64x512xf32, #tpu.memory_space<vmem>>, vector<8x512xf32>
    %317 = arith.truncf %314 : vector<8x128xf32> to vector<8x128xbf16>
    %c0_143 = arith.constant 0 : index
    %c0_144 = arith.constant 0 : index
    %318 = vector.load %arg5[%c0_143, %c0_144] : memref<128x512xbf16, #tpu.memory_space<vmem>>, vector<128x512xbf16>
    %cst_145 = arith.constant dense<0.000000e+00> : vector<8x512xf32>
    %319 = tpu.matmul %317, %318, %cst_145 {dimension_numbers = #tpu.dot_dimension_numbers<[1], [0], [0], [1], [0, 0, 1, 1], [], []>} : vector<8x128xbf16>, vector<128x512xbf16>, vector<8x512xf32> -> vector<8x512xf32>
    %320 = arith.addf %316, %319 : vector<8x512xf32>
    %321 = vector.extract_strided_slice %320 {offsets = [0, 0], sizes = [8, 128], strides = [1, 1]} : vector<8x512xf32> to vector<8x128xf32>
    %cst_146 = arith.constant 5.000000e-01 : f32
    %322 = vector.broadcast %cst_146 : f32 to vector<8x128xf32>
    %323 = arith.mulf %322, %321 : vector<8x128xf32>
    %324 = math.tanh %323 : vector<8x128xf32>
    %cst_147 = arith.constant 5.000000e-01 : f32
    %325 = vector.broadcast %cst_147 : f32 to vector<8x128xf32>
    %326 = arith.mulf %325, %324 : vector<8x128xf32>
    %cst_148 = arith.constant 5.000000e-01 : f32
    %327 = vector.broadcast %cst_148 : f32 to vector<8x128xf32>
    %328 = arith.addf %326, %327 : vector<8x128xf32>
    %329 = vector.extract_strided_slice %320 {offsets = [0, 128], sizes = [8, 128], strides = [1, 1]} : vector<8x512xf32> to vector<8x128xf32>
    %cst_149 = arith.constant 5.000000e-01 : f32
    %330 = vector.broadcast %cst_149 : f32 to vector<8x128xf32>
    %331 = arith.mulf %330, %329 : vector<8x128xf32>
    %332 = math.tanh %331 : vector<8x128xf32>
    %cst_150 = arith.constant 5.000000e-01 : f32
    %333 = vector.broadcast %cst_150 : f32 to vector<8x128xf32>
    %334 = arith.mulf %333, %332 : vector<8x128xf32>
    %cst_151 = arith.constant 5.000000e-01 : f32
    %335 = vector.broadcast %cst_151 : f32 to vector<8x128xf32>
    %336 = arith.addf %334, %335 : vector<8x128xf32>
    %337 = vector.extract_strided_slice %320 {offsets = [0, 256], sizes = [8, 128], strides = [1, 1]} : vector<8x512xf32> to vector<8x128xf32>
    %338 = math.tanh %337 : vector<8x128xf32>
    %339 = vector.extract_strided_slice %320 {offsets = [0, 384], sizes = [8, 128], strides = [1, 1]} : vector<8x512xf32> to vector<8x128xf32>
    %cst_152 = arith.constant 5.000000e-01 : f32
    %340 = vector.broadcast %cst_152 : f32 to vector<8x128xf32>
    %341 = arith.mulf %340, %339 : vector<8x128xf32>
    %342 = math.tanh %341 : vector<8x128xf32>
    %cst_153 = arith.constant 5.000000e-01 : f32
    %343 = vector.broadcast %cst_153 : f32 to vector<8x128xf32>
    %344 = arith.mulf %343, %342 : vector<8x128xf32>
    %cst_154 = arith.constant 5.000000e-01 : f32
    %345 = vector.broadcast %cst_154 : f32 to vector<8x128xf32>
    %346 = arith.addf %344, %345 : vector<8x128xf32>
    %347 = arith.mulf %336, %315 : vector<8x128xf32>
    %348 = arith.mulf %328, %338 : vector<8x128xf32>
    %349 = arith.addf %347, %348 : vector<8x128xf32>
    %350 = math.tanh %349 : vector<8x128xf32>
    %351 = arith.mulf %346, %350 : vector<8x128xf32>
    %c8_155 = arith.constant 8 : index
    %c0_156 = arith.constant 0 : index
    %352 = vector.load %arg14[%c8_155, %c0_156] : memref<64x512xf32, #tpu.memory_space<vmem>>, vector<8x512xf32>
    %353 = arith.truncf %351 : vector<8x128xf32> to vector<8x128xbf16>
    %c0_157 = arith.constant 0 : index
    %c0_158 = arith.constant 0 : index
    %354 = vector.load %arg5[%c0_157, %c0_158] : memref<128x512xbf16, #tpu.memory_space<vmem>>, vector<128x512xbf16>
    %cst_159 = arith.constant dense<0.000000e+00> : vector<8x512xf32>
    %355 = tpu.matmul %353, %354, %cst_159 {dimension_numbers = #tpu.dot_dimension_numbers<[1], [0], [0], [1], [0, 0, 1, 1], [], []>} : vector<8x128xbf16>, vector<128x512xbf16>, vector<8x512xf32> -> vector<8x512xf32>
    %356 = arith.addf %352, %355 : vector<8x512xf32>
    %357 = vector.extract_strided_slice %356 {offsets = [0, 0], sizes = [8, 128], strides = [1, 1]} : vector<8x512xf32> to vector<8x128xf32>
    %cst_160 = arith.constant 5.000000e-01 : f32
    %358 = vector.broadcast %cst_160 : f32 to vector<8x128xf32>
    %359 = arith.mulf %358, %357 : vector<8x128xf32>
    %360 = math.tanh %359 : vector<8x128xf32>
    %cst_161 = arith.constant 5.000000e-01 : f32
    %361 = vector.broadcast %cst_161 : f32 to vector<8x128xf32>
    %362 = arith.mulf %361, %360 : vector<8x128xf32>
    %cst_162 = arith.constant 5.000000e-01 : f32
    %363 = vector.broadcast %cst_162 : f32 to vector<8x128xf32>
    %364 = arith.addf %362, %363 : vector<8x128xf32>
    %365 = vector.extract_strided_slice %356 {offsets = [0, 128], sizes = [8, 128], strides = [1, 1]} : vector<8x512xf32> to vector<8x128xf32>
    %cst_163 = arith.constant 5.000000e-01 : f32
    %366 = vector.broadcast %cst_163 : f32 to vector<8x128xf32>
    %367 = arith.mulf %366, %365 : vector<8x128xf32>
    %368 = math.tanh %367 : vector<8x128xf32>
    %cst_164 = arith.constant 5.000000e-01 : f32
    %369 = vector.broadcast %cst_164 : f32 to vector<8x128xf32>
    %370 = arith.mulf %369, %368 : vector<8x128xf32>
    %cst_165 = arith.constant 5.000000e-01 : f32
    %371 = vector.broadcast %cst_165 : f32 to vector<8x128xf32>
    %372 = arith.addf %370, %371 : vector<8x128xf32>
    %373 = vector.extract_strided_slice %356 {offsets = [0, 256], sizes = [8, 128], strides = [1, 1]} : vector<8x512xf32> to vector<8x128xf32>
    %374 = math.tanh %373 : vector<8x128xf32>
    %375 = vector.extract_strided_slice %356 {offsets = [0, 384], sizes = [8, 128], strides = [1, 1]} : vector<8x512xf32> to vector<8x128xf32>
    %cst_166 = arith.constant 5.000000e-01 : f32
    %376 = vector.broadcast %cst_166 : f32 to vector<8x128xf32>
    %377 = arith.mulf %376, %375 : vector<8x128xf32>
    %378 = math.tanh %377 : vector<8x128xf32>
    %cst_167 = arith.constant 5.000000e-01 : f32
    %379 = vector.broadcast %cst_167 : f32 to vector<8x128xf32>
    %380 = arith.mulf %379, %378 : vector<8x128xf32>
    %cst_168 = arith.constant 5.000000e-01 : f32
    %381 = vector.broadcast %cst_168 : f32 to vector<8x128xf32>
    %382 = arith.addf %380, %381 : vector<8x128xf32>
    %383 = arith.mulf %372, %349 : vector<8x128xf32>
    %384 = arith.mulf %364, %374 : vector<8x128xf32>
    %385 = arith.addf %383, %384 : vector<8x128xf32>
    %386 = math.tanh %385 : vector<8x128xf32>
    %387 = arith.mulf %382, %386 : vector<8x128xf32>
    %c16_169 = arith.constant 16 : index
    %c0_170 = arith.constant 0 : index
    %388 = vector.load %arg14[%c16_169, %c0_170] : memref<64x512xf32, #tpu.memory_space<vmem>>, vector<8x512xf32>
    %389 = arith.truncf %387 : vector<8x128xf32> to vector<8x128xbf16>
    %c0_171 = arith.constant 0 : index
    %c0_172 = arith.constant 0 : index
    %390 = vector.load %arg5[%c0_171, %c0_172] : memref<128x512xbf16, #tpu.memory_space<vmem>>, vector<128x512xbf16>
    %cst_173 = arith.constant dense<0.000000e+00> : vector<8x512xf32>
    %391 = tpu.matmul %389, %390, %cst_173 {dimension_numbers = #tpu.dot_dimension_numbers<[1], [0], [0], [1], [0, 0, 1, 1], [], []>} : vector<8x128xbf16>, vector<128x512xbf16>, vector<8x512xf32> -> vector<8x512xf32>
    %392 = arith.addf %388, %391 : vector<8x512xf32>
    %393 = vector.extract_strided_slice %392 {offsets = [0, 0], sizes = [8, 128], strides = [1, 1]} : vector<8x512xf32> to vector<8x128xf32>
    %cst_174 = arith.constant 5.000000e-01 : f32
    %394 = vector.broadcast %cst_174 : f32 to vector<8x128xf32>
    %395 = arith.mulf %394, %393 : vector<8x128xf32>
    %396 = math.tanh %395 : vector<8x128xf32>
    %cst_175 = arith.constant 5.000000e-01 : f32
    %397 = vector.broadcast %cst_175 : f32 to vector<8x128xf32>
    %398 = arith.mulf %397, %396 : vector<8x128xf32>
    %cst_176 = arith.constant 5.000000e-01 : f32
    %399 = vector.broadcast %cst_176 : f32 to vector<8x128xf32>
    %400 = arith.addf %398, %399 : vector<8x128xf32>
    %401 = vector.extract_strided_slice %392 {offsets = [0, 128], sizes = [8, 128], strides = [1, 1]} : vector<8x512xf32> to vector<8x128xf32>
    %cst_177 = arith.constant 5.000000e-01 : f32
    %402 = vector.broadcast %cst_177 : f32 to vector<8x128xf32>
    %403 = arith.mulf %402, %401 : vector<8x128xf32>
    %404 = math.tanh %403 : vector<8x128xf32>
    %cst_178 = arith.constant 5.000000e-01 : f32
    %405 = vector.broadcast %cst_178 : f32 to vector<8x128xf32>
    %406 = arith.mulf %405, %404 : vector<8x128xf32>
    %cst_179 = arith.constant 5.000000e-01 : f32
    %407 = vector.broadcast %cst_179 : f32 to vector<8x128xf32>
    %408 = arith.addf %406, %407 : vector<8x128xf32>
    %409 = vector.extract_strided_slice %392 {offsets = [0, 256], sizes = [8, 128], strides = [1, 1]} : vector<8x512xf32> to vector<8x128xf32>
    %410 = math.tanh %409 : vector<8x128xf32>
    %411 = vector.extract_strided_slice %392 {offsets = [0, 384], sizes = [8, 128], strides = [1, 1]} : vector<8x512xf32> to vector<8x128xf32>
    %cst_180 = arith.constant 5.000000e-01 : f32
    %412 = vector.broadcast %cst_180 : f32 to vector<8x128xf32>
    %413 = arith.mulf %412, %411 : vector<8x128xf32>
    %414 = math.tanh %413 : vector<8x128xf32>
    %cst_181 = arith.constant 5.000000e-01 : f32
    %415 = vector.broadcast %cst_181 : f32 to vector<8x128xf32>
    %416 = arith.mulf %415, %414 : vector<8x128xf32>
    %cst_182 = arith.constant 5.000000e-01 : f32
    %417 = vector.broadcast %cst_182 : f32 to vector<8x128xf32>
    %418 = arith.addf %416, %417 : vector<8x128xf32>
    %419 = arith.mulf %408, %385 : vector<8x128xf32>
    %420 = arith.mulf %400, %410 : vector<8x128xf32>
    %421 = arith.addf %419, %420 : vector<8x128xf32>
    %422 = math.tanh %421 : vector<8x128xf32>
    %423 = arith.mulf %418, %422 : vector<8x128xf32>
    %c24_183 = arith.constant 24 : index
    %c0_184 = arith.constant 0 : index
    %424 = vector.load %arg14[%c24_183, %c0_184] : memref<64x512xf32, #tpu.memory_space<vmem>>, vector<8x512xf32>
    %425 = arith.truncf %423 : vector<8x128xf32> to vector<8x128xbf16>
    %c0_185 = arith.constant 0 : index
    %c0_186 = arith.constant 0 : index
    %426 = vector.load %arg5[%c0_185, %c0_186] : memref<128x512xbf16, #tpu.memory_space<vmem>>, vector<128x512xbf16>
    %cst_187 = arith.constant dense<0.000000e+00> : vector<8x512xf32>
    %427 = tpu.matmul %425, %426, %cst_187 {dimension_numbers = #tpu.dot_dimension_numbers<[1], [0], [0], [1], [0, 0, 1, 1], [], []>} : vector<8x128xbf16>, vector<128x512xbf16>, vector<8x512xf32> -> vector<8x512xf32>
    %428 = arith.addf %424, %427 : vector<8x512xf32>
    %429 = vector.extract_strided_slice %428 {offsets = [0, 0], sizes = [8, 128], strides = [1, 1]} : vector<8x512xf32> to vector<8x128xf32>
    %cst_188 = arith.constant 5.000000e-01 : f32
    %430 = vector.broadcast %cst_188 : f32 to vector<8x128xf32>
    %431 = arith.mulf %430, %429 : vector<8x128xf32>
    %432 = math.tanh %431 : vector<8x128xf32>
    %cst_189 = arith.constant 5.000000e-01 : f32
    %433 = vector.broadcast %cst_189 : f32 to vector<8x128xf32>
    %434 = arith.mulf %433, %432 : vector<8x128xf32>
    %cst_190 = arith.constant 5.000000e-01 : f32
    %435 = vector.broadcast %cst_190 : f32 to vector<8x128xf32>
    %436 = arith.addf %434, %435 : vector<8x128xf32>
    %437 = vector.extract_strided_slice %428 {offsets = [0, 128], sizes = [8, 128], strides = [1, 1]} : vector<8x512xf32> to vector<8x128xf32>
    %cst_191 = arith.constant 5.000000e-01 : f32
    %438 = vector.broadcast %cst_191 : f32 to vector<8x128xf32>
    %439 = arith.mulf %438, %437 : vector<8x128xf32>
    %440 = math.tanh %439 : vector<8x128xf32>
    %cst_192 = arith.constant 5.000000e-01 : f32
    %441 = vector.broadcast %cst_192 : f32 to vector<8x128xf32>
    %442 = arith.mulf %441, %440 : vector<8x128xf32>
    %cst_193 = arith.constant 5.000000e-01 : f32
    %443 = vector.broadcast %cst_193 : f32 to vector<8x128xf32>
    %444 = arith.addf %442, %443 : vector<8x128xf32>
    %445 = vector.extract_strided_slice %428 {offsets = [0, 256], sizes = [8, 128], strides = [1, 1]} : vector<8x512xf32> to vector<8x128xf32>
    %446 = math.tanh %445 : vector<8x128xf32>
    %447 = vector.extract_strided_slice %428 {offsets = [0, 384], sizes = [8, 128], strides = [1, 1]} : vector<8x512xf32> to vector<8x128xf32>
    %cst_194 = arith.constant 5.000000e-01 : f32
    %448 = vector.broadcast %cst_194 : f32 to vector<8x128xf32>
    %449 = arith.mulf %448, %447 : vector<8x128xf32>
    %450 = math.tanh %449 : vector<8x128xf32>
    %cst_195 = arith.constant 5.000000e-01 : f32
    %451 = vector.broadcast %cst_195 : f32 to vector<8x128xf32>
    %452 = arith.mulf %451, %450 : vector<8x128xf32>
    %cst_196 = arith.constant 5.000000e-01 : f32
    %453 = vector.broadcast %cst_196 : f32 to vector<8x128xf32>
    %454 = arith.addf %452, %453 : vector<8x128xf32>
    %455 = arith.mulf %444, %421 : vector<8x128xf32>
    %456 = arith.mulf %436, %446 : vector<8x128xf32>
    %457 = arith.addf %455, %456 : vector<8x128xf32>
    %458 = math.tanh %457 : vector<8x128xf32>
    %459 = arith.mulf %454, %458 : vector<8x128xf32>
    %c32_197 = arith.constant 32 : index
    %c0_198 = arith.constant 0 : index
    %460 = vector.load %arg14[%c32_197, %c0_198] : memref<64x512xf32, #tpu.memory_space<vmem>>, vector<8x512xf32>
    %461 = arith.truncf %459 : vector<8x128xf32> to vector<8x128xbf16>
    %c0_199 = arith.constant 0 : index
    %c0_200 = arith.constant 0 : index
    %462 = vector.load %arg5[%c0_199, %c0_200] : memref<128x512xbf16, #tpu.memory_space<vmem>>, vector<128x512xbf16>
    %cst_201 = arith.constant dense<0.000000e+00> : vector<8x512xf32>
    %463 = tpu.matmul %461, %462, %cst_201 {dimension_numbers = #tpu.dot_dimension_numbers<[1], [0], [0], [1], [0, 0, 1, 1], [], []>} : vector<8x128xbf16>, vector<128x512xbf16>, vector<8x512xf32> -> vector<8x512xf32>
    %464 = arith.addf %460, %463 : vector<8x512xf32>
    %465 = vector.extract_strided_slice %464 {offsets = [0, 0], sizes = [8, 128], strides = [1, 1]} : vector<8x512xf32> to vector<8x128xf32>
    %cst_202 = arith.constant 5.000000e-01 : f32
    %466 = vector.broadcast %cst_202 : f32 to vector<8x128xf32>
    %467 = arith.mulf %466, %465 : vector<8x128xf32>
    %468 = math.tanh %467 : vector<8x128xf32>
    %cst_203 = arith.constant 5.000000e-01 : f32
    %469 = vector.broadcast %cst_203 : f32 to vector<8x128xf32>
    %470 = arith.mulf %469, %468 : vector<8x128xf32>
    %cst_204 = arith.constant 5.000000e-01 : f32
    %471 = vector.broadcast %cst_204 : f32 to vector<8x128xf32>
    %472 = arith.addf %470, %471 : vector<8x128xf32>
    %473 = vector.extract_strided_slice %464 {offsets = [0, 128], sizes = [8, 128], strides = [1, 1]} : vector<8x512xf32> to vector<8x128xf32>
    %cst_205 = arith.constant 5.000000e-01 : f32
    %474 = vector.broadcast %cst_205 : f32 to vector<8x128xf32>
    %475 = arith.mulf %474, %473 : vector<8x128xf32>
    %476 = math.tanh %475 : vector<8x128xf32>
    %cst_206 = arith.constant 5.000000e-01 : f32
    %477 = vector.broadcast %cst_206 : f32 to vector<8x128xf32>
    %478 = arith.mulf %477, %476 : vector<8x128xf32>
    %cst_207 = arith.constant 5.000000e-01 : f32
    %479 = vector.broadcast %cst_207 : f32 to vector<8x128xf32>
    %480 = arith.addf %478, %479 : vector<8x128xf32>
    %481 = vector.extract_strided_slice %464 {offsets = [0, 256], sizes = [8, 128], strides = [1, 1]} : vector<8x512xf32> to vector<8x128xf32>
    %482 = math.tanh %481 : vector<8x128xf32>
    %483 = vector.extract_strided_slice %464 {offsets = [0, 384], sizes = [8, 128], strides = [1, 1]} : vector<8x512xf32> to vector<8x128xf32>
    %cst_208 = arith.constant 5.000000e-01 : f32
    %484 = vector.broadcast %cst_208 : f32 to vector<8x128xf32>
    %485 = arith.mulf %484, %483 : vector<8x128xf32>
    %486 = math.tanh %485 : vector<8x128xf32>
    %cst_209 = arith.constant 5.000000e-01 : f32
    %487 = vector.broadcast %cst_209 : f32 to vector<8x128xf32>
    %488 = arith.mulf %487, %486 : vector<8x128xf32>
    %cst_210 = arith.constant 5.000000e-01 : f32
    %489 = vector.broadcast %cst_210 : f32 to vector<8x128xf32>
    %490 = arith.addf %488, %489 : vector<8x128xf32>
    %491 = arith.mulf %480, %457 : vector<8x128xf32>
    %492 = arith.mulf %472, %482 : vector<8x128xf32>
    %493 = arith.addf %491, %492 : vector<8x128xf32>
    %494 = math.tanh %493 : vector<8x128xf32>
    %495 = arith.mulf %490, %494 : vector<8x128xf32>
    %c40_211 = arith.constant 40 : index
    %c0_212 = arith.constant 0 : index
    %496 = vector.load %arg14[%c40_211, %c0_212] : memref<64x512xf32, #tpu.memory_space<vmem>>, vector<8x512xf32>
    %497 = arith.truncf %495 : vector<8x128xf32> to vector<8x128xbf16>
    %c0_213 = arith.constant 0 : index
    %c0_214 = arith.constant 0 : index
    %498 = vector.load %arg5[%c0_213, %c0_214] : memref<128x512xbf16, #tpu.memory_space<vmem>>, vector<128x512xbf16>
    %cst_215 = arith.constant dense<0.000000e+00> : vector<8x512xf32>
    %499 = tpu.matmul %497, %498, %cst_215 {dimension_numbers = #tpu.dot_dimension_numbers<[1], [0], [0], [1], [0, 0, 1, 1], [], []>} : vector<8x128xbf16>, vector<128x512xbf16>, vector<8x512xf32> -> vector<8x512xf32>
    %500 = arith.addf %496, %499 : vector<8x512xf32>
    %501 = vector.extract_strided_slice %500 {offsets = [0, 0], sizes = [8, 128], strides = [1, 1]} : vector<8x512xf32> to vector<8x128xf32>
    %cst_216 = arith.constant 5.000000e-01 : f32
    %502 = vector.broadcast %cst_216 : f32 to vector<8x128xf32>
    %503 = arith.mulf %502, %501 : vector<8x128xf32>
    %504 = math.tanh %503 : vector<8x128xf32>
    %cst_217 = arith.constant 5.000000e-01 : f32
    %505 = vector.broadcast %cst_217 : f32 to vector<8x128xf32>
    %506 = arith.mulf %505, %504 : vector<8x128xf32>
    %cst_218 = arith.constant 5.000000e-01 : f32
    %507 = vector.broadcast %cst_218 : f32 to vector<8x128xf32>
    %508 = arith.addf %506, %507 : vector<8x128xf32>
    %509 = vector.extract_strided_slice %500 {offsets = [0, 128], sizes = [8, 128], strides = [1, 1]} : vector<8x512xf32> to vector<8x128xf32>
    %cst_219 = arith.constant 5.000000e-01 : f32
    %510 = vector.broadcast %cst_219 : f32 to vector<8x128xf32>
    %511 = arith.mulf %510, %509 : vector<8x128xf32>
    %512 = math.tanh %511 : vector<8x128xf32>
    %cst_220 = arith.constant 5.000000e-01 : f32
    %513 = vector.broadcast %cst_220 : f32 to vector<8x128xf32>
    %514 = arith.mulf %513, %512 : vector<8x128xf32>
    %cst_221 = arith.constant 5.000000e-01 : f32
    %515 = vector.broadcast %cst_221 : f32 to vector<8x128xf32>
    %516 = arith.addf %514, %515 : vector<8x128xf32>
    %517 = vector.extract_strided_slice %500 {offsets = [0, 256], sizes = [8, 128], strides = [1, 1]} : vector<8x512xf32> to vector<8x128xf32>
    %518 = math.tanh %517 : vector<8x128xf32>
    %519 = vector.extract_strided_slice %500 {offsets = [0, 384], sizes = [8, 128], strides = [1, 1]} : vector<8x512xf32> to vector<8x128xf32>
    %cst_222 = arith.constant 5.000000e-01 : f32
    %520 = vector.broadcast %cst_222 : f32 to vector<8x128xf32>
    %521 = arith.mulf %520, %519 : vector<8x128xf32>
    %522 = math.tanh %521 : vector<8x128xf32>
    %cst_223 = arith.constant 5.000000e-01 : f32
    %523 = vector.broadcast %cst_223 : f32 to vector<8x128xf32>
    %524 = arith.mulf %523, %522 : vector<8x128xf32>
    %cst_224 = arith.constant 5.000000e-01 : f32
    %525 = vector.broadcast %cst_224 : f32 to vector<8x128xf32>
    %526 = arith.addf %524, %525 : vector<8x128xf32>
    %527 = arith.mulf %516, %493 : vector<8x128xf32>
    %528 = arith.mulf %508, %518 : vector<8x128xf32>
    %529 = arith.addf %527, %528 : vector<8x128xf32>
    %530 = math.tanh %529 : vector<8x128xf32>
    %531 = arith.mulf %526, %530 : vector<8x128xf32>
    %c48_225 = arith.constant 48 : index
    %c0_226 = arith.constant 0 : index
    %532 = vector.load %arg14[%c48_225, %c0_226] : memref<64x512xf32, #tpu.memory_space<vmem>>, vector<8x512xf32>
    %533 = arith.truncf %531 : vector<8x128xf32> to vector<8x128xbf16>
    %c0_227 = arith.constant 0 : index
    %c0_228 = arith.constant 0 : index
    %534 = vector.load %arg5[%c0_227, %c0_228] : memref<128x512xbf16, #tpu.memory_space<vmem>>, vector<128x512xbf16>
    %cst_229 = arith.constant dense<0.000000e+00> : vector<8x512xf32>
    %535 = tpu.matmul %533, %534, %cst_229 {dimension_numbers = #tpu.dot_dimension_numbers<[1], [0], [0], [1], [0, 0, 1, 1], [], []>} : vector<8x128xbf16>, vector<128x512xbf16>, vector<8x512xf32> -> vector<8x512xf32>
    %536 = arith.addf %532, %535 : vector<8x512xf32>
    %537 = vector.extract_strided_slice %536 {offsets = [0, 0], sizes = [8, 128], strides = [1, 1]} : vector<8x512xf32> to vector<8x128xf32>
    %cst_230 = arith.constant 5.000000e-01 : f32
    %538 = vector.broadcast %cst_230 : f32 to vector<8x128xf32>
    %539 = arith.mulf %538, %537 : vector<8x128xf32>
    %540 = math.tanh %539 : vector<8x128xf32>
    %cst_231 = arith.constant 5.000000e-01 : f32
    %541 = vector.broadcast %cst_231 : f32 to vector<8x128xf32>
    %542 = arith.mulf %541, %540 : vector<8x128xf32>
    %cst_232 = arith.constant 5.000000e-01 : f32
    %543 = vector.broadcast %cst_232 : f32 to vector<8x128xf32>
    %544 = arith.addf %542, %543 : vector<8x128xf32>
    %545 = vector.extract_strided_slice %536 {offsets = [0, 128], sizes = [8, 128], strides = [1, 1]} : vector<8x512xf32> to vector<8x128xf32>
    %cst_233 = arith.constant 5.000000e-01 : f32
    %546 = vector.broadcast %cst_233 : f32 to vector<8x128xf32>
    %547 = arith.mulf %546, %545 : vector<8x128xf32>
    %548 = math.tanh %547 : vector<8x128xf32>
    %cst_234 = arith.constant 5.000000e-01 : f32
    %549 = vector.broadcast %cst_234 : f32 to vector<8x128xf32>
    %550 = arith.mulf %549, %548 : vector<8x128xf32>
    %cst_235 = arith.constant 5.000000e-01 : f32
    %551 = vector.broadcast %cst_235 : f32 to vector<8x128xf32>
    %552 = arith.addf %550, %551 : vector<8x128xf32>
    %553 = vector.extract_strided_slice %536 {offsets = [0, 256], sizes = [8, 128], strides = [1, 1]} : vector<8x512xf32> to vector<8x128xf32>
    %554 = math.tanh %553 : vector<8x128xf32>
    %555 = vector.extract_strided_slice %536 {offsets = [0, 384], sizes = [8, 128], strides = [1, 1]} : vector<8x512xf32> to vector<8x128xf32>
    %cst_236 = arith.constant 5.000000e-01 : f32
    %556 = vector.broadcast %cst_236 : f32 to vector<8x128xf32>
    %557 = arith.mulf %556, %555 : vector<8x128xf32>
    %558 = math.tanh %557 : vector<8x128xf32>
    %cst_237 = arith.constant 5.000000e-01 : f32
    %559 = vector.broadcast %cst_237 : f32 to vector<8x128xf32>
    %560 = arith.mulf %559, %558 : vector<8x128xf32>
    %cst_238 = arith.constant 5.000000e-01 : f32
    %561 = vector.broadcast %cst_238 : f32 to vector<8x128xf32>
    %562 = arith.addf %560, %561 : vector<8x128xf32>
    %563 = arith.mulf %552, %529 : vector<8x128xf32>
    %564 = arith.mulf %544, %554 : vector<8x128xf32>
    %565 = arith.addf %563, %564 : vector<8x128xf32>
    %566 = math.tanh %565 : vector<8x128xf32>
    %567 = arith.mulf %562, %566 : vector<8x128xf32>
    %c56_239 = arith.constant 56 : index
    %c0_240 = arith.constant 0 : index
    %568 = vector.load %arg14[%c56_239, %c0_240] : memref<64x512xf32, #tpu.memory_space<vmem>>, vector<8x512xf32>
    %569 = arith.truncf %567 : vector<8x128xf32> to vector<8x128xbf16>
    %c0_241 = arith.constant 0 : index
    %c0_242 = arith.constant 0 : index
    %570 = vector.load %arg5[%c0_241, %c0_242] : memref<128x512xbf16, #tpu.memory_space<vmem>>, vector<128x512xbf16>
    %cst_243 = arith.constant dense<0.000000e+00> : vector<8x512xf32>
    %571 = tpu.matmul %569, %570, %cst_243 {dimension_numbers = #tpu.dot_dimension_numbers<[1], [0], [0], [1], [0, 0, 1, 1], [], []>} : vector<8x128xbf16>, vector<128x512xbf16>, vector<8x512xf32> -> vector<8x512xf32>
    %572 = arith.addf %568, %571 : vector<8x512xf32>
    %573 = vector.extract_strided_slice %572 {offsets = [0, 0], sizes = [8, 128], strides = [1, 1]} : vector<8x512xf32> to vector<8x128xf32>
    %cst_244 = arith.constant 5.000000e-01 : f32
    %574 = vector.broadcast %cst_244 : f32 to vector<8x128xf32>
    %575 = arith.mulf %574, %573 : vector<8x128xf32>
    %576 = math.tanh %575 : vector<8x128xf32>
    %cst_245 = arith.constant 5.000000e-01 : f32
    %577 = vector.broadcast %cst_245 : f32 to vector<8x128xf32>
    %578 = arith.mulf %577, %576 : vector<8x128xf32>
    %cst_246 = arith.constant 5.000000e-01 : f32
    %579 = vector.broadcast %cst_246 : f32 to vector<8x128xf32>
    %580 = arith.addf %578, %579 : vector<8x128xf32>
    %581 = vector.extract_strided_slice %572 {offsets = [0, 128], sizes = [8, 128], strides = [1, 1]} : vector<8x512xf32> to vector<8x128xf32>
    %cst_247 = arith.constant 5.000000e-01 : f32
    %582 = vector.broadcast %cst_247 : f32 to vector<8x128xf32>
    %583 = arith.mulf %582, %581 : vector<8x128xf32>
    %584 = math.tanh %583 : vector<8x128xf32>
    %cst_248 = arith.constant 5.000000e-01 : f32
    %585 = vector.broadcast %cst_248 : f32 to vector<8x128xf32>
    %586 = arith.mulf %585, %584 : vector<8x128xf32>
    %cst_249 = arith.constant 5.000000e-01 : f32
    %587 = vector.broadcast %cst_249 : f32 to vector<8x128xf32>
    %588 = arith.addf %586, %587 : vector<8x128xf32>
    %589 = vector.extract_strided_slice %572 {offsets = [0, 256], sizes = [8, 128], strides = [1, 1]} : vector<8x512xf32> to vector<8x128xf32>
    %590 = math.tanh %589 : vector<8x128xf32>
    %591 = vector.extract_strided_slice %572 {offsets = [0, 384], sizes = [8, 128], strides = [1, 1]} : vector<8x512xf32> to vector<8x128xf32>
    %cst_250 = arith.constant 5.000000e-01 : f32
    %592 = vector.broadcast %cst_250 : f32 to vector<8x128xf32>
    %593 = arith.mulf %592, %591 : vector<8x128xf32>
    %594 = math.tanh %593 : vector<8x128xf32>
    %cst_251 = arith.constant 5.000000e-01 : f32
    %595 = vector.broadcast %cst_251 : f32 to vector<8x128xf32>
    %596 = arith.mulf %595, %594 : vector<8x128xf32>
    %cst_252 = arith.constant 5.000000e-01 : f32
    %597 = vector.broadcast %cst_252 : f32 to vector<8x128xf32>
    %598 = arith.addf %596, %597 : vector<8x128xf32>
    %599 = arith.mulf %588, %565 : vector<8x128xf32>
    %600 = arith.mulf %580, %590 : vector<8x128xf32>
    %601 = arith.addf %599, %600 : vector<8x128xf32>
    %602 = math.tanh %601 : vector<8x128xf32>
    %603 = arith.mulf %598, %602 : vector<8x128xf32>
    %604 = tpu.concatenate %304, %603 in 1 : vector<8x128xf32>, vector<8x128xf32> -> vector<8x256xf32>
    %605 = arith.truncf %604 : vector<8x256xf32> to vector<8x256xbf16>
    %c0_253 = arith.constant 0 : index
    %c0_254 = arith.constant 0 : index
    %606 = vector.load %arg7[%c0_253, %c0_254] : memref<256x128xbf16, #tpu.memory_space<vmem>>, vector<256x128xbf16>
    %cst_255 = arith.constant dense<0.000000e+00> : vector<8x128xf32>
    %607 = tpu.matmul %605, %606, %cst_255 {dimension_numbers = #tpu.dot_dimension_numbers<[1], [0], [0], [1], [0, 0, 1, 1], [], []>} : vector<8x256xbf16>, vector<256x128xbf16>, vector<8x128xf32> -> vector<8x128xf32>
    %c0_256 = arith.constant 0 : index
    %c0_257 = arith.constant 0 : index
    %608 = vector.load %arg8[%c0_256, %c0_257] : memref<1x128xf32, #tpu.memory_space<vmem>>, vector<1x128xf32>
    %609 = vector.broadcast %608 : vector<1x128xf32> to vector<8x128xf32>
    %610 = arith.addf %607, %609 : vector<8x128xf32>
    %cst_258 = arith.constant 0.000000e+00 : f32
    %611 = vector.broadcast %cst_258 : f32 to vector<8x128xf32>
    %612 = arith.maximumf %610, %611 : vector<8x128xf32>
    %613 = arith.truncf %612 : vector<8x128xf32> to vector<8x128xbf16>
    %c0_259 = arith.constant 0 : index
    %c0_260 = arith.constant 0 : index
    %614 = vector.load %arg9[%c0_259, %c0_260] : memref<128x128xbf16, #tpu.memory_space<vmem>>, vector<128x128xbf16>
    %cst_261 = arith.constant dense<0.000000e+00> : vector<8x128xf32>
    %615 = tpu.matmul %613, %614, %cst_261 {dimension_numbers = #tpu.dot_dimension_numbers<[1], [0], [0], [1], [0, 0, 1, 1], [], []>} : vector<8x128xbf16>, vector<128x128xbf16>, vector<8x128xf32> -> vector<8x128xf32>
    %c0_262 = arith.constant 0 : index
    %c0_263 = arith.constant 0 : index
    %616 = vector.load %arg10[%c0_262, %c0_263] : memref<1x128xf32, #tpu.memory_space<vmem>>, vector<1x128xf32>
    %617 = vector.broadcast %616 : vector<1x128xf32> to vector<8x128xf32>
    %618 = arith.addf %615, %617 : vector<8x128xf32>
    %cst_264 = arith.constant 0.000000e+00 : f32
    %619 = vector.broadcast %cst_264 : f32 to vector<8x128xf32>
    %620 = arith.maximumf %618, %619 : vector<8x128xf32>
    %621 = arith.truncf %620 : vector<8x128xf32> to vector<8x128xbf16>
    %c0_265 = arith.constant 0 : index
    %c0_266 = arith.constant 0 : index
    %622 = vector.load %arg11[%c0_265, %c0_266] : memref<128x128xbf16, #tpu.memory_space<vmem>>, vector<128x128xbf16>
    %cst_267 = arith.constant dense<0.000000e+00> : vector<8x128xf32>
    %623 = tpu.matmul %621, %622, %cst_267 {dimension_numbers = #tpu.dot_dimension_numbers<[1], [0], [0], [1], [0, 0, 1, 1], [], []>} : vector<8x128xbf16>, vector<128x128xbf16>, vector<8x128xf32> -> vector<8x128xf32>
    %c0_268 = arith.constant 0 : index
    %c0_269 = arith.constant 0 : index
    %624 = vector.load %arg12[%c0_268, %c0_269] : memref<1x128xf32, #tpu.memory_space<vmem>>, vector<1x128xf32>
    %625 = vector.broadcast %624 : vector<1x128xf32> to vector<8x128xf32>
    %626 = arith.addf %623, %625 : vector<8x128xf32>
    %c0_270 = arith.constant 0 : index
    %c0_271 = arith.constant 0 : index
    %627 = vector.load %arg13[%c0_270, %c0_271] : memref<8x128xf32, #tpu.memory_space<vmem>>, vector<8x128xf32>
    tpu.vector_store %arg13[%c0_270, %c0_271], %626 {strides = array<i32>} : memref<8x128xf32, #tpu.memory_space<vmem>>, vector<8x128xf32>,
    return
  }
}

</mosaic_0001>

<bundles_post_ra>
// kernel: tpu_custom_call.1
= control target key start
LH: loop header
LB: loop body
LE: loop exit
PB: predicated region body
PF: predicated region fallthrough
CT: control target
= control target key end

     0   :  { %18 = vsyncpa [#allocation5], 0  ;;  %s7103_s0 = inlined_call_operand.vmem [shape: f32[64,16], index: 0, kind: input, shape index: {}]   ;;  %s7104_s1 = inlined_call_operand.vmem [shape: bf16[16,512], index: 1, kind: input, shape index: {}]   ;;  %s7105_s2 = inlined_call_operand.hbm [shape: bf16[128,512], index: 2, kind: input, shape index: {}]   ;;  %s7106_s3 = inlined_call_operand.vmem [shape: f32[1,512], index: 3, kind: input, shape index: {}]   ;;  %s7107_s4 = inlined_call_operand.hbm [shape: bf16[128,512], index: 4, kind: input, shape index: {}]   ;;  %s7108_s5 = inlined_call_operand.hbm [shape: bf16[128,512], index: 5, kind: input, shape index: {}]   ;;  %s7109_s6 = inlined_call_operand.vmem [shape: f32[1,512], index: 6, kind: input, shape index: {}]   ;;  %s7110_s7 = inlined_call_operand.hbm [shape: bf16[256,128], index: 7, kind: input, shape index: {}]   ;;  %s7111_s8 = inlined_call_operand.vmem [shape: f32[1,128], index: 8, kind: input, shape index: {}]   ;;  %s7112_s9 = inlined_call_operand.vmem [shape: bf16[128,128], index: 9, kind: input, shape index: {}]   ;;  %s7113_s10 = inlined_call_operand.vmem [shape: f32[1,128], index: 10, kind: input, shape index: {}]   ;;  %s7114_s11 = inlined_call_operand.hbm [shape: bf16[128,128], index: 11, kind: input, shape index: {}]   ;;  %s7115_s12 = inlined_call_operand.vmem [shape: f32[1,128], index: 12, kind: input, shape index: {}]   ;;  %s7116_s13 = inlined_call_operand.hbm [shape: f32[8,128], index: 13, kind: output, shape index: {}]  }
   0x1   :  { %19 = vsyncpa [#allocation8], 0 }
   0x2   :  { %20 = vsyncpa [#allocation11], 0 }
   0x3   :  { %21 = vsyncpa [#allocation6], 0  ;;  %s5688_s25 = smov [#allocation7]   ;;  %s5689_s27 = smov [#allocation10]  }
   0x4   :  { %s45_s26 = sshll.u32 %s5688_s25, 4  ;;  %s71_s28 = sshll.u32 %s5689_s27, 4  ;;  %s46_s26 = int_to_ptr.vmem [resolvable:$true] %s45_s26  ;;  %s5771_s28 = int_to_ptr.vmem [resolvable:$true] %s71_s28 }
   0x5   :  { %s5548_s14 = scalar_lea.hbm %s7107_s4, 4096 }
   0x6   :  { %p5549_p0 = scmp.ne.s32.totalorder %s7107_s4, %s5548_s14  ;;  %p5552_p1 = scmp.lt.u32.totalorder %s5548_s14, %s7107_s4 }
   0x8   :  { %p5554_p2 = pnand %p5552_p1, %p5549_p0 }
   0xa   :  { %5557 = shalt.err (!%p5554_p2)
}
   0xb   :  { %s5558_s19 = scalar_lea.vmem %s46_s26, 4096  ;;  %p5563_p4 = scmp.lt.s32.totalorder %s46_s26, %s46_s26 }
   0xc   :  { %p5559_p3 = scmp.ne.s32.totalorder %s46_s26, %s5558_s19  ;;  %p5564_p5 = scmp.lt.s32.totalorder %s5558_s19, %s5558_s19 }
   0xe   :  { %p5565_p6 = por %p5564_p5, %p5563_p4 }
  0x10   :  { %p5566_p7 = pnand %p5565_p6, %p5559_p3 }
  0x12   :  { %5569 = shalt.err (!%p5566_p7)
}
  0x13   :  { %s5690_s20 = smov 256   ;;  %s5691_s21 = smov 16  }
  0x14   :  { %51 = dma.hbm_to_vmem [thread:$0]  %s7107_s4, 4096, %s46_s26, [#allocation8], %s5690_s20, %s5690_s20, %s5691_s21  }
  0x15   :  { %s5570_s27 = scalar_lea.hbm %s7110_s7, 2048 }
  0x16   :  { %p5571_p8 = scmp.ne.s32.totalorder %s7110_s7, %s5570_s27  ;;  %p5574_p9 = scmp.lt.u32.totalorder %s5570_s27, %s7110_s7 }
  0x18   :  { %p5576_p10 = pnand %p5574_p9, %p5571_p8 }
  0x1a   :  { %5579 = shalt.err (!%p5576_p10)
}
  0x1b   :  { %s5580_s16 = scalar_lea.vmem %s5771_s28, 2048  ;;  %p5585_p12 = scmp.lt.s32.totalorder %s5771_s28, %s5771_s28 }
  0x1c   :  { %p5581_p11 = scmp.ne.s32.totalorder %s5771_s28, %s5580_s16  ;;  %p5586_p13 = scmp.lt.s32.totalorder %s5580_s16, %s5580_s16 }
  0x1e   :  { %p5587_p0 = por %p5586_p13, %p5585_p12 }
  0x20   :  { %p5588_p1 = pnand %p5587_p0, %p5581_p11 }
  0x22   :  { %5591 = shalt.err (!%p5588_p1)
}
  0x23   :  { %s5692_s4 = smov 64   ;;  %s5693_s26 = smov 4  }
  0x24   :  { %77 = dma.hbm_to_vmem [thread:$0]  %s7110_s7, 2048, %s5771_s28, [#allocation11], %s5692_s4, %s5692_s4, %s5693_s26  }
  0x25   :  { %s5694_s19 = smov [#allocation4]   ;;  %s5695_s23 = smov [#allocation9]  }
  0x26   :  { %s31_s22 = sshll.u32 %s5694_s19, 4  ;;  %s57_s24 = sshll.u32 %s5695_s23, 4  ;;  %s32_s22 = int_to_ptr.vmem [resolvable:$true] %s31_s22  ;;  %s5808_s24 = int_to_ptr.vmem [resolvable:$true] %s57_s24 }
  0x27   :  { %s5592_s29 = scalar_lea.hbm %s7105_s2, 4096 }
  0x28   :  { %p5593_p2 = scmp.ne.s32.totalorder %s7105_s2, %s5592_s29  ;;  %p5596_p3 = scmp.lt.u32.totalorder %s5592_s29, %s7105_s2 }
  0x2a   :  { %p5598_p4 = pnand %p5596_p3, %p5593_p2 }
  0x2c   :  { %5601 = shalt.err (!%p5598_p4)
}
  0x2d   :  { %s5602_s7 = scalar_lea.vmem %s32_s22, 4096  ;;  %p5607_p6 = scmp.lt.s32.totalorder %s32_s22, %s32_s22 }
  0x2e   :  { %p5603_p5 = scmp.ne.s32.totalorder %s32_s22, %s5602_s7  ;;  %p5608_p7 = scmp.lt.s32.totalorder %s5602_s7, %s5602_s7 }
  0x30   :  { %p5609_p8 = por %p5608_p7, %p5607_p6 }
  0x32   :  { %p5610_p9 = pnand %p5609_p8, %p5603_p5 }
  0x34   :  { %5613 = shalt.err (!%p5610_p9)
}
  0x35   :  { %37 = dma.hbm_to_vmem [thread:$0]  %s7105_s2, 4096, %s32_s22, [#allocation5], %s5690_s20, %s5690_s20, %s5691_s21  }
  0x36   :  { %s5614_s23 = scalar_lea.hbm %s7108_s5, 4096 }
  0x37   :  { %p5615_p10 = scmp.ne.s32.totalorder %s7108_s5, %s5614_s23  ;;  %p5618_p11 = scmp.lt.u32.totalorder %s5614_s23, %s7108_s5 }
  0x39   :  { %p5620_p12 = pnand %p5618_p11, %p5615_p10 }
  0x3b   :  { %5623 = shalt.err (!%p5620_p12)
}
  0x3c   :  { %s5624_s14 = scalar_lea.vmem %s5808_s24, 4096  ;;  %p5629_p0 = scmp.lt.s32.totalorder %s5808_s24, %s5808_s24 }
  0x3d   :  { %p5625_p13 = scmp.ne.s32.totalorder %s5808_s24, %s5624_s14  ;;  %p5630_p1 = scmp.lt.s32.totalorder %s5624_s14, %s5624_s14 }
  0x3f   :  { %p5631_p2 = por %p5630_p1, %p5629_p0 }
  0x41   :  { %p5632_p3 = pnand %p5631_p2, %p5625_p13 }
  0x43   :  { %5635 = shalt.err (!%p5632_p3)
}
  0x44   :  { %63 = dma.hbm_to_vmem [thread:$0]  %s7108_s5, 4096, %s5808_s24, [#allocation8], %s5690_s20, %s5690_s20, %s5691_s21  }
  0x45   :  { %s5696_s15 = smov [#allocation12]   ;;  %s5636_s17 = scalar_lea.hbm %s7114_s11, 1024 }
  0x46   :  { %s89_s16 = sshll.u32 %s5696_s15, 4  ;;  %p5637_p4 = scmp.ne.s32.totalorder %s7114_s11, %s5636_s17  ;;  %s90_s16 = int_to_ptr.vmem [resolvable:$true] %s89_s16 }
  0x47   :  { %p5640_p5 = scmp.lt.u32.totalorder %s5636_s17, %s7114_s11 }
  0x49   :  { %p5642_p6 = pnand %p5640_p5, %p5637_p4 }
  0x4b   :  { %5645 = shalt.err (!%p5642_p6)
}
  0x4c   :  { %s5646_s27 = scalar_lea.vmem %s90_s16, 1024  ;;  %p5651_p8 = scmp.lt.s32.totalorder %s90_s16, %s90_s16 }
  0x4d   :  { %p5647_p7 = scmp.ne.s32.totalorder %s90_s16, %s5646_s27  ;;  %p5652_p9 = scmp.lt.s32.totalorder %s5646_s27, %s5646_s27 }
  0x4f   :  { %p5653_p10 = por %p5652_p9, %p5651_p8 }
  0x51   :  { %p5654_p11 = pnand %p5653_p10, %p5647_p7 }
  0x53   :  { %5657 = shalt.err (!%p5654_p11)
}
  0x54   :  { %95 = dma.hbm_to_vmem [thread:$0]  %s7114_s11, 1024, %s90_s16, [#allocation11], %s5692_s4, %s5692_s4, %s5693_s26  }
  0x55   :  { %5680 = dma.done.wait [#allocation5], 4096  }
  0x56   :  { %5681 = vsyncadd [#allocation5], 4294963200 }
  0x57   :  { %5682 = dma.done.wait [#allocation8], 8192  }
  0x58   :  { %5683 = vsyncadd [#allocation8], 4294959104 }
  0x59   :  { %5684 = dma.done.wait [#allocation11], 3072  }
  0x5a   :  { %5685 = vsyncadd [#allocation11], 4294964224  ;;  %v7121_v0 = vmov 0   ;;  %v5126_v1 = vld [vmem:[%s7104_s1 + $0x4] ss:$16 sps:$4 sm:$0xff]   ;;  %v115_v6 = vld [vmem:[%s7103_s0 + $0x8] sm:$0xff]  ;;  %v132_v49 = vlaneseq }
  0x5b   :  { %217 = vmatprep.mubr.bf16.mxu0 %v7121_v0  ;;  %290 = vmatprep.mubr.bf16.mxu1 %v7121_v0  ;;  %v5128_v2 = vld [vmem:[%s7104_s1 + $0xc] ss:$16 sps:$4 sm:$0xff]   ;;  %v5130_v3 = vld [vmem:[%s7104_s1] ss:$16 sps:$4 sm:$0xff]   ;;  %v5131_v4 = vld [vmem:[%s7104_s1 + $0x8] ss:$16 sps:$4 sm:$0xff]  }
  0x5c   :  { %185 = vmatprep.subr.bf16.mxu0 %v5126_v1  ;;  %v114_v5 = vld [vmem:[%s7103_s0] sm:$0xff]  ;;  %258 = vmatprep.subr.bf16.mxu1 %v5128_v2  ;;  %vm172_vm0 = vcmask 130048   ;;  %v5884_v10 = vld [vmem:[#allocation4 + $0x8] ss:$16 sps:$4 sm:$0xff]   ;;  %v5886_v11 = vld [vmem:[#allocation4 + $0xc] ss:$16 sps:$4 sm:$0xff]  }
  0x5d   :  { %186 = vmatpush1.bf16.msra.mxu0 %v5130_v3  ;;  %259 = vmatpush1.bf16.msra.mxu1 %v5131_v4  ;;  %v122_v7 = vpack.c.bf16 %v115_v6, %v114_v5  ;;  %v5880_v8 = vld [vmem:[#allocation4] ss:$16 sps:$4 sm:$0xff]   ;;  %v5882_v9 = vld [vmem:[#allocation4 + $0x4] ss:$16 sps:$4 sm:$0xff]   ;;  %v5897_v14 = vld [vmem:[#allocation4 + $0x28] ss:$16 sps:$4 sm:$0xff]  }
  0x5e   :  { %559 = vmatprep.subr.bf16.mxu0 %v5882_v9  ;;  %v5889_v12 = vld [vmem:[#allocation4 + $0x20] ss:$16 sps:$4 sm:$0xff]   ;;  %v5893_v13 = vld [vmem:[#allocation4 + $0x24] ss:$16 sps:$4 sm:$0xff]   ;;  %600 = vmatprep.subr.bf16.mxu1 %v5886_v11  ;;  %v5899_v15 = vld [vmem:[#allocation4 + $0x2c] ss:$16 sps:$4 sm:$0xff]  }
  0x5f   :  { %v116_v16 = vld [vmem:[%s7103_s0 + $0x10] sm:$0xff]  ;;  %v117_v17 = vld [vmem:[%s7103_s0 + $0x18] sm:$0xff]  ;;  %v118_v26 = vld [vmem:[%s7103_s0 + $0x20] sm:$0xff]  ;;  %v6048_v50 = vshrl.u32 %v132_v49, 7  ;;  %vm5699_vm1 = vmmov 0   ;;  %s5700_s20 = smov [#allocation13]  }
  0x60   :  { %4670 = vmatmul.mubr.msk.bf16.vlgmr.msra.gmra.mrb[0].mxu0 %vm172_vm0, %v122_v7  ;;  %4674 = vmatmul.mubr.msk.bf16.vlgmr.msra.gmra.mrb[0].mxu1 %vm172_vm0, %v122_v7  ;;  %v5911_v18 = vld [vmem:[#allocation4 + $0x44] ss:$16 sps:$4 sm:$0xff]   ;;  %v123_v19 = vpack.c.bf16 %v117_v17, %v116_v16  ;;  %v5914_v20 = vld [vmem:[#allocation4 + $0x40] ss:$16 sps:$4 sm:$0xff]   ;;  %v5916_v21 = vld [vmem:[#allocation4 + $0x4c] ss:$16 sps:$4 sm:$0xff]  }
  0x61   :  { %560 = vmatpush1.bf16.msra.mxu0 %v5880_v8  ;;  %601 = vmatpush1.bf16.msra.mxu1 %v5884_v10  ;;  %v5919_v22 = vld [vmem:[#allocation4 + $0x48] ss:$16 sps:$4 sm:$0xff]   ;;  %v5923_v23 = vld [vmem:[#allocation4 + $0x64] ss:$16 sps:$4 sm:$0xff]   ;;  %v5926_v24 = vld [vmem:[#allocation4 + $0x6c] ss:$16 sps:$4 sm:$0xff]  }
  0x62   :  { %561 = vmatprep.subr.bf16.mxu0 %v5893_v13  ;;  %602 = vmatprep.subr.bf16.mxu1 %v5899_v15  ;;  %v5930_v25 = vld [vmem:[#allocation4 + $0x60] ss:$16 sps:$4 sm:$0xff]   ;;  %v119_v27 = vld [vmem:[%s7103_s0 + $0x28] sm:$0xff]  ;;  %v5944_v29 = vld [vmem:[#allocation4 + $0x84] ss:$16 sps:$4 sm:$0xff]   ;;  %7126 = vst [vmem:[#allocation18_spill] sm:$0xff] %v6048_v50 }
  0x63   :  { %227 = vmatprep.mubr.bf16.mxu0 %v7121_v0  ;;  %300 = vmatprep.mubr.bf16.mxu1 %v7121_v0  ;;  %v5942_v28 = vld [vmem:[#allocation4 + $0x68] ss:$16 sps:$4 sm:$0xff]   ;;  %v5948_v30 = vld [vmem:[#allocation4 + $0x8c] ss:$16 sps:$4 sm:$0xff]   ;;  %v124_v31 = vpack.c.bf16 %v119_v27, %v118_v26  ;;  %v5951_v32 = vld [vmem:[#allocation4 + $0x80] ss:$16 sps:$4 sm:$0xff]  }
  0x64   :  { %v5953_v33 = vld [vmem:[#allocation4 + $0x88] ss:$16 sps:$4 sm:$0xff]   ;;  %v5957_v34 = vld [vmem:[#allocation4 + $0xa4] ss:$16 sps:$4 sm:$0xff]   ;;  %v5960_v35 = vld [vmem:[#allocation4 + $0xa0] ss:$16 sps:$4 sm:$0xff]  }
  0x65   :  { %562 = vmatpush1.bf16.msra.mxu0 %v5889_v12  ;;  %603 = vmatpush1.bf16.msra.mxu1 %v5897_v14  ;;  %v5962_v36 = vld [vmem:[#allocation4 + $0xac] ss:$16 sps:$4 sm:$0xff]   ;;  %v5966_v37 = vld [vmem:[#allocation4 + $0xa8] ss:$16 sps:$4 sm:$0xff]   ;;  %v120_v38 = vld [vmem:[%s7103_s0 + $0x30] sm:$0xff]  ;;  %v7119_v51 = vsub.s32 2, %v6048_v50 }
  0x66   :  { %563 = vmatprep.subr.bf16.mxu0 %v5911_v18  ;;  %604 = vmatprep.subr.bf16.mxu1 %v5916_v21  ;;  %v121_v39 = vld [vmem:[%s7103_s0 + $0x38] sm:$0xff]  ;;  %v5978_v40 = vld [vmem:[#allocation4 + $0xc4] ss:$16 sps:$4 sm:$0xff]   ;;  %v5982_v41 = vld [vmem:[#allocation4 + $0xc0] ss:$16 sps:$4 sm:$0xff]   ;;  %v7117_v52 = vsub.s32 3, %v6048_v50 }
  0x67   :  { %v5984_v42 = vld [vmem:[#allocation4 + $0xcc] ss:$16 sps:$4 sm:$0xff]   ;;  %v125_v43 = vpack.c.bf16 %v121_v39, %v120_v38  ;;  %v5986_v44 = vld [vmem:[#allocation4 + $0xc8] ss:$16 sps:$4 sm:$0xff]   ;;  %v5988_v45 = vld [vmem:[#allocation4 + $0xe4] ss:$16 sps:$4 sm:$0xff]  }
  0x68   :  { %4671 = vmatmul.mubr.msk.bf16.gmra.mrb[4].mxu0 %vm172_vm0, %v123_v19  ;;  %4675 = vmatmul.mubr.msk.bf16.gmra.mrb[4].mxu1 %vm172_vm0, %v123_v19  ;;  %v5991_v46 = vld [vmem:[#allocation4 + $0xec] ss:$16 sps:$4 sm:$0xff]   ;;  %v5996_v47 = vld [vmem:[#allocation4 + $0xe0] ss:$16 sps:$4 sm:$0xff]   ;;  %v6000_v48 = vld [vmem:[#allocation4 + $0xe8] ss:$16 sps:$4 sm:$0xff]  }
  0x69   :  { %564 = vmatpush1.bf16.msra.mxu0 %v5914_v20  ;;  %237 = vmatprep.mubr.bf16.mxu0 %v7121_v0  ;;  %v7120_v53 = vsub.s32 0, %v6048_v50  ;;  %v130_v54 = vld [vmem:[%s7106_s3] sm:$0xf]  ;;  %v7118_v55 = vsub.s32 1, %v6048_v50  ;;  %s4655_s21 = sshll.u32 %s5700_s20, 4  ;;  %s4656_s21 = int_to_ptr.vmem [resolvable:$true] %s4655_s21 }
  0x6a   :  { %605 = vmatpush1.bf16.msra.mxu1 %v5919_v22  ;;  %565 = vmatprep.subr.bf16.mxu0 %v5923_v23  ;;  %v6059_v56 = vrot.slane %v130_v54, %v7119_v51  ;;  %v6067_v59 = vrot.slane %v130_v54, %v7117_v52  ;;  %p5663_p13 = scmp.lt.s32.totalorder %s4656_s21, %s4656_s21 }
  0x6b   :  { %606 = vmatprep.subr.bf16.mxu1 %v5926_v24  ;;  %310 = vmatprep.mubr.bf16.mxu1 %v7121_v0  ;;  %v135_v60 = vrot.slane %v130_v54, %v7120_v53  ;;  %v139_v63 = vrot.slane %v130_v54, %v7118_v55 }
  0x6d   :  { %566 = vmatpush1.bf16.msra.mxu0 %v5930_v25 }
  0x6e   :  { %607 = vmatpush1.bf16.msra.mxu1 %v5942_v28  ;;  %567 = vmatprep.subr.bf16.mxu0 %v5944_v29 }
  0x6f   :  { %608 = vmatprep.subr.bf16.mxu1 %v5948_v30 }
  0x70   :  { %4672 = vmatmul.mubr.msk.bf16.gmra.mrb[8].mxu0 %vm172_vm0, %v124_v31  ;;  %4676 = vmatmul.mubr.msk.bf16.gmra.mrb[8].mxu1 %vm172_vm0, %v124_v31 }
  0x71   :  { %568 = vmatpush1.bf16.msra.mxu0 %v5951_v32  ;;  %247 = vmatprep.mubr.bf16.mxu0 %v7121_v0 }
  0x72   :  { %609 = vmatpush1.bf16.msra.mxu1 %v5953_v33  ;;  %569 = vmatprep.subr.bf16.mxu0 %v5957_v34 }
  0x73   :  { %610 = vmatprep.subr.bf16.mxu1 %v5962_v36  ;;  %320 = vmatprep.mubr.bf16.mxu1 %v7121_v0 }
  0x75   :  { %570 = vmatpush1.bf16.msra.mxu0 %v5960_v35 }
  0x76   :  { %611 = vmatpush1.bf16.msra.mxu1 %v5966_v37  ;;  %571 = vmatprep.subr.bf16.mxu0 %v5978_v40 }
  0x77   :  { %612 = vmatprep.subr.bf16.mxu1 %v5984_v42 }
  0x78   :  { %4673 = vmatmul.mubr.msk.bf16.gmra.mrb[12].mxu0 %vm172_vm0, %v125_v43  ;;  %4677 = vmatmul.mubr.msk.bf16.gmra.mrb[12].mxu1 %vm172_vm0, %v125_v43 }
  0x79   :  { %572 = vmatpush1.bf16.msra.mxu0 %v5982_v41  ;;  %591 = vmatprep.mubr.bf16.mxu0 %v7121_v0 }
  0x7a   :  { %613 = vmatpush1.bf16.msra.mxu1 %v5986_v44  ;;  %573 = vmatprep.subr.bf16.mxu0 %v5988_v45 }
  0x7b   :  { %614 = vmatprep.subr.bf16.mxu1 %v5991_v46  ;;  %632 = vmatprep.mubr.bf16.mxu1 %v7121_v0 }
  0x7d   :  { %574 = vmatpush1.bf16.msra.mxu0 %v5996_v47 }
  0x7e   :  { %615 = vmatpush1.bf16.msra.mxu1 %v6000_v48  ;;  %861 = vmatprep.subr.bf16.mxu0 %v5882_v9 }
  0x7f   :  { %902 = vmatprep.subr.bf16.mxu1 %v5886_v11 }
  0x80   :  { %592 = vmatmul.mubr.bf16.vlgmr.msra.gmra.mrb[16].mxu0 %v7121_v0 }
  0x81   :  { %633 = vmatmul.mubr.bf16.vlgmr.msra.gmra.mrb[16].mxu1 %v7121_v0  ;;  %862 = vmatpush1.bf16.msra.mxu0 %v5880_v8 }
  0x82   :  { %903 = vmatpush1.bf16.msra.mxu1 %v5884_v10  ;;  %863 = vmatprep.subr.bf16.mxu0 %v5893_v13 }
  0x83   :  { %904 = vmatprep.subr.bf16.mxu1 %v5899_v15  ;;  %893 = vmatprep.mubr.bf16.mxu0 %v7121_v0 }
  0x84   :  { %934 = vmatprep.mubr.bf16.mxu1 %v7121_v0 }
  0x85   :  { %864 = vmatpush1.bf16.msra.mxu0 %v5889_v12 }
  0x86   :  { %905 = vmatpush1.bf16.msra.mxu1 %v5897_v14  ;;  %865 = vmatprep.subr.bf16.mxu0 %v5911_v18 }
  0x87   :  { %906 = vmatprep.subr.bf16.mxu1 %v5916_v21 }
  0x89   :  { %866 = vmatpush1.bf16.msra.mxu0 %v5914_v20 }
  0x8a   :  { %907 = vmatpush1.bf16.msra.mxu1 %v5919_v22  ;;  %867 = vmatprep.subr.bf16.mxu0 %v5923_v23 }
  0x8b   :  { %908 = vmatprep.subr.bf16.mxu1 %v5926_v24 }
  0x8d   :  { %868 = vmatpush1.bf16.msra.mxu0 %v5930_v25 }
  0x8e   :  { %909 = vmatpush1.bf16.msra.mxu1 %v5942_v28  ;;  %869 = vmatprep.subr.bf16.mxu0 %v5944_v29 }
  0x8f   :  { %910 = vmatprep.subr.bf16.mxu1 %v5948_v30 }
  0x91   :  { %870 = vmatpush1.bf16.msra.mxu0 %v5951_v32 }
  0x92   :  { %911 = vmatpush1.bf16.msra.mxu1 %v5953_v33  ;;  %871 = vmatprep.subr.bf16.mxu0 %v5957_v34 }
  0x93   :  { %912 = vmatprep.subr.bf16.mxu1 %v5962_v36 }
  0x95   :  { %872 = vmatpush1.bf16.msra.mxu0 %v5960_v35 }
  0x96   :  { %913 = vmatpush1.bf16.msra.mxu1 %v5966_v37  ;;  %873 = vmatprep.subr.bf16.mxu0 %v5978_v40 }
  0x97   :  { %914 = vmatprep.subr.bf16.mxu1 %v5984_v42 }
  0x99   :  { %874 = vmatpush1.bf16.msra.mxu0 %v5982_v41 }
  0x9a   :  { %915 = vmatpush1.bf16.msra.mxu1 %v5986_v44  ;;  %875 = vmatprep.subr.bf16.mxu0 %v5988_v45 }
  0x9b   :  { %916 = vmatprep.subr.bf16.mxu1 %v5991_v46 }
  0x9d   :  { %876 = vmatpush1.bf16.msra.mxu0 %v5996_v47 }
  0x9e   :  { %917 = vmatpush1.bf16.msra.mxu1 %v6000_v48  ;;  %1163 = vmatprep.subr.bf16.mxu0 %v5882_v9 }
  0x9f   :  { %1204 = vmatprep.subr.bf16.mxu1 %v5886_v11 }
 0x133   :  { %v6061_v57 = vpop.f32.mrb[0].mxu0  ;;  %v6063_v58 = vpop.f32.mrb[0].mxu1 }
 0x134   :  { %v221_v61 = vpop.f32.mrb[1].mxu0  ;;  %v294_v62 = vpop.f32.mrb[1].mxu1 }
 0x135   :  { %v223_v1 = vpop.f32.mrb[2].mxu0  ;;  %v296_v2 = vpop.f32.mrb[2].mxu1 }
 0x136   :  { %v6073_v3 = vadd.f32 %v223_v1, %v135_v60  ;;  %v225_v4 = vpop.f32.mrb[3].mxu0  ;;  %v6076_v5 = vadd.f32 %v296_v2, %v6059_v56  ;;  %v298_v6 = vpop.f32.mrb[3].mxu1 }
 0x137   :  { %v6078_v7 = vadd.f32 %v225_v4, %v139_v63  ;;  %v6081_v16 = vadd.f32 %v298_v6, %v6067_v59 }
 0x13b   :  { %v229_v17 = vpop.f32.mrb[4].mxu0  ;;  %v302_v19 = vpop.f32.mrb[4].mxu1 }
 0x13c   :  { %v6083_v26 = vadd.f32 %v229_v17, %v135_v60  ;;  %v231_v27 = vpop.f32.mrb[5].mxu0  ;;  %v6086_v31 = vadd.f32 %v302_v19, %v6059_v56  ;;  %v304_v38 = vpop.f32.mrb[5].mxu1 }
 0x13d   :  { %v6088_v39 = vadd.f32 %v231_v27, %v139_v63  ;;  %v233_v43 = vpop.f32.mrb[6].mxu0  ;;  %v6091_v49 = vadd.f32 %v304_v38, %v6067_v59  ;;  %v306_v54 = vpop.f32.mrb[6].mxu1 }
 0x13e   :  { %v6093_v1 = vadd.f32 %v233_v43, %v135_v60  ;;  %v235_v2 = vpop.f32.mrb[7].mxu0  ;;  %v6096_v4 = vadd.f32 %v306_v54, %v6059_v56  ;;  %v308_v6 = vpop.f32.mrb[7].mxu1 }
 0x13f   :  { %7127 = vst [vmem:[#allocation19_spill] sm:$0xff] %v6091_v49  ;;  %v6098_v17 = vadd.f32 %v235_v2, %v139_v63  ;;  %v6101_v19 = vadd.f32 %v308_v6, %v6067_v59 }
 0x140   :  { %7128 = vst [vmem:[#allocation20_spill] sm:$0xff] %v6093_v1  ;;  %7129 = vst [vmem:[#allocation21_spill] sm:$0xff] %v6096_v4 }
 0x141   :  { %7130 = vst [vmem:[#allocation22_spill] sm:$0xff] %v6098_v17  ;;  %7131 = vst [vmem:[#allocation23_spill] sm:$0xff] %v6101_v19 }
 0x143   :  { %v239_v52 = vpop.f32.mrb[8].mxu0  ;;  %v312_v27 = vpop.f32.mrb[8].mxu1 }
 0x144   :  { %v6103_v55 = vadd.f32 %v239_v52, %v135_v60  ;;  %v241_v51 = vpop.f32.mrb[9].mxu0  ;;  %v6106_v38 = vadd.f32 %v312_v27, %v6059_v56  ;;  %v314_v43 = vpop.f32.mrb[9].mxu1 }
 0x145   :  { %v6108_v53 = vadd.f32 %v241_v51, %v139_v63  ;;  %v243_v0 = vpop.f32.mrb[10].mxu0  ;;  %v6111_v54 = vadd.f32 %v314_v43, %v6067_v59  ;;  %v316_v2 = vpop.f32.mrb[10].mxu1 }
 0x146   :  { %7132 = vst [vmem:[#allocation24_spill] sm:$0xff] %v6103_v55  ;;  %7133 = vst [vmem:[#allocation25_spill] sm:$0xff] %v6106_v38  ;;  %v6113_v50 = vadd.f32 %v243_v0, %v135_v60  ;;  %v245_v6 = vpop.f32.mrb[11].mxu0  ;;  %v6116_v19 = vadd.f32 %v316_v2, %v6059_v56  ;;  %v318_v52 = vpop.f32.mrb[11].mxu1 }
 0x147   :  { %7134 = vst [vmem:[#allocation26_spill] sm:$0xff] %v6108_v53  ;;  %7135 = vst [vmem:[#allocation27_spill] sm:$0xff] %v6111_v54  ;;  %v6118_v55 = vadd.f32 %v245_v6, %v139_v63  ;;  %v6121_v27 = vadd.f32 %v318_v52, %v6067_v59 }
 0x148   :  { %7136 = vst [vmem:[#allocation28_spill] sm:$0xff] %v6113_v50  ;;  %7137 = vst [vmem:[#allocation29_spill] sm:$0xff] %v6116_v19 }
 0x149   :  { %7138 = vst [vmem:[#allocation30_spill] sm:$0xff] %v6118_v55  ;;  %7139 = vst [vmem:[#allocation31_spill] sm:$0xff] %v6121_v27 }
 0x14b   :  { %v249_v38 = vpop.f32.mrb[12].mxu0  ;;  %v322_v51 = vpop.f32.mrb[12].mxu1 }
 0x14c   :  { %v6123_v53 = vadd.f32 %v249_v38, %v135_v60  ;;  %v251_v17 = vpop.f32.mrb[13].mxu0  ;;  %v6126_v43 = vadd.f32 %v322_v51, %v6059_v56  ;;  %v324_v0 = vpop.f32.mrb[13].mxu1 }
 0x14d   :  { %v6128_v50 = vadd.f32 %v251_v17, %v139_v63  ;;  %v253_v54 = vpop.f32.mrb[14].mxu0  ;;  %v6131_v2 = vadd.f32 %v324_v0, %v6067_v59  ;;  %v326_v6 = vpop.f32.mrb[14].mxu1  ;;  %v220_v17 = vadd.f32 %v6061_v57, %v135_v60  ;;  %v293_v0 = vadd.f32 %v6063_v58, %v6059_v56 }
 0x14e   :  { %7140 = vst [vmem:[#allocation32_spill] sm:$0xff] %v6123_v53  ;;  %7141 = vst [vmem:[#allocation33_spill] sm:$0xff] %v6126_v43  ;;  %v6133_v55 = vadd.f32 %v253_v54, %v135_v60  ;;  %v255_v52 = vpop.f32.mrb[15].mxu0  ;;  %v6136_v27 = vadd.f32 %v326_v6, %v6059_v56  ;;  %v328_v38 = vpop.f32.mrb[15].mxu1  ;;  %v295_v54 = vadd.f32 %v294_v62, %v6067_v59 }
 0x14f   :  { %7142 = vst [vmem:[#allocation34_spill] sm:$0xff] %v6128_v50  ;;  %7143 = vst [vmem:[#allocation35_spill] sm:$0xff] %v6131_v2  ;;  %v6138_v53 = vadd.f32 %v255_v52, %v139_v63  ;;  %v6141_v51 = vadd.f32 %v328_v38, %v6067_v59  ;;  %v222_v50 = vadd.f32 %v221_v61, %v139_v63 }
 0x150   :  { %7144 = vst [vmem:[#allocation36_spill] sm:$0xff] %v6133_v55  ;;  %7145 = vst [vmem:[#allocation37_spill] sm:$0xff] %v6136_v27 }
 0x151   :  { %7146 = vst [vmem:[#allocation38_spill] sm:$0xff] %v6138_v53  ;;  %7147 = vst [vmem:[#allocation39_spill] sm:$0xff] %v6141_v51 }
 0x153   :  { %v593_v2 = vpop.f32.mrb[16].mxu0 }
 0x154   :  { %v641_v55 = vadd.f32 %v593_v2, %v220_v17  ;;  %v634_v43 = vpop.f32.mrb[16].mxu1  ;;  %v595_v19 = vpop.f32.mrb[17].mxu0 }
 0x155   :  { %v643_v6 = vadd.f32 %v634_v43, %v293_v0  ;;  %v642_v27 = vadd.f32 %v595_v19, %v222_v50  ;;  %v636_v4 = vpop.f32.mrb[17].mxu1  ;;  %v597_v52 = vpop.f32.mrb[18].mxu0 }
 0x156   :  { %v645_v53 = vmul.f32 0.5, %v641_v55  ;;  %v644_v1 = vadd.f32 %v636_v4, %v295_v54  ;;  %v598_v38 = vpop.f32.mrb[19].mxu0  ;;  %v638_v51 = vpop.f32.mrb[18].mxu1 }
 0x157   :  { %v649_v49 = vmul.f32 0.5, %v642_v27  ;;  %v639_v57 = vpop.f32.mrb[19].mxu1  ;;  %v7148_v51 = vmov 0  }
 0x158   :  { %5356 = vtanh.f32 %v645_v53  ;;  %v654_v56 = vmul.f32 0.5, %v644_v1 }
 0x159   :  { %5358 = vtanh.f32 %v649_v49 }
 0x15a   :  { %5360 = vtanh.f32 %v643_v6 }
 0x15b   :  { %5362 = vtanh.f32 %v654_v56 }
 0x162   :  { %v5357_v58 = vpop.eup %5356 }
 0x163   :  { %v5359_v60 = vpop.eup %5358  ;;  %v647_v59 = vmul.f32 0.5, %v5357_v58 }
 0x164   :  { %v651_v61 = vmul.f32 0.5, %v5359_v60  ;;  %v5361_v63 = vpop.eup %5360 }
 0x165   :  { %v648_v62 = vadd.f32 0.5, %v647_v59  ;;  %v5363_v4 = vpop.eup %5362 }
 0x166   :  { %v652_v50 = vadd.f32 0.5, %v651_v61  ;;  %v656_v27 = vmul.f32 0.5, %v5363_v4 }
 0x167   :  { %v659_v19 = vmul.f32 %v5361_v63, %v648_v62 }
 0x168   :  { %v658_v43 = vmul.f32 0.0, %v652_v50  ;;  %v657_v53 = vadd.f32 0.5, %v656_v27 }
 0x16a   :  { %v6147_v55 = vadd.f32 %v659_v19, %v658_v43 }
 0x16c   :  { %5364 = vtanh.f32 %v6147_v55 }
 0x176   :  { %v5365_v49 = vpop.eup %5364 }
 0x177   :  { %v6150_v2 = vmul.f32 %v5365_v49, %v657_v53 }
 0x179   :  { %v668_v1 = vpack.c.bf16 %v6150_v2, %v6150_v2 }
 0x17b   :  { %894 = vmatmul.mubr.bf16.vlgmr.msra.gmra.mrb[20].mxu0 %v668_v1  ;;  %935 = vmatmul.mubr.bf16.vlgmr.msra.gmra.mrb[20].mxu1 %v668_v1 }
 0x17c   :  { %1164 = vmatpush1.bf16.msra.mxu0 %v5880_v8  ;;  %1205 = vmatpush1.bf16.msra.mxu1 %v5884_v10 }
 0x17d   :  { %1165 = vmatprep.subr.bf16.mxu0 %v5893_v13  ;;  %1206 = vmatprep.subr.bf16.mxu1 %v5899_v15 }
 0x17e   :  { %1195 = vmatprep.mubr.bf16.mxu0 %v7148_v51  ;;  %1236 = vmatprep.mubr.bf16.mxu1 %v7148_v51 }
 0x180   :  { %1166 = vmatpush1.bf16.msra.mxu0 %v5889_v12  ;;  %1207 = vmatpush1.bf16.msra.mxu1 %v5897_v14 }
 0x181   :  { %1167 = vmatprep.subr.bf16.mxu0 %v5911_v18  ;;  %1208 = vmatprep.subr.bf16.mxu1 %v5916_v21 }
 0x184   :  { %1168 = vmatpush1.bf16.msra.mxu0 %v5914_v20  ;;  %1209 = vmatpush1.bf16.msra.mxu1 %v5919_v22 }
 0x185   :  { %1169 = vmatprep.subr.bf16.mxu0 %v5923_v23  ;;  %1210 = vmatprep.subr.bf16.mxu1 %v5926_v24 }
 0x188   :  { %1170 = vmatpush1.bf16.msra.mxu0 %v5930_v25  ;;  %1211 = vmatpush1.bf16.msra.mxu1 %v5942_v28 }
 0x189   :  { %1171 = vmatprep.subr.bf16.mxu0 %v5944_v29  ;;  %1212 = vmatprep.subr.bf16.mxu1 %v5948_v30 }
 0x18c   :  { %1172 = vmatpush1.bf16.msra.mxu0 %v5951_v32  ;;  %1213 = vmatpush1.bf16.msra.mxu1 %v5953_v33 }
 0x18d   :  { %1173 = vmatprep.subr.bf16.mxu0 %v5957_v34  ;;  %1214 = vmatprep.subr.bf16.mxu1 %v5962_v36 }
 0x190   :  { %1174 = vmatpush1.bf16.msra.mxu0 %v5960_v35  ;;  %1215 = vmatpush1.bf16.msra.mxu1 %v5966_v37 }
 0x191   :  { %1175 = vmatprep.subr.bf16.mxu0 %v5978_v40  ;;  %1216 = vmatprep.subr.bf16.mxu1 %v5984_v42 }
 0x194   :  { %1176 = vmatpush1.bf16.msra.mxu0 %v5982_v41  ;;  %1217 = vmatpush1.bf16.msra.mxu1 %v5986_v44 }
 0x195   :  { %1177 = vmatprep.subr.bf16.mxu0 %v5988_v45  ;;  %1218 = vmatprep.subr.bf16.mxu1 %v5991_v46 }
 0x198   :  { %1178 = vmatpush1.bf16.msra.mxu0 %v5996_v47  ;;  %1219 = vmatpush1.bf16.msra.mxu1 %v6000_v48 }
 0x199   :  { %1465 = vmatprep.subr.bf16.mxu0 %v5882_v9  ;;  %1506 = vmatprep.subr.bf16.mxu1 %v5886_v11 }
 0x24e   :  { %v895_v17 = vpop.f32.mrb[20].mxu0  ;;  %v936_v0 = vpop.f32.mrb[20].mxu1 }
 0x24f   :  { %v943_v54 = vadd.f32 %v895_v17, %v6073_v3  ;;  %v945_v6 = vadd.f32 %v936_v0, %v6076_v5  ;;  %v897_v52 = vpop.f32.mrb[21].mxu0  ;;  %v938_v38 = vpop.f32.mrb[21].mxu1 }
 0x250   :  { %v944_v57 = vadd.f32 %v897_v52, %v6078_v7  ;;  %v946_v56 = vadd.f32 %v938_v38, %v6081_v16  ;;  %v899_v58 = vpop.f32.mrb[22].mxu0  ;;  %v940_v60 = vpop.f32.mrb[22].mxu1  ;;  %v6252_v52 = vld [vmem:[#allocation4 + $0x8] ss:$16 sps:$4 sm:$0xff]   ;;  %v6258_v38 = vld [vmem:[#allocation4 + $0x24] ss:$16 sps:$4 sm:$0xff]  }
 0x251   :  { %v947_v59 = vmul.f32 0.5, %v943_v54  ;;  %v900_v61 = vpop.f32.mrb[23].mxu0  ;;  %v941_v62 = vpop.f32.mrb[23].mxu1  ;;  %v6264_v58 = vld [vmem:[#allocation4 + $0x28] ss:$16 sps:$4 sm:$0xff]  }
 0x252   :  { %v951_v9 = vmul.f32 0.5, %v944_v57  ;;  %v956_v11 = vmul.f32 0.5, %v946_v56  ;;  %v6260_v57 = vld [vmem:[#allocation4 + $0x2c] ss:$16 sps:$4 sm:$0xff]   ;;  %v6262_v56 = vld [vmem:[#allocation4 + $0x20] ss:$16 sps:$4 sm:$0xff]  }
 0x253   :  { %5366 = vtanh.f32 %v947_v59  ;;  %v6270_v60 = vld [vmem:[#allocation4 + $0x44] ss:$16 sps:$4 sm:$0xff]   ;;  %v6272_v59 = vld [vmem:[#allocation4 + $0x4c] ss:$16 sps:$4 sm:$0xff]   ;;  %v6274_v61 = vld [vmem:[#allocation4 + $0x40] ss:$16 sps:$4 sm:$0xff]  }
 0x254   :  { %5368 = vtanh.f32 %v951_v9  ;;  %v6276_v62 = vld [vmem:[#allocation4 + $0x48] ss:$16 sps:$4 sm:$0xff]   ;;  %v6282_v9 = vld [vmem:[#allocation4 + $0x64] ss:$16 sps:$4 sm:$0xff]  }
 0x255   :  { %5370 = vtanh.f32 %v945_v6  ;;  %v6250_v6 = vld [vmem:[#allocation4] ss:$16 sps:$4 sm:$0xff]  }
 0x256   :  { %5372 = vtanh.f32 %v956_v11  ;;  %v6284_v11 = vld [vmem:[#allocation4 + $0x6c] ss:$16 sps:$4 sm:$0xff]  }
 0x25d   :  { %v5367_v63 = vpop.eup %5366 }
 0x25e   :  { %v5369_v3 = vpop.eup %5368  ;;  %v949_v50 = vmul.f32 0.5, %v5367_v63  ;;  %v6286_v63 = vld [vmem:[#allocation4 + $0x60] ss:$16 sps:$4 sm:$0xff]  }
 0x25f   :  { %v953_v5 = vmul.f32 0.5, %v5369_v3  ;;  %v5371_v43 = vpop.eup %5370  ;;  %v6288_v3 = vld [vmem:[#allocation4 + $0x68] ss:$16 sps:$4 sm:$0xff]  }
 0x260   :  { %v950_v19 = vadd.f32 0.5, %v949_v50  ;;  %v5373_v53 = vpop.eup %5372  ;;  %v6294_v50 = vld [vmem:[#allocation4 + $0x84] ss:$16 sps:$4 sm:$0xff]  }
 0x261   :  { %v954_v7 = vadd.f32 0.5, %v953_v5  ;;  %v958_v49 = vmul.f32 0.5, %v5373_v53  ;;  %v6296_v5 = vld [vmem:[#allocation4 + $0x8c] ss:$16 sps:$4 sm:$0xff]   ;;  %v6318_v53 = vld [vmem:[#allocation4 + $0xc4] ss:$16 sps:$4 sm:$0xff]  }
 0x262   :  { %v961_v4 = vmul.f32 %v5371_v43, %v950_v19  ;;  %v6298_v19 = vld [vmem:[#allocation4 + $0x80] ss:$16 sps:$4 sm:$0xff]   ;;  %v6300_v43 = vld [vmem:[#allocation4 + $0x88] ss:$16 sps:$4 sm:$0xff]  }
 0x263   :  { %v960_v16 = vmul.f32 %v954_v7, %v6147_v55  ;;  %v959_v1 = vadd.f32 0.5, %v958_v49  ;;  %v6248_v55 = vld [vmem:[#allocation4 + $0xc] ss:$16 sps:$4 sm:$0xff]   ;;  %v6306_v7 = vld [vmem:[#allocation4 + $0xa4] ss:$16 sps:$4 sm:$0xff]  }
 0x264   :  { %v6320_v49 = vld [vmem:[#allocation4 + $0xcc] ss:$16 sps:$4 sm:$0xff]  }
 0x265   :  { %v6193_v27 = vadd.f32 %v961_v4, %v960_v16  ;;  %v6308_v4 = vld [vmem:[#allocation4 + $0xac] ss:$16 sps:$4 sm:$0xff]   ;;  %v6310_v16 = vld [vmem:[#allocation4 + $0xa0] ss:$16 sps:$4 sm:$0xff]  }
 0x267   :  { %5374 = vtanh.f32 %v6193_v27 }
 0x271   :  { %v5375_v17 = vpop.eup %5374 }
 0x272   :  { %v6196_v0 = vmul.f32 %v5375_v17, %v959_v1  ;;  %v6322_v1 = vld [vmem:[#allocation4 + $0xc0] ss:$16 sps:$4 sm:$0xff]   ;;  %v6324_v17 = vld [vmem:[#allocation4 + $0xc8] ss:$16 sps:$4 sm:$0xff]  }
 0x274   :  { %v970_v54 = vpack.c.bf16 %v6196_v0, %v6196_v0 }
 0x276   :  { %1196 = vmatmul.mubr.bf16.vlgmr.msra.gmra.mrb[24].mxu0 %v970_v54  ;;  %1237 = vmatmul.mubr.bf16.vlgmr.msra.gmra.mrb[24].mxu1 %v970_v54  ;;  %v6330_v54 = vld [vmem:[#allocation4 + $0xe4] ss:$16 sps:$4 sm:$0xff]  }
 0x277   :  { %1466 = vmatpush1.bf16.msra.mxu0 %v5880_v8  ;;  %1507 = vmatpush1.bf16.msra.mxu1 %v5884_v10 }
 0x278   :  { %1467 = vmatprep.subr.bf16.mxu0 %v5893_v13  ;;  %1508 = vmatprep.subr.bf16.mxu1 %v5899_v15 }
 0x279   :  { %1497 = vmatprep.mubr.bf16.mxu0 %v7148_v51  ;;  %1538 = vmatprep.mubr.bf16.mxu1 %v7148_v51 }
 0x27b   :  { %1468 = vmatpush1.bf16.msra.mxu0 %v5889_v12  ;;  %1509 = vmatpush1.bf16.msra.mxu1 %v5897_v14 }
 0x27c   :  { %1469 = vmatprep.subr.bf16.mxu0 %v5911_v18  ;;  %1510 = vmatprep.subr.bf16.mxu1 %v5916_v21 }
 0x27f   :  { %1470 = vmatpush1.bf16.msra.mxu0 %v5914_v20  ;;  %1511 = vmatpush1.bf16.msra.mxu1 %v5919_v22  ;;  %v7149_v20 = vld [vmem:[#allocation19_spill] sm:$0xff] }
 0x280   :  { %1471 = vmatprep.subr.bf16.mxu0 %v5923_v23  ;;  %1512 = vmatprep.subr.bf16.mxu1 %v5926_v24 }
 0x283   :  { %1472 = vmatpush1.bf16.msra.mxu0 %v5930_v25  ;;  %1513 = vmatpush1.bf16.msra.mxu1 %v5942_v28 }
 0x284   :  { %1473 = vmatprep.subr.bf16.mxu0 %v5944_v29  ;;  %1514 = vmatprep.subr.bf16.mxu1 %v5948_v30 }
 0x287   :  { %1474 = vmatpush1.bf16.msra.mxu0 %v5951_v32  ;;  %1515 = vmatpush1.bf16.msra.mxu1 %v5953_v33 }
 0x288   :  { %1475 = vmatprep.subr.bf16.mxu0 %v5957_v34  ;;  %1516 = vmatprep.subr.bf16.mxu1 %v5962_v36 }
 0x28b   :  { %1476 = vmatpush1.bf16.msra.mxu0 %v5960_v35  ;;  %1517 = vmatpush1.bf16.msra.mxu1 %v5966_v37 }
 0x28c   :  { %1477 = vmatprep.subr.bf16.mxu0 %v5978_v40  ;;  %1518 = vmatprep.subr.bf16.mxu1 %v5984_v42 }
 0x28f   :  { %1478 = vmatpush1.bf16.msra.mxu0 %v5982_v41  ;;  %1519 = vmatpush1.bf16.msra.mxu1 %v5986_v44 }
 0x290   :  { %1479 = vmatprep.subr.bf16.mxu0 %v5988_v45  ;;  %1520 = vmatprep.subr.bf16.mxu1 %v5991_v46 }
 0x293   :  { %1480 = vmatpush1.bf16.msra.mxu0 %v5996_v47  ;;  %1521 = vmatpush1.bf16.msra.mxu1 %v6000_v48 }
 0x294   :  { %1808 = vmatprep.subr.bf16.mxu1 %v6248_v55 }
 0x349   :  { %v1197_v8 = vpop.f32.mrb[24].mxu0  ;;  %v1238_v10 = vpop.f32.mrb[24].mxu1 }
 0x34a   :  { %v1245_v12 = vadd.f32 %v1197_v8, %v6083_v26  ;;  %v1247_v13 = vadd.f32 %v1238_v10, %v6086_v31  ;;  %v1199_v14 = vpop.f32.mrb[25].mxu0  ;;  %v1240_v15 = vpop.f32.mrb[25].mxu1  ;;  %v6332_v8 = vld [vmem:[#allocation4 + $0xec] ss:$16 sps:$4 sm:$0xff]   ;;  %v6334_v10 = vld [vmem:[#allocation4 + $0xe0] ss:$16 sps:$4 sm:$0xff]  }
 0x34b   :  { %v1246_v18 = vadd.f32 %v1199_v14, %v6088_v39  ;;  %v1248_v21 = vadd.f32 %v1240_v15, %v7149_v20  ;;  %v1201_v22 = vpop.f32.mrb[26].mxu0  ;;  %v1242_v23 = vpop.f32.mrb[26].mxu1  ;;  %v6246_v39 = vld [vmem:[#allocation4 + $0x4] ss:$16 sps:$4 sm:$0xff]   ;;  %v7150_v15 = vld [vmem:[#allocation20_spill] sm:$0xff] }
 0x34c   :  { %v1249_v24 = vmul.f32 0.5, %v1245_v12  ;;  %v1202_v25 = vpop.f32.mrb[27].mxu0  ;;  %v1243_v28 = vpop.f32.mrb[27].mxu1  ;;  %1767 = vmatprep.subr.bf16.mxu0 %v6246_v39  ;;  %v6336_v12 = vld [vmem:[#allocation4 + $0xe8] ss:$16 sps:$4 sm:$0xff]   ;;  %v7151_v20 = vld [vmem:[#allocation21_spill] sm:$0xff] }
 0x34d   :  { %v1253_v29 = vmul.f32 0.5, %v1246_v18  ;;  %v1258_v30 = vmul.f32 0.5, %v1248_v21  ;;  %v7153_v28 = vld [vmem:[#allocation23_spill] sm:$0xff] }
 0x34e   :  { %5376 = vtanh.f32 %v1249_v24  ;;  %v7152_v24 = vld [vmem:[#allocation22_spill] sm:$0xff] }
 0x34f   :  { %5378 = vtanh.f32 %v1253_v29 }
 0x350   :  { %5380 = vtanh.f32 %v1247_v13 }
 0x351   :  { %5382 = vtanh.f32 %v1258_v30 }
 0x358   :  { %v5377_v32 = vpop.eup %5376 }
 0x359   :  { %v5379_v33 = vpop.eup %5378  ;;  %v1251_v34 = vmul.f32 0.5, %v5377_v32 }
 0x35a   :  { %v1255_v35 = vmul.f32 0.5, %v5379_v33  ;;  %v5381_v37 = vpop.eup %5380 }
 0x35b   :  { %v1252_v36 = vadd.f32 0.5, %v1251_v34  ;;  %v5383_v45 = vpop.eup %5382 }
 0x35c   :  { %v1256_v40 = vadd.f32 0.5, %v1255_v35  ;;  %v1260_v46 = vmul.f32 0.5, %v5383_v45 }
 0x35d   :  { %v1263_v41 = vmul.f32 %v5381_v37, %v1252_v36 }
 0x35e   :  { %v1262_v42 = vmul.f32 %v1256_v40, %v6193_v27  ;;  %v1261_v47 = vadd.f32 0.5, %v1260_v46  ;;  %v6312_v27 = vld [vmem:[#allocation4 + $0xa8] ss:$16 sps:$4 sm:$0xff]  }
 0x360   :  { %v6237_v44 = vadd.f32 %v1263_v41, %v1262_v42 }
 0x362   :  { %5384 = vtanh.f32 %v6237_v44 }
 0x36c   :  { %v5385_v48 = vpop.eup %5384 }
 0x36d   :  { %v6240_v26 = vmul.f32 %v5385_v48, %v1261_v47 }
 0x36f   :  { %v1272_v31 = vpack.c.bf16 %v6240_v26, %v6240_v26 }
 0x371   :  { %1498 = vmatmul.mubr.bf16.vlgmr.msra.gmra.mrb[28].mxu0 %v1272_v31  ;;  %1539 = vmatmul.mubr.bf16.vlgmr.msra.gmra.mrb[28].mxu1 %v1272_v31 }
 0x372   :  { %1799 = vmatprep.mubr.bf16.mxu0 %v7148_v51  ;;  %1840 = vmatprep.mubr.bf16.mxu1 %v7148_v51 }
 0x373   :  { %1768 = vmatpush1.bf16.msra.mxu0 %v6250_v6  ;;  %1809 = vmatpush1.bf16.msra.mxu1 %v6252_v52 }
 0x374   :  { %1769 = vmatprep.subr.bf16.mxu0 %v6258_v38  ;;  %1810 = vmatprep.subr.bf16.mxu1 %v6260_v57 }
 0x377   :  { %1770 = vmatpush1.bf16.msra.mxu0 %v6262_v56  ;;  %1811 = vmatpush1.bf16.msra.mxu1 %v6264_v58 }
 0x378   :  { %1771 = vmatprep.subr.bf16.mxu0 %v6270_v60  ;;  %1812 = vmatprep.subr.bf16.mxu1 %v6272_v59 }
 0x37b   :  { %1772 = vmatpush1.bf16.msra.mxu0 %v6274_v61  ;;  %1813 = vmatpush1.bf16.msra.mxu1 %v6276_v62 }
 0x37c   :  { %1773 = vmatprep.subr.bf16.mxu0 %v6282_v9  ;;  %1814 = vmatprep.subr.bf16.mxu1 %v6284_v11 }
 0x37f   :  { %1774 = vmatpush1.bf16.msra.mxu0 %v6286_v63  ;;  %1815 = vmatpush1.bf16.msra.mxu1 %v6288_v3 }
 0x380   :  { %1775 = vmatprep.subr.bf16.mxu0 %v6294_v50  ;;  %1816 = vmatprep.subr.bf16.mxu1 %v6296_v5 }
 0x383   :  { %1776 = vmatpush1.bf16.msra.mxu0 %v6298_v19  ;;  %1817 = vmatpush1.bf16.msra.mxu1 %v6300_v43 }
 0x384   :  { %1777 = vmatprep.subr.bf16.mxu0 %v6306_v7  ;;  %1818 = vmatprep.subr.bf16.mxu1 %v6308_v4 }
 0x387   :  { %1778 = vmatpush1.bf16.msra.mxu0 %v6310_v16  ;;  %1819 = vmatpush1.bf16.msra.mxu1 %v6312_v27 }
 0x388   :  { %1779 = vmatprep.subr.bf16.mxu0 %v6318_v53  ;;  %1820 = vmatprep.subr.bf16.mxu1 %v6320_v49 }
 0x38b   :  { %1780 = vmatpush1.bf16.msra.mxu0 %v6322_v1  ;;  %1821 = vmatpush1.bf16.msra.mxu1 %v6324_v17 }
 0x38c   :  { %1781 = vmatprep.subr.bf16.mxu0 %v6330_v54  ;;  %1822 = vmatprep.subr.bf16.mxu1 %v6332_v8 }
 0x38f   :  { %1782 = vmatpush1.bf16.msra.mxu0 %v6334_v10  ;;  %1823 = vmatpush1.bf16.msra.mxu1 %v6336_v12 }
 0x390   :  { %2069 = vmatprep.subr.bf16.mxu0 %v6246_v39  ;;  %2110 = vmatprep.subr.bf16.mxu1 %v6248_v55 }
 0x444   :  { %v1499_v13 = vpop.f32.mrb[28].mxu0  ;;  %v1540_v14 = vpop.f32.mrb[28].mxu1 }
 0x445   :  { %v1547_v18 = vadd.f32 %v1499_v13, %v7150_v15  ;;  %v1549_v21 = vadd.f32 %v1540_v14, %v7151_v20  ;;  %v1501_v22 = vpop.f32.mrb[29].mxu0  ;;  %v1542_v23 = vpop.f32.mrb[29].mxu1 }
 0x446   :  { %v1548_v25 = vadd.f32 %v1501_v22, %v7152_v24  ;;  %v1550_v29 = vadd.f32 %v1542_v23, %v7153_v28  ;;  %v1503_v30 = vpop.f32.mrb[30].mxu0  ;;  %v1544_v32 = vpop.f32.mrb[30].mxu1 }
 0x447   :  { %v1551_v33 = vmul.f32 0.5, %v1547_v18  ;;  %v1504_v34 = vpop.f32.mrb[31].mxu0  ;;  %v1545_v35 = vpop.f32.mrb[31].mxu1 }
 0x448   :  { %v1555_v36 = vmul.f32 0.5, %v1548_v25  ;;  %v1560_v37 = vmul.f32 0.5, %v1550_v29  ;;  %v7154_v25 = vld [vmem:[#allocation24_spill] sm:$0xff]  ;;  %v7155_v29 = vld [vmem:[#allocation25_spill] sm:$0xff]  ;;  %v7156_v34 = vld [vmem:[#allocation26_spill] sm:$0xff] }
 0x449   :  { %5386 = vtanh.f32 %v1551_v33 }
 0x44a   :  { %5388 = vtanh.f32 %v1555_v36  ;;  %v7157_v36 = vld [vmem:[#allocation27_spill] sm:$0xff] }
 0x44b   :  { %5390 = vtanh.f32 %v1549_v21 }
 0x44c   :  { %5392 = vtanh.f32 %v1560_v37 }
 0x453   :  { %v5387_v40 = vpop.eup %5386 }
 0x454   :  { %v5389_v41 = vpop.eup %5388  ;;  %v1553_v42 = vmul.f32 0.5, %v5387_v40 }
 0x455   :  { %v1557_v45 = vmul.f32 0.5, %v5389_v41  ;;  %v5391_v47 = vpop.eup %5390 }
 0x456   :  { %v1554_v46 = vadd.f32 0.5, %v1553_v42  ;;  %v5393_v15 = vpop.eup %5392 }
 0x457   :  { %v1558_v48 = vadd.f32 0.5, %v1557_v45  ;;  %v1562_v18 = vmul.f32 0.5, %v5393_v15 }
 0x458   :  { %v1565_v31 = vmul.f32 %v5391_v47, %v1554_v46 }
 0x459   :  { %v1564_v13 = vmul.f32 %v1558_v48, %v6237_v44  ;;  %v1563_v20 = vadd.f32 0.5, %v1562_v18 }
 0x45b   :  { %v6349_v14 = vadd.f32 %v1565_v31, %v1564_v13 }
 0x45d   :  { %5394 = vtanh.f32 %v6349_v14 }
 0x467   :  { %v5395_v21 = vpop.eup %5394 }
 0x468   :  { %v6352_v22 = vmul.f32 %v5395_v21, %v1563_v20 }
 0x46a   :  { %v1574_v23 = vpack.c.bf16 %v6352_v22, %v6352_v22 }
 0x46c   :  { %1800 = vmatmul.mubr.bf16.vlgmr.msra.gmra.mrb[32].mxu0 %v1574_v23  ;;  %1841 = vmatmul.mubr.bf16.vlgmr.msra.gmra.mrb[32].mxu1 %v1574_v23 }
 0x46d   :  { %2070 = vmatpush1.bf16.msra.mxu0 %v6250_v6  ;;  %2111 = vmatpush1.bf16.msra.mxu1 %v6252_v52 }
 0x46e   :  { %2071 = vmatprep.subr.bf16.mxu0 %v6258_v38  ;;  %2112 = vmatprep.subr.bf16.mxu1 %v6260_v57 }
 0x46f   :  { %2101 = vmatprep.mubr.bf16.mxu0 %v7148_v51  ;;  %2142 = vmatprep.mubr.bf16.mxu1 %v7148_v51 }
 0x471   :  { %2072 = vmatpush1.bf16.msra.mxu0 %v6262_v56  ;;  %2113 = vmatpush1.bf16.msra.mxu1 %v6264_v58 }
 0x472   :  { %2073 = vmatprep.subr.bf16.mxu0 %v6270_v60  ;;  %2114 = vmatprep.subr.bf16.mxu1 %v6272_v59 }
 0x475   :  { %2074 = vmatpush1.bf16.msra.mxu0 %v6274_v61  ;;  %2115 = vmatpush1.bf16.msra.mxu1 %v6276_v62 }
 0x476   :  { %2075 = vmatprep.subr.bf16.mxu0 %v6282_v9  ;;  %2116 = vmatprep.subr.bf16.mxu1 %v6284_v11 }
 0x479   :  { %2076 = vmatpush1.bf16.msra.mxu0 %v6286_v63  ;;  %2117 = vmatpush1.bf16.msra.mxu1 %v6288_v3 }
 0x47a   :  { %2077 = vmatprep.subr.bf16.mxu0 %v6294_v50  ;;  %2118 = vmatprep.subr.bf16.mxu1 %v6296_v5 }
 0x47d   :  { %2078 = vmatpush1.bf16.msra.mxu0 %v6298_v19  ;;  %2119 = vmatpush1.bf16.msra.mxu1 %v6300_v43 }
 0x47e   :  { %2079 = vmatprep.subr.bf16.mxu0 %v6306_v7  ;;  %2120 = vmatprep.subr.bf16.mxu1 %v6308_v4 }
 0x481   :  { %2080 = vmatpush1.bf16.msra.mxu0 %v6310_v16  ;;  %2121 = vmatpush1.bf16.msra.mxu1 %v6312_v27 }
 0x482   :  { %2081 = vmatprep.subr.bf16.mxu0 %v6318_v53  ;;  %2122 = vmatprep.subr.bf16.mxu1 %v6320_v49 }
 0x485   :  { %2082 = vmatpush1.bf16.msra.mxu0 %v6322_v1  ;;  %2123 = vmatpush1.bf16.msra.mxu1 %v6324_v17 }
 0x486   :  { %2083 = vmatprep.subr.bf16.mxu0 %v6330_v54  ;;  %2124 = vmatprep.subr.bf16.mxu1 %v6332_v8 }
 0x489   :  { %2084 = vmatpush1.bf16.msra.mxu0 %v6334_v10  ;;  %2125 = vmatpush1.bf16.msra.mxu1 %v6336_v12 }
 0x48a   :  { %2371 = vmatprep.subr.bf16.mxu0 %v6246_v39  ;;  %2412 = vmatprep.subr.bf16.mxu1 %v6248_v55 }
 0x53f   :  { %v1801_v44 = vpop.f32.mrb[32].mxu0  ;;  %v1842_v24 = vpop.f32.mrb[32].mxu1 }
 0x540   :  { %v1849_v28 = vadd.f32 %v1801_v44, %v7154_v25  ;;  %v1851_v30 = vadd.f32 %v1842_v24, %v7155_v29  ;;  %v1803_v32 = vpop.f32.mrb[33].mxu0  ;;  %v1844_v33 = vpop.f32.mrb[33].mxu1 }
 0x541   :  { %v1850_v35 = vadd.f32 %v1803_v32, %v7156_v34  ;;  %v1852_v37 = vadd.f32 %v1844_v33, %v7157_v36  ;;  %v1805_v40 = vpop.f32.mrb[34].mxu0  ;;  %v1846_v41 = vpop.f32.mrb[34].mxu1  ;;  %v7158_v36 = vld [vmem:[#allocation28_spill] sm:$0xff] }
 0x542   :  { %v1853_v42 = vmul.f32 0.5, %v1849_v28  ;;  %v1806_v45 = vpop.f32.mrb[35].mxu0  ;;  %v1847_v46 = vpop.f32.mrb[35].mxu1  ;;  %v7159_v40 = vld [vmem:[#allocation29_spill] sm:$0xff] }
 0x543   :  { %v1857_v47 = vmul.f32 0.5, %v1850_v35  ;;  %v1862_v48 = vmul.f32 0.5, %v1852_v37  ;;  %v7160_v46 = vld [vmem:[#allocation30_spill] sm:$0xff] }
 0x544   :  { %5396 = vtanh.f32 %v1853_v42 }
 0x545   :  { %5398 = vtanh.f32 %v1857_v47 }
 0x546   :  { %5400 = vtanh.f32 %v1851_v30 }
 0x547   :  { %5402 = vtanh.f32 %v1862_v48  ;;  %v7161_v48 = vld [vmem:[#allocation31_spill] sm:$0xff] }
 0x54e   :  { %v5397_v31 = vpop.eup %5396 }
 0x54f   :  { %v5399_v13 = vpop.eup %5398  ;;  %v1855_v15 = vmul.f32 0.5, %v5397_v31 }
 0x550   :  { %v1859_v18 = vmul.f32 0.5, %v5399_v13  ;;  %v5401_v21 = vpop.eup %5400 }
 0x551   :  { %v1856_v20 = vadd.f32 0.5, %v1855_v15  ;;  %v5403_v28 = vpop.eup %5402 }
 0x552   :  { %v1860_v23 = vadd.f32 0.5, %v1859_v18  ;;  %v1864_v29 = vmul.f32 0.5, %v5403_v28 }
 0x553   :  { %v1867_v44 = vmul.f32 %v5401_v21, %v1856_v20 }
 0x554   :  { %v1866_v24 = vmul.f32 %v1860_v23, %v6349_v14  ;;  %v1865_v32 = vadd.f32 0.5, %v1864_v29 }
 0x556   :  { %v6395_v25 = vadd.f32 %v1867_v44, %v1866_v24 }
 0x558   :  { %5404 = vtanh.f32 %v6395_v25 }
 0x562   :  { %v5405_v30 = vpop.eup %5404 }
 0x563   :  { %v6398_v33 = vmul.f32 %v5405_v30, %v1865_v32 }
 0x565   :  { %v1876_v34 = vpack.c.bf16 %v6398_v33, %v6398_v33 }
 0x567   :  { %2102 = vmatmul.mubr.bf16.vlgmr.msra.gmra.mrb[36].mxu0 %v1876_v34  ;;  %2143 = vmatmul.mubr.bf16.vlgmr.msra.gmra.mrb[36].mxu1 %v1876_v34 }
 0x568   :  { %2372 = vmatpush1.bf16.msra.mxu0 %v6250_v6  ;;  %2413 = vmatpush1.bf16.msra.mxu1 %v6252_v52 }
 0x569   :  { %2373 = vmatprep.subr.bf16.mxu0 %v6258_v38  ;;  %2414 = vmatprep.subr.bf16.mxu1 %v6260_v57 }
 0x56a   :  { %2403 = vmatprep.mubr.bf16.mxu0 %v7148_v51  ;;  %2444 = vmatprep.mubr.bf16.mxu1 %v7148_v51 }
 0x56c   :  { %2374 = vmatpush1.bf16.msra.mxu0 %v6262_v56  ;;  %2415 = vmatpush1.bf16.msra.mxu1 %v6264_v58 }
 0x56d   :  { %2375 = vmatprep.subr.bf16.mxu0 %v6270_v60  ;;  %2416 = vmatprep.subr.bf16.mxu1 %v6272_v59 }
 0x570   :  { %2376 = vmatpush1.bf16.msra.mxu0 %v6274_v61  ;;  %2417 = vmatpush1.bf16.msra.mxu1 %v6276_v62 }
 0x571   :  { %2377 = vmatprep.subr.bf16.mxu0 %v6282_v9  ;;  %2418 = vmatprep.subr.bf16.mxu1 %v6284_v11 }
 0x574   :  { %2378 = vmatpush1.bf16.msra.mxu0 %v6286_v63  ;;  %2419 = vmatpush1.bf16.msra.mxu1 %v6288_v3 }
 0x575   :  { %2379 = vmatprep.subr.bf16.mxu0 %v6294_v50  ;;  %2420 = vmatprep.subr.bf16.mxu1 %v6296_v5 }
 0x578   :  { %2380 = vmatpush1.bf16.msra.mxu0 %v6298_v19  ;;  %2421 = vmatpush1.bf16.msra.mxu1 %v6300_v43 }
 0x579   :  { %2381 = vmatprep.subr.bf16.mxu0 %v6306_v7  ;;  %2422 = vmatprep.subr.bf16.mxu1 %v6308_v4 }
 0x57c   :  { %2382 = vmatpush1.bf16.msra.mxu0 %v6310_v16  ;;  %2423 = vmatpush1.bf16.msra.mxu1 %v6312_v27 }
 0x57d   :  { %2383 = vmatprep.subr.bf16.mxu0 %v6318_v53  ;;  %2424 = vmatprep.subr.bf16.mxu1 %v6320_v49 }
 0x580   :  { %2384 = vmatpush1.bf16.msra.mxu0 %v6322_v1  ;;  %2425 = vmatpush1.bf16.msra.mxu1 %v6324_v17 }
 0x581   :  { %2385 = vmatprep.subr.bf16.mxu0 %v6330_v54  ;;  %2426 = vmatprep.subr.bf16.mxu1 %v6332_v8 }
 0x584   :  { %2386 = vmatpush1.bf16.msra.mxu0 %v6334_v10  ;;  %2427 = vmatpush1.bf16.msra.mxu1 %v6336_v12 }
 0x585   :  { %2673 = vmatprep.subr.bf16.mxu0 %v6246_v39  ;;  %2714 = vmatprep.subr.bf16.mxu1 %v6248_v55 }
 0x63a   :  { %v2103_v14 = vpop.f32.mrb[36].mxu0  ;;  %v2144_v35 = vpop.f32.mrb[36].mxu1 }
 0x63b   :  { %v2151_v37 = vadd.f32 %v2103_v14, %v7158_v36  ;;  %v2153_v41 = vadd.f32 %v2144_v35, %v7159_v40  ;;  %v2105_v42 = vpop.f32.mrb[37].mxu0  ;;  %v2146_v45 = vpop.f32.mrb[37].mxu1 }
 0x63c   :  { %v2152_v47 = vadd.f32 %v2105_v42, %v7160_v46  ;;  %v2154_v31 = vadd.f32 %v2146_v45, %v7161_v48  ;;  %v2107_v13 = vpop.f32.mrb[38].mxu0  ;;  %v2148_v15 = vpop.f32.mrb[38].mxu1 }
 0x63d   :  { %v2155_v18 = vmul.f32 0.5, %v2151_v37  ;;  %v2108_v20 = vpop.f32.mrb[39].mxu0  ;;  %v2149_v21 = vpop.f32.mrb[39].mxu1  ;;  %v5228_v15 = vld [vmem:[#allocation7] ss:$16 sps:$4 sm:$0xff]  }
 0x63e   :  { %v2159_v39 = vmul.f32 0.5, %v2152_v47  ;;  %v2164_v55 = vmul.f32 0.5, %v2154_v31  ;;  %v5236_v21 = vld [vmem:[#allocation7 + $0x24] ss:$16 sps:$4 sm:$0xff]  }
 0x63f   :  { %5406 = vtanh.f32 %v2155_v18  ;;  %v5231_v18 = vld [vmem:[#allocation7 + $0x8] ss:$16 sps:$4 sm:$0xff]  }
 0x640   :  { %5408 = vtanh.f32 %v2159_v39  ;;  %v5239_v39 = vld [vmem:[#allocation7 + $0x2c] ss:$16 sps:$4 sm:$0xff]  }
 0x641   :  { %5410 = vtanh.f32 %v2153_v41 }
 0x642   :  { %5412 = vtanh.f32 %v2164_v55  ;;  %v5234_v55 = vld [vmem:[#allocation7 + $0x20] ss:$16 sps:$4 sm:$0xff]  }
 0x649   :  { %v5407_v23 = vpop.eup %5406 }
 0x64a   :  { %v5409_v44 = vpop.eup %5408  ;;  %v2157_v24 = vmul.f32 0.5, %v5407_v23  ;;  %v5237_v23 = vld [vmem:[#allocation7 + $0x28] ss:$16 sps:$4 sm:$0xff]  }
 0x64b   :  { %v2161_v28 = vmul.f32 0.5, %v5409_v44  ;;  %v5411_v32 = vpop.eup %5410  ;;  %v5242_v44 = vld [vmem:[#allocation7 + $0x44] ss:$16 sps:$4 sm:$0xff]  }
 0x64c   :  { %v2158_v29 = vadd.f32 0.5, %v2157_v24  ;;  %v5413_v36 = vpop.eup %5412  ;;  %v5245_v24 = vld [vmem:[#allocation7 + $0x4c] ss:$16 sps:$4 sm:$0xff]  }
 0x64d   :  { %v2162_v30 = vadd.f32 0.5, %v2161_v28  ;;  %v2166_v37 = vmul.f32 0.5, %v5413_v36  ;;  %v5240_v28 = vld [vmem:[#allocation7 + $0x40] ss:$16 sps:$4 sm:$0xff]   ;;  %v5257_v36 = vld [vmem:[#allocation7 + $0x8c] ss:$16 sps:$4 sm:$0xff]  }
 0x64e   :  { %v2169_v34 = vmul.f32 %v5411_v32, %v2158_v29  ;;  %v5243_v29 = vld [vmem:[#allocation7 + $0x48] ss:$16 sps:$4 sm:$0xff]   ;;  %v5248_v32 = vld [vmem:[#allocation7 + $0x64] ss:$16 sps:$4 sm:$0xff]  }
 0x64f   :  { %v2168_v14 = vmul.f32 %v2162_v30, %v6395_v25  ;;  %v2167_v40 = vadd.f32 0.5, %v2166_v37  ;;  %v5251_v30 = vld [vmem:[#allocation7 + $0x6c] ss:$16 sps:$4 sm:$0xff]   ;;  %v5252_v37 = vld [vmem:[#allocation7 + $0x80] ss:$16 sps:$4 sm:$0xff]  }
 0x651   :  { %v6441_v35 = vadd.f32 %v2169_v34, %v2168_v14  ;;  %v5246_v34 = vld [vmem:[#allocation7 + $0x60] ss:$16 sps:$4 sm:$0xff]   ;;  %v5249_v14 = vld [vmem:[#allocation7 + $0x68] ss:$16 sps:$4 sm:$0xff]  }
 0x653   :  { %5414 = vtanh.f32 %v6441_v35 }
 0x65d   :  { %v5415_v41 = vpop.eup %5414 }
 0x65e   :  { %v6444_v42 = vmul.f32 %v5415_v41, %v2167_v40  ;;  %v5255_v40 = vld [vmem:[#allocation7 + $0x88] ss:$16 sps:$4 sm:$0xff]   ;;  %v5260_v41 = vld [vmem:[#allocation7 + $0xa4] ss:$16 sps:$4 sm:$0xff]  }
 0x660   :  { %v2178_v45 = vpack.c.bf16 %v6444_v42, %v6444_v42 }
 0x662   :  { %2404 = vmatmul.mubr.bf16.vlgmr.msra.gmra.mrb[40].mxu0 %v2178_v45  ;;  %2445 = vmatmul.mubr.bf16.vlgmr.msra.gmra.mrb[40].mxu1 %v2178_v45  ;;  %v5263_v45 = vld [vmem:[#allocation7 + $0xac] ss:$16 sps:$4 sm:$0xff]  }
 0x663   :  { %2674 = vmatpush1.bf16.msra.mxu0 %v6250_v6  ;;  %2715 = vmatpush1.bf16.msra.mxu1 %v6252_v52  ;;  %v5230_v6 = vld [vmem:[#allocation7 + $0x4] ss:$16 sps:$4 sm:$0xff]   ;;  %v5233_v52 = vld [vmem:[#allocation7 + $0xc] ss:$16 sps:$4 sm:$0xff]  }
 0x664   :  { %2675 = vmatprep.subr.bf16.mxu0 %v6258_v38  ;;  %2716 = vmatprep.subr.bf16.mxu1 %v6260_v57 }
 0x665   :  { %2705 = vmatprep.mubr.bf16.mxu0 %v7148_v51  ;;  %2746 = vmatprep.mubr.bf16.mxu1 %v7148_v51 }
 0x667   :  { %2676 = vmatpush1.bf16.msra.mxu0 %v6262_v56  ;;  %2717 = vmatpush1.bf16.msra.mxu1 %v6264_v58  ;;  %v7162_v56 = vld [vmem:[#allocation32_spill] sm:$0xff] }
 0x668   :  { %2677 = vmatprep.subr.bf16.mxu0 %v6270_v60  ;;  %2718 = vmatprep.subr.bf16.mxu1 %v6272_v59  ;;  %v7163_v60 = vld [vmem:[#allocation33_spill] sm:$0xff] }
 0x66b   :  { %2678 = vmatpush1.bf16.msra.mxu0 %v6274_v61  ;;  %2719 = vmatpush1.bf16.msra.mxu1 %v6276_v62 }
 0x66c   :  { %2679 = vmatprep.subr.bf16.mxu0 %v6282_v9  ;;  %2720 = vmatprep.subr.bf16.mxu1 %v6284_v11  ;;  %v7164_v9 = vld [vmem:[#allocation34_spill] sm:$0xff] }
 0x66f   :  { %2680 = vmatpush1.bf16.msra.mxu0 %v6286_v63  ;;  %2721 = vmatpush1.bf16.msra.mxu1 %v6288_v3  ;;  %v7165_v63 = vld [vmem:[#allocation35_spill] sm:$0xff] }
 0x670   :  { %2681 = vmatprep.subr.bf16.mxu0 %v6294_v50  ;;  %2722 = vmatprep.subr.bf16.mxu1 %v6296_v5 }
 0x673   :  { %2682 = vmatpush1.bf16.msra.mxu0 %v6298_v19  ;;  %2723 = vmatpush1.bf16.msra.mxu1 %v6300_v43 }
 0x674   :  { %2683 = vmatprep.subr.bf16.mxu0 %v6306_v7  ;;  %2724 = vmatprep.subr.bf16.mxu1 %v6308_v4 }
 0x677   :  { %2684 = vmatpush1.bf16.msra.mxu0 %v6310_v16  ;;  %2725 = vmatpush1.bf16.msra.mxu1 %v6312_v27 }
 0x678   :  { %2685 = vmatprep.subr.bf16.mxu0 %v6318_v53  ;;  %2726 = vmatprep.subr.bf16.mxu1 %v6320_v49 }
 0x67b   :  { %2686 = vmatpush1.bf16.msra.mxu0 %v6322_v1  ;;  %2727 = vmatpush1.bf16.msra.mxu1 %v6324_v17 }
 0x67c   :  { %2687 = vmatprep.subr.bf16.mxu0 %v6330_v54  ;;  %2728 = vmatprep.subr.bf16.mxu1 %v6332_v8 }
 0x67f   :  { %2688 = vmatpush1.bf16.msra.mxu0 %v6334_v10  ;;  %2729 = vmatpush1.bf16.msra.mxu1 %v6336_v12 }
 0x680   :  { %3004 = vmatprep.subr.bf16.mxu0 %v5230_v6  ;;  %3077 = vmatprep.subr.bf16.mxu1 %v5233_v52  ;;  %v5258_v6 = vld [vmem:[#allocation7 + $0xa0] ss:$16 sps:$4 sm:$0xff]   ;;  %v5261_v52 = vld [vmem:[#allocation7 + $0xa8] ss:$16 sps:$4 sm:$0xff]  }
 0x735   :  { %v2405_v38 = vpop.f32.mrb[40].mxu0  ;;  %v2446_v57 = vpop.f32.mrb[40].mxu1 }
 0x736   :  { %v2453_v58 = vadd.f32 %v2405_v38, %v7162_v56  ;;  %v2455_v59 = vadd.f32 %v2446_v57, %v7163_v60  ;;  %v2407_v61 = vpop.f32.mrb[41].mxu0  ;;  %v2448_v62 = vpop.f32.mrb[41].mxu1  ;;  %v5266_v38 = vld [vmem:[#allocation7 + $0xc4] ss:$16 sps:$4 sm:$0xff]   ;;  %v5269_v57 = vld [vmem:[#allocation7 + $0xcc] ss:$16 sps:$4 sm:$0xff]  }
 0x737   :  { %v2454_v11 = vadd.f32 %v2407_v61, %v7164_v9  ;;  %v2456_v3 = vadd.f32 %v2448_v62, %v7165_v63  ;;  %v2409_v50 = vpop.f32.mrb[42].mxu0  ;;  %v2450_v5 = vpop.f32.mrb[42].mxu1  ;;  %v5264_v56 = vld [vmem:[#allocation7 + $0xc0] ss:$16 sps:$4 sm:$0xff]   ;;  %v5272_v60 = vld [vmem:[#allocation7 + $0xe4] ss:$16 sps:$4 sm:$0xff]   ;;  %v2786_v9 = vpack.c.bf16 %v6196_v0, %v6150_v2  ;;  %v2788_v63 = vpack.c.bf16 %v6444_v42, %v6398_v33 }
 0x738   :  { %v2457_v19 = vmul.f32 0.5, %v2453_v58  ;;  %v2410_v43 = vpop.f32.mrb[43].mxu0  ;;  %v2451_v7 = vpop.f32.mrb[43].mxu1  ;;  %v5267_v58 = vld [vmem:[#allocation7 + $0xc8] ss:$16 sps:$4 sm:$0xff]  }
 0x739   :  { %v2461_v4 = vmul.f32 0.5, %v2454_v11  ;;  %v2466_v16 = vmul.f32 0.5, %v2456_v3  ;;  %v5270_v61 = vld [vmem:[#allocation7 + $0xe0] ss:$16 sps:$4 sm:$0xff]   ;;  %v5273_v62 = vld [vmem:[#allocation7 + $0xe8] ss:$16 sps:$4 sm:$0xff]   ;;  %v2787_v11 = vpack.c.bf16 %v6352_v22, %v6240_v26 }
 0x73a   :  { %5416 = vtanh.f32 %v2457_v19  ;;  %v6506_v2 = vld [vmem:[#allocation9 + $0x4] ss:$16 sps:$4 sm:$0xff]   ;;  %v6508_v0 = vld [vmem:[#allocation9 + $0xc] ss:$16 sps:$4 sm:$0xff]   ;;  %v6510_v26 = vld [vmem:[#allocation9] ss:$16 sps:$4 sm:$0xff]  }
 0x73b   :  { %5418 = vtanh.f32 %v2461_v4  ;;  %v6512_v22 = vld [vmem:[#allocation9 + $0x8] ss:$16 sps:$4 sm:$0xff]   ;;  %v6518_v33 = vld [vmem:[#allocation9 + $0x24] ss:$16 sps:$4 sm:$0xff]   ;;  %v6520_v42 = vld [vmem:[#allocation9 + $0x2c] ss:$16 sps:$4 sm:$0xff]  }
 0x73c   :  { %5420 = vtanh.f32 %v2455_v59  ;;  %v5275_v59 = vld [vmem:[#allocation7 + $0xec] ss:$16 sps:$4 sm:$0xff]   ;;  %v6522_v3 = vld [vmem:[#allocation9 + $0x20] ss:$16 sps:$4 sm:$0xff]   ;;  %v6524_v50 = vld [vmem:[#allocation9 + $0x28] ss:$16 sps:$4 sm:$0xff]  }
 0x73d   :  { %5422 = vtanh.f32 %v2466_v16  ;;  %v6530_v5 = vld [vmem:[#allocation9 + $0x44] ss:$16 sps:$4 sm:$0xff]   ;;  %v6532_v19 = vld [vmem:[#allocation9 + $0x4c] ss:$16 sps:$4 sm:$0xff]   ;;  %v6534_v43 = vld [vmem:[#allocation9 + $0x40] ss:$16 sps:$4 sm:$0xff]  }
 0x73e   :  { %v6536_v7 = vld [vmem:[#allocation9 + $0x48] ss:$16 sps:$4 sm:$0xff]   ;;  %v6540_v4 = vld [vmem:[#allocation9 + $0x64] ss:$16 sps:$4 sm:$0xff]   ;;  %v6542_v16 = vld [vmem:[#allocation9 + $0x6c] ss:$16 sps:$4 sm:$0xff]  }
 0x744   :  { %v5417_v27 = vpop.eup %5416 }
 0x745   :  { %v5419_v53 = vpop.eup %5418  ;;  %v2459_v49 = vmul.f32 0.5, %v5417_v27  ;;  %v6546_v27 = vld [vmem:[#allocation9 + $0x60] ss:$16 sps:$4 sm:$0xff]  }
 0x746   :  { %v2463_v1 = vmul.f32 0.5, %v5419_v53  ;;  %v5421_v54 = vpop.eup %5420  ;;  %v6548_v53 = vld [vmem:[#allocation9 + $0x68] ss:$16 sps:$4 sm:$0xff]  }
 0x747   :  { %v2460_v17 = vadd.f32 0.5, %v2459_v49  ;;  %v5423_v46 = vpop.eup %5422  ;;  %v6554_v49 = vld [vmem:[#allocation9 + $0x84] ss:$16 sps:$4 sm:$0xff]  }
 0x748   :  { %v2464_v8 = vadd.f32 0.5, %v2463_v1  ;;  %v2468_v47 = vmul.f32 0.5, %v5423_v46  ;;  %v6556_v1 = vld [vmem:[#allocation9 + $0x8c] ss:$16 sps:$4 sm:$0xff]   ;;  %v6572_v46 = vld [vmem:[#allocation9 + $0xa8] ss:$16 sps:$4 sm:$0xff]  }
 0x749   :  { %v2471_v10 = vmul.f32 %v5421_v54, %v2460_v17  ;;  %v6558_v17 = vld [vmem:[#allocation9 + $0x80] ss:$16 sps:$4 sm:$0xff]   ;;  %v6560_v54 = vld [vmem:[#allocation9 + $0x88] ss:$16 sps:$4 sm:$0xff]  }
 0x74a   :  { %v2470_v12 = vmul.f32 %v2464_v8, %v6441_v35  ;;  %v2469_v48 = vadd.f32 0.5, %v2468_v47  ;;  %v5254_v35 = vld [vmem:[#allocation7 + $0x84] ss:$16 sps:$4 sm:$0xff]  }
 0x74b   :  { %v6566_v8 = vld [vmem:[#allocation9 + $0xa4] ss:$16 sps:$4 sm:$0xff]  }
 0x74c   :  { %v6485_v25 = vadd.f32 %v2471_v10, %v2470_v12  ;;  %v6568_v10 = vld [vmem:[#allocation9 + $0xac] ss:$16 sps:$4 sm:$0xff]   ;;  %v6570_v12 = vld [vmem:[#allocation9 + $0xa0] ss:$16 sps:$4 sm:$0xff]   ;;  %v6578_v47 = vld [vmem:[#allocation9 + $0xc4] ss:$16 sps:$4 sm:$0xff]  }
 0x74e   :  { %5424 = vtanh.f32 %v6485_v25 }
 0x758   :  { %v5425_v31 = vpop.eup %5424 }
 0x759   :  { %v6488_v13 = vmul.f32 %v5425_v31, %v2469_v48  ;;  %v6580_v48 = vld [vmem:[#allocation9 + $0xcc] ss:$16 sps:$4 sm:$0xff]   ;;  %v6582_v31 = vld [vmem:[#allocation9 + $0xc0] ss:$16 sps:$4 sm:$0xff]  }
 0x75b   :  { %v2480_v20 = vpack.c.bf16 %v6488_v13, %v6488_v13 }
 0x75d   :  { %2706 = vmatmul.mubr.bf16.vlgmr.msra.gmra.mrb[44].mxu0 %v2480_v20  ;;  %2747 = vmatmul.mubr.bf16.vlgmr.msra.gmra.mrb[44].mxu1 %v2480_v20  ;;  %v6592_v20 = vld [vmem:[#allocation9 + $0xec] ss:$16 sps:$4 sm:$0xff]  }
 0x75e   :  { %3005 = vmatpush1.bf16.msra.mxu0 %v5228_v15  ;;  %3078 = vmatpush1.bf16.msra.mxu1 %v5231_v18  ;;  %v6584_v15 = vld [vmem:[#allocation9 + $0xc8] ss:$16 sps:$4 sm:$0xff]   ;;  %v6590_v18 = vld [vmem:[#allocation9 + $0xe4] ss:$16 sps:$4 sm:$0xff]  }
 0x75f   :  { %3006 = vmatprep.subr.bf16.mxu0 %v5236_v21  ;;  %3079 = vmatprep.subr.bf16.mxu1 %v5239_v39  ;;  %v6594_v21 = vld [vmem:[#allocation9 + $0xe0] ss:$16 sps:$4 sm:$0xff]   ;;  %v6596_v39 = vld [vmem:[#allocation9 + $0xe8] ss:$16 sps:$4 sm:$0xff]  }
 0x760   :  { %3036 = vmatprep.mubr.bf16.mxu0 %v7148_v51  ;;  %3109 = vmatprep.mubr.bf16.mxu1 %v7148_v51 }
 0x762   :  { %3007 = vmatpush1.bf16.msra.mxu0 %v5234_v55  ;;  %3080 = vmatpush1.bf16.msra.mxu1 %v5237_v23 }
 0x763   :  { %3008 = vmatprep.subr.bf16.mxu0 %v5242_v44  ;;  %3081 = vmatprep.subr.bf16.mxu1 %v5245_v24  ;;  %v7166_v44 = vld [vmem:[#allocation36_spill] sm:$0xff] }
 0x766   :  { %3009 = vmatpush1.bf16.msra.mxu0 %v5240_v28  ;;  %3082 = vmatpush1.bf16.msra.mxu1 %v5243_v29  ;;  %v7167_v28 = vld [vmem:[#allocation37_spill] sm:$0xff] }
 0x767   :  { %3010 = vmatprep.subr.bf16.mxu0 %v5248_v32  ;;  %3083 = vmatprep.subr.bf16.mxu1 %v5251_v30 }
 0x76a   :  { %3011 = vmatpush1.bf16.msra.mxu0 %v5246_v34  ;;  %3084 = vmatpush1.bf16.msra.mxu1 %v5249_v14  ;;  %v7168_v34 = vld [vmem:[#allocation38_spill] sm:$0xff] }
 0x76b   :  { %3012 = vmatprep.subr.bf16.mxu0 %v5254_v35  ;;  %3085 = vmatprep.subr.bf16.mxu1 %v5257_v36  ;;  %v7169_v35 = vld [vmem:[#allocation39_spill] sm:$0xff] }
 0x76e   :  { %3013 = vmatpush1.bf16.msra.mxu0 %v5252_v37  ;;  %3086 = vmatpush1.bf16.msra.mxu1 %v5255_v40 }
 0x76f   :  { %3014 = vmatprep.subr.bf16.mxu0 %v5260_v41  ;;  %3087 = vmatprep.subr.bf16.mxu1 %v5263_v45 }
 0x772   :  { %3015 = vmatpush1.bf16.msra.mxu0 %v5258_v6  ;;  %3088 = vmatpush1.bf16.msra.mxu1 %v5261_v52 }
 0x773   :  { %3016 = vmatprep.subr.bf16.mxu0 %v5266_v38  ;;  %3089 = vmatprep.subr.bf16.mxu1 %v5269_v57 }
 0x776   :  { %3017 = vmatpush1.bf16.msra.mxu0 %v5264_v56  ;;  %3090 = vmatpush1.bf16.msra.mxu1 %v5267_v58 }
 0x777   :  { %3018 = vmatprep.subr.bf16.mxu0 %v5272_v60  ;;  %3091 = vmatprep.subr.bf16.mxu1 %v5275_v59 }
 0x77a   :  { %3019 = vmatpush1.bf16.msra.mxu0 %v5270_v61  ;;  %3092 = vmatpush1.bf16.msra.mxu1 %v5273_v62 }
 0x77b   :  { %3378 = vmatprep.subr.bf16.mxu0 %v6506_v2  ;;  %3419 = vmatprep.subr.bf16.mxu1 %v6508_v0 }
 0x77d   :  { %3037 = vmatmul.mubr.bf16.vlgmr.msra.gmra.mrb[48].mxu0 %v2786_v9  ;;  %3110 = vmatmul.mubr.bf16.vlgmr.msra.gmra.mrb[48].mxu1 %v2786_v9 }
 0x77e   :  { %3046 = vmatprep.mubr.bf16.mxu0 %v7148_v51  ;;  %3119 = vmatprep.mubr.bf16.mxu1 %v7148_v51 }
 0x77f   :  { %3379 = vmatpush1.bf16.msra.mxu0 %v6510_v26  ;;  %3420 = vmatpush1.bf16.msra.mxu1 %v6512_v22 }
 0x780   :  { %3380 = vmatprep.subr.bf16.mxu0 %v6518_v33  ;;  %3421 = vmatprep.subr.bf16.mxu1 %v6520_v42 }
 0x783   :  { %3381 = vmatpush1.bf16.msra.mxu0 %v6522_v3  ;;  %3422 = vmatpush1.bf16.msra.mxu1 %v6524_v50 }
 0x784   :  { %3382 = vmatprep.subr.bf16.mxu0 %v6530_v5  ;;  %3423 = vmatprep.subr.bf16.mxu1 %v6532_v19 }
 0x785   :  { %3047 = vmatmul.mubr.bf16.gmra.mrb[52].mxu0 %v2787_v11  ;;  %3120 = vmatmul.mubr.bf16.gmra.mrb[52].mxu1 %v2787_v11 }
 0x786   :  { %3056 = vmatprep.mubr.bf16.mxu0 %v7148_v51  ;;  %3129 = vmatprep.mubr.bf16.mxu1 %v7148_v51 }
 0x787   :  { %3383 = vmatpush1.bf16.msra.mxu0 %v6534_v43  ;;  %3424 = vmatpush1.bf16.msra.mxu1 %v6536_v7 }
 0x788   :  { %3384 = vmatprep.subr.bf16.mxu0 %v6540_v4  ;;  %3425 = vmatprep.subr.bf16.mxu1 %v6542_v16 }
 0x78b   :  { %3385 = vmatpush1.bf16.msra.mxu0 %v6546_v27  ;;  %3426 = vmatpush1.bf16.msra.mxu1 %v6548_v53 }
 0x78c   :  { %3386 = vmatprep.subr.bf16.mxu0 %v6554_v49  ;;  %3427 = vmatprep.subr.bf16.mxu1 %v6556_v1 }
 0x78d   :  { %3057 = vmatmul.mubr.bf16.gmra.mrb[56].mxu0 %v2788_v63  ;;  %3130 = vmatmul.mubr.bf16.gmra.mrb[56].mxu1 %v2788_v63 }
 0x78e   :  { %3066 = vmatprep.mubr.bf16.mxu0 %v7148_v51  ;;  %3139 = vmatprep.mubr.bf16.mxu1 %v7148_v51 }
 0x78f   :  { %3387 = vmatpush1.bf16.msra.mxu0 %v6558_v17  ;;  %3428 = vmatpush1.bf16.msra.mxu1 %v6560_v54 }
 0x790   :  { %3388 = vmatprep.subr.bf16.mxu0 %v6566_v8  ;;  %3429 = vmatprep.subr.bf16.mxu1 %v6568_v10 }
 0x793   :  { %3389 = vmatpush1.bf16.msra.mxu0 %v6570_v12  ;;  %3430 = vmatpush1.bf16.msra.mxu1 %v6572_v46 }
 0x794   :  { %3390 = vmatprep.subr.bf16.mxu0 %v6578_v47  ;;  %3431 = vmatprep.subr.bf16.mxu1 %v6580_v48 }
 0x797   :  { %3391 = vmatpush1.bf16.msra.mxu0 %v6582_v31  ;;  %3432 = vmatpush1.bf16.msra.mxu1 %v6584_v15 }
 0x798   :  { %3392 = vmatprep.subr.bf16.mxu0 %v6590_v18  ;;  %3433 = vmatprep.subr.bf16.mxu1 %v6592_v20 }
 0x79b   :  { %3393 = vmatpush1.bf16.msra.mxu0 %v6594_v21  ;;  %3434 = vmatpush1.bf16.msra.mxu1 %v6596_v39 }
 0x79c   :  { %3487 = vmatprep.subr.bf16.mxu0 %v6506_v2  ;;  %3528 = vmatprep.subr.bf16.mxu1 %v6508_v0 }
 0x830   :  { %v2707_v55 = vpop.f32.mrb[44].mxu0  ;;  %v2748_v23 = vpop.f32.mrb[44].mxu1 }
 0x831   :  { %v2755_v24 = vadd.f32 %v2707_v55, %v7166_v44  ;;  %v2757_v29 = vadd.f32 %v2748_v23, %v7167_v28  ;;  %v2709_v32 = vpop.f32.mrb[45].mxu0  ;;  %v2750_v30 = vpop.f32.mrb[45].mxu1 }
 0x832   :  { %v2756_v14 = vadd.f32 %v2709_v32, %v7168_v34  ;;  %v2758_v36 = vadd.f32 %v2750_v30, %v7169_v35  ;;  %v2711_v37 = vpop.f32.mrb[46].mxu0  ;;  %v2752_v40 = vpop.f32.mrb[46].mxu1 }
 0x833   :  { %v2759_v41 = vmul.f32 0.5, %v2755_v24  ;;  %v2712_v45 = vpop.f32.mrb[47].mxu0  ;;  %v2753_v6 = vpop.f32.mrb[47].mxu1 }
 0x834   :  { %v2763_v52 = vmul.f32 0.5, %v2756_v14  ;;  %v2768_v38 = vmul.f32 0.5, %v2758_v36 }
 0x835   :  { %5426 = vtanh.f32 %v2759_v41 }
 0x836   :  { %5428 = vtanh.f32 %v2763_v52 }
 0x837   :  { %5430 = vtanh.f32 %v2757_v29 }
 0x838   :  { %5432 = vtanh.f32 %v2768_v38 }
 0x83f   :  { %v5427_v57 = vpop.eup %5426 }
 0x840   :  { %v5429_v56 = vpop.eup %5428  ;;  %v2761_v58 = vmul.f32 0.5, %v5427_v57 }
 0x841   :  { %v2765_v60 = vmul.f32 0.5, %v5429_v56  ;;  %v5431_v61 = vpop.eup %5430 }
 0x842   :  { %v2762_v59 = vadd.f32 0.5, %v2761_v58  ;;  %v5433_v55 = vpop.eup %5432 }
 0x843   :  { %v2766_v62 = vadd.f32 0.5, %v2765_v60  ;;  %v2770_v23 = vmul.f32 0.5, %v5433_v55 }
 0x844   :  { %v2773_v9 = vmul.f32 %v5431_v61, %v2762_v59 }
 0x845   :  { %v2772_v11 = vmul.f32 %v2766_v62, %v6485_v25  ;;  %v2771_v32 = vadd.f32 0.5, %v2770_v23 }
 0x847   :  { %v2774_v63 = vadd.f32 %v2773_v9, %v2772_v11 }
 0x849   :  { %5434 = vtanh.f32 %v2774_v63  ;;  %v2822_v63 = vld [vmem:[%s7109_s6] sm:$0xf] }
 0x850   :  { %v6609_v44 = vpop.f32.mrb[48].mxu0  ;;  %v6611_v24 = vpop.f32.mrb[48].mxu1 }
 0x851   :  { %v6613_v28 = vpop.f32.mrb[49].mxu0  ;;  %v6615_v29 = vpop.f32.mrb[49].mxu1 }
 0x852   :  { %v6617_v30 = vpop.f32.mrb[50].mxu0  ;;  %v6619_v34 = vpop.f32.mrb[50].mxu1 }
 0x853   :  { %v5435_v14 = vpop.eup %5434  ;;  %v6621_v35 = vpop.f32.mrb[51].mxu0 }
 0x854   :  { %v6623_v25 = vpop.f32.mrb[51].mxu1  ;;  %v6625_v36 = vmul.f32 %v5435_v14, %v2771_v32 }
 0x856   :  { %7170 = vst [vmem:[#allocation19_spill] sm:$0xff] %v6625_v36  ;;  %v2789_v37 = vpack.c.bf16 %v6625_v36, %v6488_v13 }
 0x858   :  { %v6629_v40 = vpop.f32.mrb[52].mxu0  ;;  %v6631_v41 = vpop.f32.mrb[52].mxu1  ;;  %3067 = vmatmul.mubr.bf16.gmra.mrb[60].mxu0 %v2789_v37  ;;  %3140 = vmatmul.mubr.bf16.gmra.mrb[60].mxu1 %v2789_v37 }
 0x859   :  { %7171 = vst [vmem:[#allocation20_spill] sm:$0xff] %v6629_v40  ;;  %7172 = vst [vmem:[#allocation21_spill] sm:$0xff] %v6631_v41  ;;  %v6633_v45 = vpop.f32.mrb[53].mxu0  ;;  %v6635_v6 = vpop.f32.mrb[53].mxu1  ;;  %3410 = vmatprep.mubr.bf16.mxu0 %v7148_v51  ;;  %3451 = vmatprep.mubr.bf16.mxu1 %v7148_v51 }
 0x85a   :  { %7173 = vst [vmem:[#allocation22_spill] sm:$0xff] %v6633_v45  ;;  %7174 = vst [vmem:[#allocation23_spill] sm:$0xff] %v6635_v6  ;;  %v6639_v52 = vpop.f32.mrb[54].mxu0  ;;  %v6641_v38 = vpop.f32.mrb[54].mxu1 }
 0x85b   :  { %7175 = vst [vmem:[#allocation24_spill] sm:$0xff] %v6639_v52  ;;  %7176 = vst [vmem:[#allocation25_spill] sm:$0xff] %v6641_v38  ;;  %v6643_v57 = vpop.f32.mrb[55].mxu0  ;;  %v6645_v13 = vpop.f32.mrb[55].mxu1 }
 0x85c   :  { %7177 = vst [vmem:[#allocation26_spill] sm:$0xff] %v6643_v57  ;;  %7178 = vst [vmem:[#allocation27_spill] sm:$0xff] %v6645_v13 }
 0x860   :  { %v6647_v56 = vpop.f32.mrb[56].mxu0  ;;  %v6649_v58 = vpop.f32.mrb[56].mxu1  ;;  %3411 = vmatmul.mubr.bf16.vlgmr.msra.gmra.mrb[64].mxu0 %v7148_v51  ;;  %3452 = vmatmul.mubr.bf16.vlgmr.msra.gmra.mrb[64].mxu1 %v7148_v51 }
 0x861   :  { %7179 = vst [vmem:[#allocation28_spill] sm:$0xff] %v6647_v56  ;;  %7180 = vst [vmem:[#allocation29_spill] sm:$0xff] %v6649_v58  ;;  %v6653_v60 = vpop.f32.mrb[57].mxu0  ;;  %v6655_v59 = vpop.f32.mrb[57].mxu1  ;;  %3488 = vmatpush1.bf16.msra.mxu0 %v6510_v26  ;;  %3529 = vmatpush1.bf16.msra.mxu1 %v6512_v22 }
 0x862   :  { %7181 = vst [vmem:[#allocation30_spill] sm:$0xff] %v6653_v60  ;;  %7182 = vst [vmem:[#allocation31_spill] sm:$0xff] %v6655_v59  ;;  %v6659_v61 = vpop.f32.mrb[58].mxu0  ;;  %v6661_v62 = vpop.f32.mrb[58].mxu1  ;;  %3489 = vmatprep.subr.bf16.mxu0 %v6518_v33  ;;  %3530 = vmatprep.subr.bf16.mxu1 %v6520_v42 }
 0x863   :  { %7183 = vst [vmem:[#allocation32_spill] sm:$0xff] %v6659_v61  ;;  %7184 = vst [vmem:[#allocation33_spill] sm:$0xff] %v6661_v62  ;;  %v6665_v9 = vpop.f32.mrb[59].mxu0  ;;  %v6667_v11 = vpop.f32.mrb[59].mxu1  ;;  %3519 = vmatprep.mubr.bf16.mxu0 %v7148_v51  ;;  %3560 = vmatprep.mubr.bf16.mxu1 %v7148_v51 }
 0x864   :  { %7185 = vst [vmem:[#allocation34_spill] sm:$0xff] %v6665_v9  ;;  %7186 = vst [vmem:[#allocation35_spill] sm:$0xff] %v6667_v11  ;;  %v7193_v11 = vld [vmem:[#allocation18_spill] sm:$0xff] }
 0x865   :  { %3490 = vmatpush1.bf16.msra.mxu0 %v6522_v3  ;;  %3531 = vmatpush1.bf16.msra.mxu1 %v6524_v50  ;;  %v7194_v9 = vsub.s32 0, %v7193_v11  ;;  %v7195_v61 = vsub.s32 2, %v7193_v11 }
 0x866   :  { %3491 = vmatprep.subr.bf16.mxu0 %v6530_v5  ;;  %3532 = vmatprep.subr.bf16.mxu1 %v6532_v19 }
 0x867   :  { %v6716_v62 = vrot.slane %v2822_v63, %v7194_v9  ;;  %v6720_v59 = vrot.slane %v2822_v63, %v7195_v61 }
 0x869   :  { %3492 = vmatpush1.bf16.msra.mxu0 %v6534_v43  ;;  %3533 = vmatpush1.bf16.msra.mxu1 %v6536_v7  ;;  %v3039_v9 = vadd.f32 %v6609_v44, %v6716_v62 }
 0x86a   :  { %3493 = vmatprep.subr.bf16.mxu0 %v6540_v4  ;;  %3534 = vmatprep.subr.bf16.mxu1 %v6542_v16 }
 0x86d   :  { %3494 = vmatpush1.bf16.msra.mxu0 %v6546_v27  ;;  %3535 = vmatpush1.bf16.msra.mxu1 %v6548_v53 }
 0x86e   :  { %3495 = vmatprep.subr.bf16.mxu0 %v6554_v49  ;;  %3536 = vmatprep.subr.bf16.mxu1 %v6556_v1 }
 0x871   :  { %3496 = vmatpush1.bf16.msra.mxu0 %v6558_v17  ;;  %3537 = vmatpush1.bf16.msra.mxu1 %v6560_v54 }
 0x872   :  { %3497 = vmatprep.subr.bf16.mxu0 %v6566_v8  ;;  %3538 = vmatprep.subr.bf16.mxu1 %v6568_v10 }
 0x875   :  { %3498 = vmatpush1.bf16.msra.mxu0 %v6570_v12  ;;  %3539 = vmatpush1.bf16.msra.mxu1 %v6572_v46 }
 0x876   :  { %3499 = vmatprep.subr.bf16.mxu0 %v6578_v47  ;;  %3540 = vmatprep.subr.bf16.mxu1 %v6580_v48 }
 0x879   :  { %3500 = vmatpush1.bf16.msra.mxu0 %v6582_v31  ;;  %3541 = vmatpush1.bf16.msra.mxu1 %v6584_v15 }
 0x87a   :  { %3501 = vmatprep.subr.bf16.mxu0 %v6590_v18  ;;  %3542 = vmatprep.subr.bf16.mxu1 %v6592_v20 }
 0x87d   :  { %3502 = vmatpush1.bf16.msra.mxu0 %v6594_v21  ;;  %3543 = vmatpush1.bf16.msra.mxu1 %v6596_v39 }
 0x87e   :  { %3596 = vmatprep.subr.bf16.mxu0 %v6506_v2  ;;  %3637 = vmatprep.subr.bf16.mxu1 %v6508_v0 }
 0x92b   :  { %v6702_v55 = vpop.f32.mrb[60].mxu0  ;;  %v6704_v23 = vpop.f32.mrb[60].mxu1 }
 0x92c   :  { %7187 = vst [vmem:[#allocation36_spill] sm:$0xff] %v6702_v55  ;;  %7188 = vst [vmem:[#allocation37_spill] sm:$0xff] %v6704_v23  ;;  %v6706_v32 = vpop.f32.mrb[61].mxu0  ;;  %v6708_v14 = vpop.f32.mrb[61].mxu1 }
 0x92d   :  { %7189 = vst [vmem:[#allocation38_spill] sm:$0xff] %v6706_v32  ;;  %7190 = vst [vmem:[#allocation39_spill] sm:$0xff] %v6708_v14  ;;  %v6710_v37 = vpop.f32.mrb[62].mxu0  ;;  %v6712_v36 = vpop.f32.mrb[62].mxu1  ;;  %v7198_v32 = vsub.s32 1, %v7193_v11 }
 0x92e   :  { %7191 = vst [vmem:[#allocation40_spill] sm:$0xff] %v6710_v37  ;;  %7192 = vst [vmem:[#allocation41_spill] sm:$0xff] %v6712_v36  ;;  %v6722_v60 = vpop.f32.mrb[63].mxu0  ;;  %v6724_v55 = vpop.f32.mrb[63].mxu1  ;;  %v7199_v37 = vsub.s32 3, %v7193_v11  ;;  %v3112_v36 = vadd.f32 %v6611_v24, %v6720_v59 }
 0x92f   :  { %7196 = vst [vmem:[#allocation18_spill] sm:$0xff] %v6722_v60  ;;  %7197 = vst [vmem:[#allocation42_spill] sm:$0xff] %v6724_v55  ;;  %v6728_v23 = vrot.slane %v2822_v63, %v7198_v32 }
 0x930   :  { %v6732_v14 = vrot.slane %v2822_v63, %v7199_v37 }
 0x931   :  { %v3041_v61 = vadd.f32 %v6613_v28, %v6728_v23 }
 0x932   :  { %v3114_v55 = vadd.f32 %v6615_v29, %v6732_v14 }
 0x933   :  { %v3412_v60 = vpop.f32.mrb[64].mxu0  ;;  %v3453_v58 = vpop.f32.mrb[64].mxu1 }
 0x934   :  { %v3460_v32 = vadd.f32 %v3412_v60, %v3039_v9  ;;  %v3462_v56 = vadd.f32 %v3453_v58, %v3112_v36  ;;  %v3414_v13 = vpop.f32.mrb[65].mxu0  ;;  %v3455_v11 = vpop.f32.mrb[65].mxu1 }
 0x935   :  { %v3461_v63 = vadd.f32 %v3414_v13, %v3041_v61  ;;  %v3463_v37 = vadd.f32 %v3455_v11, %v3114_v55  ;;  %v3416_v57 = vpop.f32.mrb[66].mxu0  ;;  %v3457_v38 = vpop.f32.mrb[66].mxu1 }
 0x936   :  { %v3464_v44 = vmul.f32 0.5, %v3460_v32  ;;  %v3417_v52 = vpop.f32.mrb[67].mxu0  ;;  %v3458_v6 = vpop.f32.mrb[67].mxu1  ;;  %v3118_v32 = vadd.f32 %v6623_v25, %v6732_v14 }
 0x937   :  { %v3468_v24 = vmul.f32 0.5, %v3461_v63  ;;  %v3473_v28 = vmul.f32 0.5, %v3463_v37 }
 0x938   :  { %5436 = vtanh.f32 %v3464_v44 }
 0x939   :  { %5438 = vtanh.f32 %v3468_v24 }
 0x93a   :  { %5440 = vtanh.f32 %v3462_v56 }
 0x93b   :  { %5442 = vtanh.f32 %v3473_v28 }
 0x942   :  { %v5437_v45 = vpop.eup %5436 }
 0x943   :  { %v5439_v29 = vpop.eup %5438  ;;  %v3466_v41 = vmul.f32 0.5, %v5437_v45  ;;  %v3045_v45 = vadd.f32 %v6621_v35, %v6728_v23 }
 0x944   :  { %v3470_v40 = vmul.f32 0.5, %v5439_v29  ;;  %v5441_v58 = vpop.eup %5440 }
 0x945   :  { %v3467_v36 = vadd.f32 0.5, %v3466_v41  ;;  %v5443_v6 = vpop.eup %5442  ;;  %v3116_v41 = vadd.f32 %v6619_v34, %v6720_v59 }
 0x946   :  { %v3471_v60 = vadd.f32 0.5, %v3470_v40  ;;  %v3475_v52 = vmul.f32 0.5, %v5443_v6  ;;  %v3043_v40 = vadd.f32 %v6617_v30, %v6716_v62 }
 0x947   :  { %v3478_v13 = vmul.f32 %v5441_v58, %v3467_v36 }
 0x948   :  { %v3477_v55 = vmul.f32 0.0, %v3471_v60  ;;  %v3476_v38 = vadd.f32 0.5, %v3475_v52 }
 0x94a   :  { %v6742_v57 = vadd.f32 %v3478_v13, %v3477_v55 }
 0x94c   :  { %5444 = vtanh.f32 %v6742_v57 }
 0x956   :  { %v5445_v9 = vpop.eup %5444 }
 0x957   :  { %v3481_v56 = vmul.f32 %v5445_v9, %v3476_v38 }
 0x959   :  { %v3486_v61 = vpack.c.bf16 %v3481_v56, %v3481_v56 }
 0x95b   :  { %3520 = vmatmul.mubr.bf16.vlgmr.msra.gmra.mrb[68].mxu0 %v3486_v61  ;;  %3561 = vmatmul.mubr.bf16.vlgmr.msra.gmra.mrb[68].mxu1 %v3486_v61 }
 0x95c   :  { %3597 = vmatpush1.bf16.msra.mxu0 %v6510_v26  ;;  %3638 = vmatpush1.bf16.msra.mxu1 %v6512_v22 }
 0x95d   :  { %3598 = vmatprep.subr.bf16.mxu0 %v6518_v33  ;;  %3639 = vmatprep.subr.bf16.mxu1 %v6520_v42 }
 0x95e   :  { %3628 = vmatprep.mubr.bf16.mxu0 %v7148_v51  ;;  %3669 = vmatprep.mubr.bf16.mxu1 %v7148_v51 }
 0x960   :  { %3599 = vmatpush1.bf16.msra.mxu0 %v6522_v3  ;;  %3640 = vmatpush1.bf16.msra.mxu1 %v6524_v50 }
 0x961   :  { %3600 = vmatprep.subr.bf16.mxu0 %v6530_v5  ;;  %3641 = vmatprep.subr.bf16.mxu1 %v6532_v19 }
 0x964   :  { %3601 = vmatpush1.bf16.msra.mxu0 %v6534_v43  ;;  %3642 = vmatpush1.bf16.msra.mxu1 %v6536_v7 }
 0x965   :  { %3602 = vmatprep.subr.bf16.mxu0 %v6540_v4  ;;  %3643 = vmatprep.subr.bf16.mxu1 %v6542_v16 }
 0x968   :  { %3603 = vmatpush1.bf16.msra.mxu0 %v6546_v27  ;;  %3644 = vmatpush1.bf16.msra.mxu1 %v6548_v53 }
 0x969   :  { %3604 = vmatprep.subr.bf16.mxu0 %v6554_v49  ;;  %3645 = vmatprep.subr.bf16.mxu1 %v6556_v1 }
 0x96c   :  { %3605 = vmatpush1.bf16.msra.mxu0 %v6558_v17  ;;  %3646 = vmatpush1.bf16.msra.mxu1 %v6560_v54 }
 0x96d   :  { %3606 = vmatprep.subr.bf16.mxu0 %v6566_v8  ;;  %3647 = vmatprep.subr.bf16.mxu1 %v6568_v10 }
 0x970   :  { %3607 = vmatpush1.bf16.msra.mxu0 %v6570_v12  ;;  %3648 = vmatpush1.bf16.msra.mxu1 %v6572_v46 }
 0x971   :  { %3608 = vmatprep.subr.bf16.mxu0 %v6578_v47  ;;  %3649 = vmatprep.subr.bf16.mxu1 %v6580_v48 }
 0x974   :  { %3609 = vmatpush1.bf16.msra.mxu0 %v6582_v31  ;;  %3650 = vmatpush1.bf16.msra.mxu1 %v6584_v15 }
 0x975   :  { %3610 = vmatprep.subr.bf16.mxu0 %v6590_v18  ;;  %3651 = vmatprep.subr.bf16.mxu1 %v6592_v20 }
 0x978   :  { %3611 = vmatpush1.bf16.msra.mxu0 %v6594_v21  ;;  %3652 = vmatpush1.bf16.msra.mxu1 %v6596_v39 }
 0x979   :  { %3705 = vmatprep.subr.bf16.mxu0 %v6506_v2  ;;  %3746 = vmatprep.subr.bf16.mxu1 %v6508_v0 }
 0xa2e   :  { %v3521_v11 = vpop.f32.mrb[68].mxu0  ;;  %v3562_v63 = vpop.f32.mrb[68].mxu1 }
 0xa2f   :  { %v3569_v37 = vadd.f32 %v3521_v11, %v3043_v40  ;;  %v3571_v44 = vadd.f32 %v3562_v63, %v3116_v41  ;;  %v3523_v24 = vpop.f32.mrb[69].mxu0  ;;  %v3564_v28 = vpop.f32.mrb[69].mxu1 }
 0xa30   :  { %v3570_v29 = vadd.f32 %v3523_v24, %v3045_v45  ;;  %v3572_v36 = vadd.f32 %v3564_v28, %v3118_v32  ;;  %v3525_v58 = vpop.f32.mrb[70].mxu0  ;;  %v3566_v60 = vpop.f32.mrb[70].mxu1 }
 0xa31   :  { %v3573_v30 = vmul.f32 0.5, %v3569_v37  ;;  %v3526_v13 = vpop.f32.mrb[71].mxu0  ;;  %v3567_v55 = vpop.f32.mrb[71].mxu1  ;;  %v7202_v58 = vld [vmem:[#allocation22_spill] sm:$0xff] }
 0xa32   :  { %v3577_v34 = vmul.f32 0.5, %v3570_v29  ;;  %v3582_v35 = vmul.f32 0.5, %v3572_v36  ;;  %v7201_v29 = vld [vmem:[#allocation21_spill] sm:$0xff]  ;;  %v3051_v60 = vadd.f32 %v7202_v58, %v6728_v23 }
 0xa33   :  { %5446 = vtanh.f32 %v3573_v30  ;;  %v3122_v36 = vadd.f32 %v7201_v29, %v6720_v59  ;;  %v7203_v30 = vld [vmem:[#allocation23_spill] sm:$0xff] }
 0xa34   :  { %5448 = vtanh.f32 %v3577_v34  ;;  %v3124_v13 = vadd.f32 %v7203_v30, %v6732_v14 }
 0xa35   :  { %5450 = vtanh.f32 %v3571_v44 }
 0xa36   :  { %5452 = vtanh.f32 %v3582_v35 }
 0xa3d   :  { %v5447_v6 = vpop.eup %5446 }
 0xa3e   :  { %v5449_v25 = vpop.eup %5448  ;;  %v3575_v52 = vmul.f32 0.5, %v5447_v6 }
 0xa3f   :  { %v3579_v38 = vmul.f32 0.5, %v5449_v25  ;;  %v5451_v56 = vpop.eup %5450 }
 0xa40   :  { %v3576_v9 = vadd.f32 0.5, %v3575_v52  ;;  %v5453_v32 = vpop.eup %5452 }
 0xa41   :  { %v3580_v61 = vadd.f32 0.5, %v3579_v38  ;;  %v3584_v11 = vmul.f32 0.5, %v5453_v32 }
 0xa42   :  { %v3587_v40 = vmul.f32 %v5451_v56, %v3576_v9 }
 0xa43   :  { %v3586_v41 = vmul.f32 %v3580_v61, %v6742_v57  ;;  %v3585_v63 = vadd.f32 0.5, %v3584_v11  ;;  %v7200_v57 = vld [vmem:[#allocation20_spill] sm:$0xff] }
 0xa44   :  { %v3049_v28 = vadd.f32 %v7200_v57, %v6716_v62 }
 0xa45   :  { %v6788_v45 = vadd.f32 %v3587_v40, %v3586_v41 }
 0xa47   :  { %5454 = vtanh.f32 %v6788_v45 }
 0xa51   :  { %v5455_v37 = vpop.eup %5454 }
 0xa52   :  { %v3590_v44 = vmul.f32 %v5455_v37, %v3585_v63 }
 0xa54   :  { %v3595_v24 = vpack.c.bf16 %v3590_v44, %v3590_v44 }
 0xa56   :  { %3629 = vmatmul.mubr.bf16.vlgmr.msra.gmra.mrb[72].mxu0 %v3595_v24  ;;  %3670 = vmatmul.mubr.bf16.vlgmr.msra.gmra.mrb[72].mxu1 %v3595_v24 }
 0xa57   :  { %3706 = vmatpush1.bf16.msra.mxu0 %v6510_v26  ;;  %3747 = vmatpush1.bf16.msra.mxu1 %v6512_v22 }
 0xa58   :  { %3707 = vmatprep.subr.bf16.mxu0 %v6518_v33  ;;  %3748 = vmatprep.subr.bf16.mxu1 %v6520_v42 }
 0xa59   :  { %3737 = vmatprep.mubr.bf16.mxu0 %v7148_v51  ;;  %3778 = vmatprep.mubr.bf16.mxu1 %v7148_v51 }
 0xa5b   :  { %3708 = vmatpush1.bf16.msra.mxu0 %v6522_v3  ;;  %3749 = vmatpush1.bf16.msra.mxu1 %v6524_v50 }
 0xa5c   :  { %3709 = vmatprep.subr.bf16.mxu0 %v6530_v5  ;;  %3750 = vmatprep.subr.bf16.mxu1 %v6532_v19 }
 0xa5f   :  { %3710 = vmatpush1.bf16.msra.mxu0 %v6534_v43  ;;  %3751 = vmatpush1.bf16.msra.mxu1 %v6536_v7 }
 0xa60   :  { %3711 = vmatprep.subr.bf16.mxu0 %v6540_v4  ;;  %3752 = vmatprep.subr.bf16.mxu1 %v6542_v16 }
 0xa63   :  { %3712 = vmatpush1.bf16.msra.mxu0 %v6546_v27  ;;  %3753 = vmatpush1.bf16.msra.mxu1 %v6548_v53 }
 0xa64   :  { %3713 = vmatprep.subr.bf16.mxu0 %v6554_v49  ;;  %3754 = vmatprep.subr.bf16.mxu1 %v6556_v1 }
 0xa67   :  { %3714 = vmatpush1.bf16.msra.mxu0 %v6558_v17  ;;  %3755 = vmatpush1.bf16.msra.mxu1 %v6560_v54 }
 0xa68   :  { %3715 = vmatprep.subr.bf16.mxu0 %v6566_v8  ;;  %3756 = vmatprep.subr.bf16.mxu1 %v6568_v10 }
 0xa6b   :  { %3716 = vmatpush1.bf16.msra.mxu0 %v6570_v12  ;;  %3757 = vmatpush1.bf16.msra.mxu1 %v6572_v46 }
 0xa6c   :  { %3717 = vmatprep.subr.bf16.mxu0 %v6578_v47  ;;  %3758 = vmatprep.subr.bf16.mxu1 %v6580_v48 }
 0xa6f   :  { %3718 = vmatpush1.bf16.msra.mxu0 %v6582_v31  ;;  %3759 = vmatpush1.bf16.msra.mxu1 %v6584_v15 }
 0xa70   :  { %3719 = vmatprep.subr.bf16.mxu0 %v6590_v18  ;;  %3760 = vmatprep.subr.bf16.mxu1 %v6592_v20 }
 0xa73   :  { %3720 = vmatpush1.bf16.msra.mxu0 %v6594_v21  ;;  %3761 = vmatpush1.bf16.msra.mxu1 %v6596_v39 }
 0xa74   :  { %3814 = vmatprep.subr.bf16.mxu0 %v6506_v2  ;;  %3855 = vmatprep.subr.bf16.mxu1 %v6508_v0 }
 0xb29   :  { %v3630_v55 = vpop.f32.mrb[72].mxu0  ;;  %v3671_v34 = vpop.f32.mrb[72].mxu1 }
 0xb2a   :  { %v3678_v35 = vadd.f32 %v3630_v55, %v3049_v28  ;;  %v3680_v6 = vadd.f32 %v3671_v34, %v3122_v36  ;;  %v3632_v25 = vpop.f32.mrb[73].mxu0  ;;  %v3673_v52 = vpop.f32.mrb[73].mxu1 }
 0xb2b   :  { %v3679_v38 = vadd.f32 %v3632_v25, %v3051_v60  ;;  %v3681_v9 = vadd.f32 %v3673_v52, %v3124_v13  ;;  %v3634_v56 = vpop.f32.mrb[74].mxu0  ;;  %v3675_v61 = vpop.f32.mrb[74].mxu1 }
 0xb2c   :  { %v3682_v40 = vmul.f32 0.5, %v3678_v35  ;;  %v3635_v41 = vpop.f32.mrb[75].mxu0  ;;  %v3676_v32 = vpop.f32.mrb[75].mxu1  ;;  %v7206_v56 = vld [vmem:[#allocation26_spill] sm:$0xff] }
 0xb2d   :  { %v3686_v11 = vmul.f32 0.5, %v3679_v38  ;;  %v3691_v63 = vmul.f32 0.5, %v3681_v9  ;;  %v7205_v38 = vld [vmem:[#allocation25_spill] sm:$0xff]  ;;  %v3055_v61 = vadd.f32 %v7206_v56, %v6728_v23 }
 0xb2e   :  { %5456 = vtanh.f32 %v3682_v40  ;;  %v3126_v9 = vadd.f32 %v7205_v38, %v6720_v59  ;;  %v7207_v40 = vld [vmem:[#allocation27_spill] sm:$0xff] }
 0xb2f   :  { %5458 = vtanh.f32 %v3686_v11  ;;  %v3128_v41 = vadd.f32 %v7207_v40, %v6732_v14 }
 0xb30   :  { %5460 = vtanh.f32 %v3680_v6 }
 0xb31   :  { %5462 = vtanh.f32 %v3691_v63 }
 0xb38   :  { %v5457_v37 = vpop.eup %5456 }
 0xb39   :  { %v5459_v44 = vpop.eup %5458  ;;  %v3684_v24 = vmul.f32 0.5, %v5457_v37 }
 0xb3a   :  { %v3688_v57 = vmul.f32 0.5, %v5459_v44  ;;  %v5461_v29 = vpop.eup %5460 }
 0xb3b   :  { %v3685_v28 = vadd.f32 0.5, %v3684_v24  ;;  %v5463_v13 = vpop.eup %5462 }
 0xb3c   :  { %v3689_v36 = vadd.f32 0.5, %v3688_v57  ;;  %v3693_v55 = vmul.f32 0.5, %v5463_v13 }
 0xb3d   :  { %v3696_v58 = vmul.f32 %v5461_v29, %v3685_v28 }
 0xb3e   :  { %v3695_v60 = vmul.f32 %v3689_v36, %v6788_v45  ;;  %v3694_v34 = vadd.f32 0.5, %v3693_v55  ;;  %v7204_v45 = vld [vmem:[#allocation24_spill] sm:$0xff] }
 0xb3f   :  { %v3053_v52 = vadd.f32 %v7204_v45, %v6716_v62 }
 0xb40   :  { %v6834_v30 = vadd.f32 %v3696_v58, %v3695_v60 }
 0xb42   :  { %5464 = vtanh.f32 %v6834_v30 }
 0xb4c   :  { %v5465_v35 = vpop.eup %5464 }
 0xb4d   :  { %v3699_v6 = vmul.f32 %v5465_v35, %v3694_v34 }
 0xb4f   :  { %v3704_v25 = vpack.c.bf16 %v3699_v6, %v3699_v6 }
 0xb51   :  { %3738 = vmatmul.mubr.bf16.vlgmr.msra.gmra.mrb[76].mxu0 %v3704_v25  ;;  %3779 = vmatmul.mubr.bf16.vlgmr.msra.gmra.mrb[76].mxu1 %v3704_v25 }
 0xb52   :  { %3815 = vmatpush1.bf16.msra.mxu0 %v6510_v26  ;;  %3856 = vmatpush1.bf16.msra.mxu1 %v6512_v22 }
 0xb53   :  { %3816 = vmatprep.subr.bf16.mxu0 %v6518_v33  ;;  %3857 = vmatprep.subr.bf16.mxu1 %v6520_v42 }
 0xb54   :  { %3846 = vmatprep.mubr.bf16.mxu0 %v7148_v51  ;;  %3887 = vmatprep.mubr.bf16.mxu1 %v7148_v51 }
 0xb56   :  { %3817 = vmatpush1.bf16.msra.mxu0 %v6522_v3  ;;  %3858 = vmatpush1.bf16.msra.mxu1 %v6524_v50 }
 0xb57   :  { %3818 = vmatprep.subr.bf16.mxu0 %v6530_v5  ;;  %3859 = vmatprep.subr.bf16.mxu1 %v6532_v19 }
 0xb5a   :  { %3819 = vmatpush1.bf16.msra.mxu0 %v6534_v43  ;;  %3860 = vmatpush1.bf16.msra.mxu1 %v6536_v7 }
 0xb5b   :  { %3820 = vmatprep.subr.bf16.mxu0 %v6540_v4  ;;  %3861 = vmatprep.subr.bf16.mxu1 %v6542_v16 }
 0xb5e   :  { %3821 = vmatpush1.bf16.msra.mxu0 %v6546_v27  ;;  %3862 = vmatpush1.bf16.msra.mxu1 %v6548_v53 }
 0xb5f   :  { %3822 = vmatprep.subr.bf16.mxu0 %v6554_v49  ;;  %3863 = vmatprep.subr.bf16.mxu1 %v6556_v1 }
 0xb62   :  { %3823 = vmatpush1.bf16.msra.mxu0 %v6558_v17  ;;  %3864 = vmatpush1.bf16.msra.mxu1 %v6560_v54 }
 0xb63   :  { %3824 = vmatprep.subr.bf16.mxu0 %v6566_v8  ;;  %3865 = vmatprep.subr.bf16.mxu1 %v6568_v10 }
 0xb66   :  { %3825 = vmatpush1.bf16.msra.mxu0 %v6570_v12  ;;  %3866 = vmatpush1.bf16.msra.mxu1 %v6572_v46 }
 0xb67   :  { %3826 = vmatprep.subr.bf16.mxu0 %v6578_v47  ;;  %3867 = vmatprep.subr.bf16.mxu1 %v6580_v48 }
 0xb6a   :  { %3827 = vmatpush1.bf16.msra.mxu0 %v6582_v31  ;;  %3868 = vmatpush1.bf16.msra.mxu1 %v6584_v15 }
 0xb6b   :  { %3828 = vmatprep.subr.bf16.mxu0 %v6590_v18  ;;  %3869 = vmatprep.subr.bf16.mxu1 %v6592_v20 }
 0xb6e   :  { %3829 = vmatpush1.bf16.msra.mxu0 %v6594_v21  ;;  %3870 = vmatpush1.bf16.msra.mxu1 %v6596_v39 }
 0xb6f   :  { %3923 = vmatprep.subr.bf16.mxu0 %v6506_v2  ;;  %3964 = vmatprep.subr.bf16.mxu1 %v6508_v0 }
 0xc24   :  { %v3739_v32 = vpop.f32.mrb[76].mxu0  ;;  %v3780_v11 = vpop.f32.mrb[76].mxu1 }
 0xc25   :  { %v3787_v63 = vadd.f32 %v3739_v32, %v3053_v52  ;;  %v3789_v37 = vadd.f32 %v3780_v11, %v3126_v9  ;;  %v3741_v44 = vpop.f32.mrb[77].mxu0  ;;  %v3782_v24 = vpop.f32.mrb[77].mxu1 }
 0xc26   :  { %v3788_v57 = vadd.f32 %v3741_v44, %v3055_v61  ;;  %v3790_v28 = vadd.f32 %v3782_v24, %v3128_v41  ;;  %v3743_v29 = vpop.f32.mrb[78].mxu0  ;;  %v3784_v36 = vpop.f32.mrb[78].mxu1 }
 0xc27   :  { %v3791_v58 = vmul.f32 0.5, %v3787_v63  ;;  %v3744_v60 = vpop.f32.mrb[79].mxu0  ;;  %v3785_v13 = vpop.f32.mrb[79].mxu1 }
 0xc28   :  { %v3795_v55 = vmul.f32 0.5, %v3788_v57  ;;  %v3800_v34 = vmul.f32 0.5, %v3790_v28 }
 0xc29   :  { %5466 = vtanh.f32 %v3791_v58 }
 0xc2a   :  { %5468 = vtanh.f32 %v3795_v55 }
 0xc2b   :  { %5470 = vtanh.f32 %v3789_v37 }
 0xc2c   :  { %5472 = vtanh.f32 %v3800_v34 }
 0xc33   :  { %v5467_v35 = vpop.eup %5466 }
 0xc34   :  { %v5469_v6 = vpop.eup %5468  ;;  %v3793_v25 = vmul.f32 0.5, %v5467_v35 }
 0xc35   :  { %v3797_v45 = vmul.f32 0.5, %v5469_v6  ;;  %v5471_v38 = vpop.eup %5470 }
 0xc36   :  { %v3794_v52 = vadd.f32 0.5, %v3793_v25  ;;  %v5473_v41 = vpop.eup %5472 }
 0xc37   :  { %v3798_v9 = vadd.f32 0.5, %v3797_v45  ;;  %v3802_v32 = vmul.f32 0.5, %v5473_v41 }
 0xc38   :  { %v3805_v56 = vmul.f32 %v5471_v38, %v3794_v52 }
 0xc39   :  { %v3804_v61 = vmul.f32 %v3798_v9, %v6834_v30  ;;  %v3803_v11 = vadd.f32 0.5, %v3802_v32 }
 0xc3b   :  { %v6880_v40 = vadd.f32 %v3805_v56, %v3804_v61 }
 0xc3d   :  { %5474 = vtanh.f32 %v6880_v40 }
 0xc47   :  { %v5475_v63 = vpop.eup %5474 }
 0xc48   :  { %v3808_v37 = vmul.f32 %v5475_v63, %v3803_v11  ;;  %v6929_v63 = vld [vmem:[#allocation9] ss:$16 sps:$4 sm:$0xff]  }
 0xc4a   :  { %v3813_v44 = vpack.c.bf16 %v3808_v37, %v3808_v37  ;;  %v6932_v37 = vld [vmem:[#allocation9 + $0x8] ss:$16 sps:$4 sm:$0xff]  }
 0xc4c   :  { %3847 = vmatmul.mubr.bf16.vlgmr.msra.gmra.mrb[80].mxu0 %v3813_v44  ;;  %3888 = vmatmul.mubr.bf16.vlgmr.msra.gmra.mrb[80].mxu1 %v3813_v44  ;;  %v6938_v44 = vld [vmem:[#allocation9 + $0x2c] ss:$16 sps:$4 sm:$0xff]  }
 0xc4d   :  { %3924 = vmatpush1.bf16.msra.mxu0 %v6510_v26  ;;  %3965 = vmatpush1.bf16.msra.mxu1 %v6512_v22  ;;  %v7208_v26 = vld [vmem:[#allocation28_spill] sm:$0xff] }
 0xc4e   :  { %3925 = vmatprep.subr.bf16.mxu0 %v6518_v33  ;;  %3966 = vmatprep.subr.bf16.mxu1 %v6520_v42  ;;  %v3059_v22 = vadd.f32 %v7208_v26, %v6716_v62  ;;  %v7209_v33 = vld [vmem:[#allocation29_spill] sm:$0xff] }
 0xc4f   :  { %3955 = vmatprep.mubr.bf16.mxu0 %v7148_v51  ;;  %3996 = vmatprep.mubr.bf16.mxu1 %v7148_v51  ;;  %v3132_v42 = vadd.f32 %v7209_v33, %v6720_v59  ;;  %v6943_v26 = vld [vmem:[#allocation9 + $0x20] ss:$16 sps:$4 sm:$0xff]   ;;  %v6949_v33 = vld [vmem:[#allocation9 + $0x44] ss:$16 sps:$4 sm:$0xff]  }
 0xc51   :  { %3926 = vmatpush1.bf16.msra.mxu0 %v6522_v3  ;;  %3967 = vmatpush1.bf16.msra.mxu1 %v6524_v50  ;;  %v7210_v3 = vld [vmem:[#allocation30_spill] sm:$0xff] }
 0xc52   :  { %3927 = vmatprep.subr.bf16.mxu0 %v6530_v5  ;;  %3968 = vmatprep.subr.bf16.mxu1 %v6532_v19  ;;  %v3061_v50 = vadd.f32 %v7210_v3, %v6728_v23  ;;  %v7211_v5 = vld [vmem:[#allocation31_spill] sm:$0xff] }
 0xc53   :  { %v3134_v19 = vadd.f32 %v7211_v5, %v6732_v14  ;;  %v6955_v3 = vld [vmem:[#allocation9 + $0x40] ss:$16 sps:$4 sm:$0xff]   ;;  %v6961_v5 = vld [vmem:[#allocation9 + $0x64] ss:$16 sps:$4 sm:$0xff]  }
 0xc55   :  { %3928 = vmatpush1.bf16.msra.mxu0 %v6534_v43  ;;  %3969 = vmatpush1.bf16.msra.mxu1 %v6536_v7 }
 0xc56   :  { %3929 = vmatprep.subr.bf16.mxu0 %v6540_v4  ;;  %3970 = vmatprep.subr.bf16.mxu1 %v6542_v16 }
 0xc59   :  { %3930 = vmatpush1.bf16.msra.mxu0 %v6546_v27  ;;  %3971 = vmatpush1.bf16.msra.mxu1 %v6548_v53 }
 0xc5a   :  { %3931 = vmatprep.subr.bf16.mxu0 %v6554_v49  ;;  %3972 = vmatprep.subr.bf16.mxu1 %v6556_v1 }
 0xc5d   :  { %3932 = vmatpush1.bf16.msra.mxu0 %v6558_v17  ;;  %3973 = vmatpush1.bf16.msra.mxu1 %v6560_v54 }
 0xc5e   :  { %3933 = vmatprep.subr.bf16.mxu0 %v6566_v8  ;;  %3974 = vmatprep.subr.bf16.mxu1 %v6568_v10 }
 0xc61   :  { %3934 = vmatpush1.bf16.msra.mxu0 %v6570_v12  ;;  %3975 = vmatpush1.bf16.msra.mxu1 %v6572_v46 }
 0xc62   :  { %3935 = vmatprep.subr.bf16.mxu0 %v6578_v47  ;;  %3976 = vmatprep.subr.bf16.mxu1 %v6580_v48 }
 0xc65   :  { %3936 = vmatpush1.bf16.msra.mxu0 %v6582_v31  ;;  %3977 = vmatpush1.bf16.msra.mxu1 %v6584_v15 }
 0xc66   :  { %3937 = vmatprep.subr.bf16.mxu0 %v6590_v18  ;;  %3978 = vmatprep.subr.bf16.mxu1 %v6592_v20 }
 0xc69   :  { %3938 = vmatpush1.bf16.msra.mxu0 %v6594_v21  ;;  %3979 = vmatpush1.bf16.msra.mxu1 %v6596_v39 }
 0xc6a   :  { %4032 = vmatprep.subr.bf16.mxu0 %v6506_v2  ;;  %4073 = vmatprep.subr.bf16.mxu1 %v6508_v0 }
 0xd1f   :  { %v3848_v43 = vpop.f32.mrb[80].mxu0  ;;  %v3889_v7 = vpop.f32.mrb[80].mxu1 }
 0xd20   :  { %v3896_v4 = vadd.f32 %v3848_v43, %v3059_v22  ;;  %v3898_v16 = vadd.f32 %v3889_v7, %v3132_v42  ;;  %v3850_v27 = vpop.f32.mrb[81].mxu0  ;;  %v3891_v2 = vpop.f32.mrb[81].mxu1  ;;  %v6946_v22 = vld [vmem:[#allocation9 + $0x28] ss:$16 sps:$4 sm:$0xff]   ;;  %v6952_v42 = vld [vmem:[#allocation9 + $0x4c] ss:$16 sps:$4 sm:$0xff]  }
 0xd21   :  { %v3897_v53 = vadd.f32 %v3850_v27, %v3061_v50  ;;  %v3899_v0 = vadd.f32 %v3891_v2, %v3134_v19  ;;  %v3852_v30 = vpop.f32.mrb[82].mxu0  ;;  %v3893_v24 = vpop.f32.mrb[82].mxu1  ;;  %v6958_v50 = vld [vmem:[#allocation9 + $0x48] ss:$16 sps:$4 sm:$0xff]   ;;  %v6964_v19 = vld [vmem:[#allocation9 + $0x6c] ss:$16 sps:$4 sm:$0xff]  }
 0xd22   :  { %v3900_v57 = vmul.f32 0.5, %v3896_v4  ;;  %v3853_v28 = vpop.f32.mrb[83].mxu0  ;;  %v3894_v29 = vpop.f32.mrb[83].mxu1  ;;  %v6967_v43 = vld [vmem:[#allocation9 + $0x60] ss:$16 sps:$4 sm:$0xff]  }
 0xd23   :  { %v3904_v36 = vmul.f32 0.5, %v3897_v53  ;;  %v3909_v58 = vmul.f32 0.5, %v3899_v0  ;;  %v6970_v7 = vld [vmem:[#allocation9 + $0x68] ss:$16 sps:$4 sm:$0xff]  }
 0xd24   :  { %5476 = vtanh.f32 %v3900_v57 }
 0xd25   :  { %5478 = vtanh.f32 %v3904_v36 }
 0xd26   :  { %5480 = vtanh.f32 %v3898_v16 }
 0xd27   :  { %5482 = vtanh.f32 %v3909_v58 }
 0xd2e   :  { %v5477_v60 = vpop.eup %5476 }
 0xd2f   :  { %v5479_v13 = vpop.eup %5478  ;;  %v3902_v55 = vmul.f32 0.5, %v5477_v60 }
 0xd30   :  { %v3906_v34 = vmul.f32 0.5, %v5479_v13  ;;  %v5481_v6 = vpop.eup %5480 }
 0xd31   :  { %v3903_v35 = vadd.f32 0.5, %v3902_v55  ;;  %v5483_v9 = vpop.eup %5482 }
 0xd32   :  { %v3907_v25 = vadd.f32 0.5, %v3906_v34  ;;  %v3911_v56 = vmul.f32 0.5, %v5483_v9 }
 0xd33   :  { %v3914_v45 = vmul.f32 %v5481_v6, %v3903_v35 }
 0xd34   :  { %v3913_v52 = vmul.f32 %v3907_v25, %v6880_v40  ;;  %v3912_v61 = vadd.f32 0.5, %v3911_v56  ;;  %v6935_v40 = vld [vmem:[#allocation9 + $0x24] ss:$16 sps:$4 sm:$0xff]  }
 0xd36   :  { %v6926_v38 = vadd.f32 %v3914_v45, %v3913_v52 }
 0xd38   :  { %5484 = vtanh.f32 %v6926_v38 }
 0xd42   :  { %v5485_v41 = vpop.eup %5484 }
 0xd43   :  { %v3917_v32 = vmul.f32 %v5485_v41, %v3912_v61  ;;  %v5534_v41 = vld [vmem:[#allocation9 + $0x80] ss:$16 sps:$4 sm:$0xff]  }
 0xd45   :  { %v3922_v11 = vpack.c.bf16 %v3917_v32, %v3917_v32  ;;  %v5535_v32 = vld [vmem:[#allocation9 + $0x88] ss:$16 sps:$4 sm:$0xff]  }
 0xd47   :  { %3956 = vmatmul.mubr.bf16.vlgmr.msra.gmra.mrb[84].mxu0 %v3922_v11  ;;  %3997 = vmatmul.mubr.bf16.vlgmr.msra.gmra.mrb[84].mxu1 %v3922_v11  ;;  %v5536_v11 = vld [vmem:[#allocation9 + $0xa4] ss:$16 sps:$4 sm:$0xff]  }
 0xd48   :  { %4033 = vmatpush1.bf16.msra.mxu0 %v6929_v63  ;;  %4074 = vmatpush1.bf16.msra.mxu1 %v6932_v37 }
 0xd49   :  { %4034 = vmatprep.subr.bf16.mxu0 %v6935_v40  ;;  %4075 = vmatprep.subr.bf16.mxu1 %v6938_v44 }
 0xd4a   :  { %4064 = vmatprep.mubr.bf16.mxu0 %v7148_v51  ;;  %4105 = vmatprep.mubr.bf16.mxu1 %v7148_v51 }
 0xd4c   :  { %4035 = vmatpush1.bf16.msra.mxu0 %v6943_v26  ;;  %4076 = vmatpush1.bf16.msra.mxu1 %v6946_v22 }
 0xd4d   :  { %4036 = vmatprep.subr.bf16.mxu0 %v6949_v33  ;;  %4077 = vmatprep.subr.bf16.mxu1 %v6952_v42 }
 0xd50   :  { %4037 = vmatpush1.bf16.msra.mxu0 %v6955_v3  ;;  %4078 = vmatpush1.bf16.msra.mxu1 %v6958_v50 }
 0xd51   :  { %4038 = vmatprep.subr.bf16.mxu0 %v6961_v5  ;;  %4079 = vmatprep.subr.bf16.mxu1 %v6964_v19 }
 0xd54   :  { %4039 = vmatpush1.bf16.msra.mxu0 %v6967_v43  ;;  %4080 = vmatpush1.bf16.msra.mxu1 %v6970_v7 }
 0xd55   :  { %4040 = vmatprep.subr.bf16.mxu0 %v6554_v49  ;;  %4081 = vmatprep.subr.bf16.mxu1 %v6556_v1  ;;  %v5530_v49 = vld [vmem:[#allocation9 + $0x4] ss:$16 sps:$4 sm:$0xff]   ;;  %v5531_v1 = vld [vmem:[#allocation9 + $0xc] ss:$16 sps:$4 sm:$0xff]  }
 0xd58   :  { %4041 = vmatpush1.bf16.msra.mxu0 %v6558_v17  ;;  %4082 = vmatpush1.bf16.msra.mxu1 %v6560_v54  ;;  %v7212_v17 = vld [vmem:[#allocation32_spill] sm:$0xff] }
 0xd59   :  { %4042 = vmatprep.subr.bf16.mxu0 %v6566_v8  ;;  %4083 = vmatprep.subr.bf16.mxu1 %v6568_v10  ;;  %v3063_v54 = vadd.f32 %v7212_v17, %v6716_v62  ;;  %v7213_v8 = vld [vmem:[#allocation33_spill] sm:$0xff] }
 0xd5a   :  { %v3136_v10 = vadd.f32 %v7213_v8, %v6720_v59 }
 0xd5c   :  { %4043 = vmatpush1.bf16.msra.mxu0 %v6570_v12  ;;  %4084 = vmatpush1.bf16.msra.mxu1 %v6572_v46  ;;  %v7214_v12 = vld [vmem:[#allocation34_spill] sm:$0xff] }
 0xd5d   :  { %4044 = vmatprep.subr.bf16.mxu0 %v6578_v47  ;;  %4085 = vmatprep.subr.bf16.mxu1 %v6580_v48  ;;  %v3065_v46 = vadd.f32 %v7214_v12, %v6728_v23  ;;  %v7215_v47 = vld [vmem:[#allocation35_spill] sm:$0xff] }
 0xd5e   :  { %v3138_v48 = vadd.f32 %v7215_v47, %v6732_v14 }
 0xd60   :  { %4045 = vmatpush1.bf16.msra.mxu0 %v6582_v31  ;;  %4086 = vmatpush1.bf16.msra.mxu1 %v6584_v15 }
 0xd61   :  { %4046 = vmatprep.subr.bf16.mxu0 %v6590_v18  ;;  %4087 = vmatprep.subr.bf16.mxu1 %v6592_v20 }
 0xd64   :  { %4047 = vmatpush1.bf16.msra.mxu0 %v6594_v21  ;;  %4088 = vmatpush1.bf16.msra.mxu1 %v6596_v39 }
 0xd65   :  { %4141 = vmatprep.subr.bf16.mxu0 %v5530_v49  ;;  %4182 = vmatprep.subr.bf16.mxu1 %v5531_v1  ;;  %v7218_v1 = vld [vmem:[#allocation38_spill] sm:$0xff] }
 0xd66   :  { %v3071_v17 = vadd.f32 %v7218_v1, %v6728_v23  ;;  %v7221_v1 = vld [vmem:[#allocation41_spill] sm:$0xff] }
 0xe1a   :  { %v3957_v31 = vpop.f32.mrb[84].mxu0  ;;  %v3998_v15 = vpop.f32.mrb[84].mxu1 }
 0xe1b   :  { %v4005_v18 = vadd.f32 %v3957_v31, %v3063_v54  ;;  %v4007_v20 = vadd.f32 %v3998_v15, %v3136_v10  ;;  %v3959_v21 = vpop.f32.mrb[85].mxu0  ;;  %v4000_v39 = vpop.f32.mrb[85].mxu1  ;;  %v7219_v54 = vld [vmem:[#allocation39_spill] sm:$0xff] }
 0xe1c   :  { %v4006_v4 = vadd.f32 %v3959_v21, %v3065_v46  ;;  %v4008_v16 = vadd.f32 %v4000_v39, %v3138_v48  ;;  %v3961_v27 = vpop.f32.mrb[86].mxu0  ;;  %v4002_v2 = vpop.f32.mrb[86].mxu1  ;;  %v3144_v8 = vadd.f32 %v7219_v54, %v6732_v14  ;;  %v7222_v54 = vld [vmem:[#allocation18_spill] sm:$0xff] }
 0xe1d   :  { %v4009_v53 = vmul.f32 0.5, %v4005_v18  ;;  %v3962_v0 = vpop.f32.mrb[87].mxu0  ;;  %v4003_v30 = vpop.f32.mrb[87].mxu1 }
 0xe1e   :  { %v4013_v24 = vmul.f32 0.5, %v4006_v4  ;;  %v4018_v57 = vmul.f32 0.5, %v4008_v16 }
 0xe1f   :  { %5486 = vtanh.f32 %v4009_v53 }
 0xe20   :  { %5488 = vtanh.f32 %v4013_v24 }
 0xe21   :  { %5490 = vtanh.f32 %v4007_v20 }
 0xe22   :  { %5492 = vtanh.f32 %v4018_v57 }
 0xe29   :  { %v5487_v28 = vpop.eup %5486 }
 0xe2a   :  { %v5489_v29 = vpop.eup %5488  ;;  %v4011_v36 = vmul.f32 0.5, %v5487_v28 }
 0xe2b   :  { %v4015_v58 = vmul.f32 0.5, %v5489_v29  ;;  %v5491_v13 = vpop.eup %5490 }
 0xe2c   :  { %v4012_v60 = vadd.f32 0.5, %v4011_v36  ;;  %v5493_v25 = vpop.eup %5492 }
 0xe2d   :  { %v4016_v55 = vadd.f32 0.5, %v4015_v58  ;;  %v4020_v45 = vmul.f32 0.5, %v5493_v25 }
 0xe2e   :  { %v4023_v34 = vmul.f32 %v5491_v13, %v4012_v60 }
 0xe2f   :  { %v4022_v35 = vmul.f32 %v4016_v55, %v6926_v38  ;;  %v4021_v52 = vadd.f32 0.5, %v4020_v45  ;;  %v5533_v38 = vld [vmem:[#allocation9 + $0x8c] ss:$16 sps:$4 sm:$0xff]  }
 0xe31   :  { %v6998_v6 = vadd.f32 %v4023_v34, %v4022_v35 }
 0xe33   :  { %5494 = vtanh.f32 %v6998_v6 }
 0xe3d   :  { %v5495_v9 = vpop.eup %5494 }
 0xe3e   :  { %v4026_v56 = vmul.f32 %v5495_v9, %v4021_v52  ;;  %v5324_v52 = vld [vmem:[#allocation10 + $0x40] sm:$0xff]  }
 0xe3f   :  { %v5325_v9 = vld [vmem:[#allocation10] sm:$0xff]  }
 0xe40   :  { %v4031_v61 = vpack.c.bf16 %v4026_v56, %v4026_v56  ;;  %v5326_v56 = vld [vmem:[#allocation10 + $0x48] sm:$0xff]  }
 0xe42   :  { %4065 = vmatmul.mubr.bf16.vlgmr.msra.gmra.mrb[88].mxu0 %v4031_v61  ;;  %4106 = vmatmul.mubr.bf16.vlgmr.msra.gmra.mrb[88].mxu1 %v4031_v61  ;;  %v5327_v61 = vld [vmem:[#allocation10 + $0x8] sm:$0xff]  }
 0xe43   :  { %4142 = vmatpush1.bf16.msra.mxu0 %v6929_v63  ;;  %4183 = vmatpush1.bf16.msra.mxu1 %v6932_v37  ;;  %v5537_v63 = vld [vmem:[#allocation9 + $0xac] ss:$16 sps:$4 sm:$0xff]   ;;  %v5538_v37 = vld [vmem:[#allocation9 + $0xa0] ss:$16 sps:$4 sm:$0xff]  }
 0xe44   :  { %4143 = vmatprep.subr.bf16.mxu0 %v6935_v40  ;;  %4184 = vmatprep.subr.bf16.mxu1 %v6938_v44  ;;  %v5539_v40 = vld [vmem:[#allocation9 + $0xa8] ss:$16 sps:$4 sm:$0xff]   ;;  %v5540_v44 = vld [vmem:[#allocation9 + $0xc4] ss:$16 sps:$4 sm:$0xff]  }
 0xe45   :  { %4173 = vmatprep.mubr.bf16.mxu0 %v7148_v51  ;;  %4214 = vmatprep.mubr.bf16.mxu1 %v7148_v51  ;;  %v5532_v51 = vld [vmem:[#allocation9 + $0x84] ss:$16 sps:$4 sm:$0xff]  }
 0xe47   :  { %4144 = vmatpush1.bf16.msra.mxu0 %v6943_v26  ;;  %4185 = vmatpush1.bf16.msra.mxu1 %v6946_v22  ;;  %v5541_v26 = vld [vmem:[#allocation9 + $0xcc] ss:$16 sps:$4 sm:$0xff]   ;;  %v5542_v22 = vld [vmem:[#allocation9 + $0xc0] ss:$16 sps:$4 sm:$0xff]  }
 0xe48   :  { %4145 = vmatprep.subr.bf16.mxu0 %v6949_v33  ;;  %4186 = vmatprep.subr.bf16.mxu1 %v6952_v42  ;;  %v5543_v33 = vld [vmem:[#allocation9 + $0xc8] ss:$16 sps:$4 sm:$0xff]   ;;  %v5544_v42 = vld [vmem:[#allocation9 + $0xe4] ss:$16 sps:$4 sm:$0xff]  }
 0xe4b   :  { %4146 = vmatpush1.bf16.msra.mxu0 %v6955_v3  ;;  %4187 = vmatpush1.bf16.msra.mxu1 %v6958_v50  ;;  %v5545_v3 = vld [vmem:[#allocation9 + $0xec] ss:$16 sps:$4 sm:$0xff]   ;;  %v5546_v50 = vld [vmem:[#allocation9 + $0xe0] ss:$16 sps:$4 sm:$0xff]  }
 0xe4c   :  { %4147 = vmatprep.subr.bf16.mxu0 %v6961_v5  ;;  %4188 = vmatprep.subr.bf16.mxu1 %v6964_v19  ;;  %v5547_v5 = vld [vmem:[#allocation9 + $0xe8] ss:$16 sps:$4 sm:$0xff]  }
 0xe4d   :  { %v7216_v19 = vld [vmem:[#allocation36_spill] sm:$0xff] }
 0xe4f   :  { %4148 = vmatpush1.bf16.msra.mxu0 %v6967_v43  ;;  %4189 = vmatpush1.bf16.msra.mxu1 %v6970_v7  ;;  %v3069_v43 = vadd.f32 %v7216_v19, %v6716_v62  ;;  %v7217_v7 = vld [vmem:[#allocation37_spill] sm:$0xff] }
 0xe50   :  { %4149 = vmatprep.subr.bf16.mxu0 %v5532_v51  ;;  %4190 = vmatprep.subr.bf16.mxu1 %v5533_v38  ;;  %v3142_v49 = vadd.f32 %v7217_v7, %v6720_v59  ;;  %v5329_v51 = vld [vmem:[#allocation10 + $0x10] sm:$0xff]   ;;  %v5330_v38 = vld [vmem:[#allocation10 + $0x58] sm:$0xff]   ;;  %v5344_v19 = vld [vmem:[%s7112_s9 + $0x20] sm:$0xff]  }
 0xe51   :  { %v7220_v7 = vld [vmem:[#allocation40_spill] sm:$0xff] }
 0xe53   :  { %4150 = vmatpush1.bf16.msra.mxu0 %v5534_v41  ;;  %4191 = vmatpush1.bf16.msra.mxu1 %v5535_v32  ;;  %v5331_v41 = vld [vmem:[#allocation10 + $0x18] sm:$0xff]   ;;  %v5332_v32 = vld [vmem:[#allocation10 + $0x60] sm:$0xff]  }
 0xe54   :  { %4151 = vmatprep.subr.bf16.mxu0 %v5536_v11  ;;  %4192 = vmatprep.subr.bf16.mxu1 %v5537_v63  ;;  %v5333_v11 = vld [vmem:[#allocation10 + $0x20] sm:$0xff]   ;;  %v5334_v63 = vld [vmem:[#allocation10 + $0x68] sm:$0xff]  }
 0xe57   :  { %4152 = vmatpush1.bf16.msra.mxu0 %v5538_v37  ;;  %4193 = vmatpush1.bf16.msra.mxu1 %v5539_v40  ;;  %v5335_v37 = vld [vmem:[#allocation10 + $0x28] sm:$0xff]   ;;  %v5336_v40 = vld [vmem:[#allocation10 + $0x70] sm:$0xff]  }
 0xe58   :  { %4153 = vmatprep.subr.bf16.mxu0 %v5540_v44  ;;  %4194 = vmatprep.subr.bf16.mxu1 %v5541_v26  ;;  %v5337_v44 = vld [vmem:[#allocation10 + $0x30] sm:$0xff]   ;;  %v5338_v26 = vld [vmem:[#allocation10 + $0x78] sm:$0xff]  }
 0xe5b   :  { %4154 = vmatpush1.bf16.msra.mxu0 %v5542_v22  ;;  %4195 = vmatpush1.bf16.msra.mxu1 %v5543_v33  ;;  %v5339_v22 = vld [vmem:[#allocation10 + $0x38] sm:$0xff]   ;;  %v5340_v33 = vld [vmem:[%s7112_s9] sm:$0xff]  }
 0xe5c   :  { %4155 = vmatprep.subr.bf16.mxu0 %v5544_v42  ;;  %4196 = vmatprep.subr.bf16.mxu1 %v5545_v3  ;;  %v5698_v42 = vmov 0.0   ;;  %v5341_v3 = vld [vmem:[%s7112_s9 + $0x8] sm:$0xff]  }
 0xe5f   :  { %4156 = vmatpush1.bf16.msra.mxu0 %v5546_v50  ;;  %4197 = vmatpush1.bf16.msra.mxu1 %v5547_v5  ;;  %v5342_v50 = vld [vmem:[%s7112_s9 + $0x10] sm:$0xff]   ;;  %v5343_v5 = vld [vmem:[%s7112_s9 + $0x18] sm:$0xff]  }
 0xe60   :  { %5033 = vmatprep.subr.bf16.mxu0 %v5324_v52  ;;  %5073 = vmatprep.subr.bf16.mxu1 %v5698_v42 }
 0xf15   :  { %v4066_v10 = vpop.f32.mrb[88].mxu0  ;;  %v4107_v12 = vpop.f32.mrb[88].mxu1 }
 0xf16   :  { %v4114_v46 = vadd.f32 %v4066_v10, %v3069_v43  ;;  %v4116_v47 = vadd.f32 %v4107_v12, %v3142_v49  ;;  %v4068_v48 = vpop.f32.mrb[89].mxu0  ;;  %v4109_v31 = vpop.f32.mrb[89].mxu1  ;;  %v5345_v43 = vld [vmem:[%s7112_s9 + $0x28] sm:$0xff]   ;;  %v3073_v49 = vadd.f32 %v7220_v7, %v6716_v62 }
 0xf17   :  { %v4115_v15 = vadd.f32 %v4068_v48, %v3071_v17  ;;  %v4117_v18 = vadd.f32 %v4109_v31, %v3144_v8  ;;  %v4070_v20 = vpop.f32.mrb[90].mxu0  ;;  %v4111_v21 = vpop.f32.mrb[90].mxu1  ;;  %v3146_v17 = vadd.f32 %v7221_v1, %v6720_v59  ;;  %v3075_v8 = vadd.f32 %v7222_v54, %v6728_v23  ;;  %v7223_v10 = vld [vmem:[#allocation42_spill] sm:$0xff] }
 0xf18   :  { %v4118_v39 = vmul.f32 0.5, %v4114_v46  ;;  %v4071_v4 = vpop.f32.mrb[91].mxu0  ;;  %v4112_v16 = vpop.f32.mrb[91].mxu1  ;;  %v3148_v12 = vadd.f32 %v7223_v10, %v6732_v14 }
 0xf19   :  { %v4122_v27 = vmul.f32 0.5, %v4115_v15  ;;  %v4127_v2 = vmul.f32 0.5, %v4117_v18 }
 0xf1a   :  { %5496 = vtanh.f32 %v4118_v39 }
 0xf1b   :  { %5498 = vtanh.f32 %v4122_v27 }
 0xf1c   :  { %5500 = vtanh.f32 %v4116_v47 }
 0xf1d   :  { %5502 = vtanh.f32 %v4127_v2 }
 0xf24   :  { %v5497_v53 = vpop.eup %5496 }
 0xf25   :  { %v5499_v0 = vpop.eup %5498  ;;  %v4120_v30 = vmul.f32 0.5, %v5497_v53 }
 0xf26   :  { %v4124_v24 = vmul.f32 0.5, %v5499_v0  ;;  %v5501_v28 = vpop.eup %5500 }
 0xf27   :  { %v4121_v57 = vadd.f32 0.5, %v4120_v30  ;;  %v5503_v13 = vpop.eup %5502 }
 0xf28   :  { %v4125_v29 = vadd.f32 0.5, %v4124_v24  ;;  %v4129_v55 = vmul.f32 0.5, %v5503_v13 }
 0xf29   :  { %v4132_v36 = vmul.f32 %v5501_v28, %v4121_v57 }
 0xf2a   :  { %v4131_v58 = vmul.f32 %v4125_v29, %v6998_v6  ;;  %v4130_v34 = vadd.f32 0.5, %v4129_v55  ;;  %v5328_v6 = vld [vmem:[#allocation10 + $0x50] sm:$0xff]  }
 0xf2c   :  { %v7026_v60 = vadd.f32 %v4132_v36, %v4131_v58 }
 0xf2e   :  { %5504 = vtanh.f32 %v7026_v60 }
 0xf38   :  { %v5505_v35 = vpop.eup %5504 }
 0xf39   :  { %v4135_v25 = vmul.f32 %v5505_v35, %v4130_v34 }
 0xf3b   :  { %v4140_v45 = vpack.c.bf16 %v4135_v25, %v4135_v25 }
 0xf3d   :  { %4174 = vmatmul.mubr.bf16.vlgmr.msra.gmra.mrb[92].mxu0 %v4140_v45  ;;  %4215 = vmatmul.mubr.bf16.vlgmr.msra.gmra.mrb[92].mxu1 %v4140_v45  ;;  %v7224_v45 = vld [vmem:[#allocation19_spill] sm:$0xff] }
 0xf3e   :  { %5034 = vmatpush3.bf16.msra.mxu0 %v5325_v9  ;;  %5074 = vmatpush3.bf16.msra.mxu1 %v5340_v33  ;;  %v4245_v52 = vpack.c.bf16 %v7224_v45, %v7224_v45  ;;  %v5346_v9 = vld [vmem:[%s7112_s9 + $0x30] sm:$0xff]  }
 0xf3f   :  { %5035 = vmatprep.subr.bf16.mxu0 %v5326_v56  ;;  %5075 = vmatprep.subr.bf16.mxu1 %v5698_v42  ;;  %v5348_v56 = vld [vmem:[#allocation12] sm:$0xff]  }
 0xf40   :  { %5089 = vmatprep.mubr.msk.bf16.mxu1 %vm5699_vm1, %v5698_v42 }
 0xf42   :  { %5036 = vmatpush3.bf16.msra.mxu0 %v5327_v61  ;;  %5076 = vmatpush3.bf16.msra.mxu1 %v5341_v3  ;;  %v5349_v61 = vld [vmem:[#allocation12 + $0x8] sm:$0xff]   ;;  %v5354_v3 = vld [vmem:[#allocation12 + $0x30] sm:$0xff]  }
 0xf43   :  { %5037 = vmatprep.subr.bf16.mxu0 %v5328_v6  ;;  %5077 = vmatprep.subr.bf16.mxu1 %v5698_v42  ;;  %v5350_v6 = vld [vmem:[#allocation12 + $0x10] sm:$0xff]  }
 0xf46   :  { %5038 = vmatpush3.bf16.msra.mxu0 %v5329_v51  ;;  %5078 = vmatpush3.bf16.msra.mxu1 %v5342_v50  ;;  %v5351_v51 = vld [vmem:[#allocation12 + $0x18] sm:$0xff]  }
 0xf47   :  { %5039 = vmatprep.subr.bf16.mxu0 %v5330_v38  ;;  %5079 = vmatprep.subr.bf16.mxu1 %v5698_v42  ;;  %v5352_v38 = vld [vmem:[#allocation12 + $0x20] sm:$0xff]   ;;  %v5355_v50 = vld [vmem:[#allocation12 + $0x38] sm:$0xff]  }
 0xf4a   :  { %5040 = vmatpush3.bf16.msra.mxu0 %v5331_v41  ;;  %5080 = vmatpush3.bf16.msra.mxu1 %v5343_v5  ;;  %v5353_v41 = vld [vmem:[#allocation12 + $0x28] sm:$0xff]   ;;  %v5015_v5 = vld [vmem:[%s7113_s10] ss:$0 sm:$0xff]  ;;  %s5658_s10 = scalar_lea.vmem %s4656_s21, 128 }
 0xf4b   :  { %5041 = vmatprep.subr.bf16.mxu0 %v5332_v32  ;;  %5081 = vmatprep.subr.bf16.mxu1 %v5698_v42  ;;  %p5659_p12 = scmp.ne.s32.totalorder %s4656_s21, %s5658_s10  ;;  %p5664_p0 = scmp.lt.s32.totalorder %s5658_s10, %s5658_s10 }
 0xf4d   :  { %p5665_p1 = por %p5664_p0, %p5663_p13 }
 0xf4e   :  { %5042 = vmatpush3.bf16.msra.mxu0 %v5333_v11  ;;  %5082 = vmatpush3.bf16.msra.mxu1 %v5344_v19  ;;  %v4998_v11 = vld [vmem:[%s7111_s8] ss:$0 sm:$0xff] }
 0xf4f   :  { %5043 = vmatprep.subr.bf16.mxu0 %v5334_v63  ;;  %5083 = vmatprep.subr.bf16.mxu1 %v5698_v42  ;;  %p5666_p2 = pnand %p5665_p1, %p5659_p12 }
 0xf52   :  { %5044 = vmatpush3.bf16.msra.mxu0 %v5335_v37  ;;  %5084 = vmatpush3.bf16.msra.mxu1 %v5345_v43 }
 0xf53   :  { %5045 = vmatprep.subr.bf16.mxu0 %v5336_v40  ;;  %5085 = vmatprep.subr.bf16.mxu1 %v5698_v42 }
 0xf56   :  { %5046 = vmatpush3.bf16.msra.mxu0 %v5337_v44  ;;  %5086 = vmatpush3.bf16.msra.mxu1 %v5346_v9 }
 0xf57   :  { %5047 = vmatprep.subr.bf16.mxu0 %v5338_v26  ;;  %5087 = vmatprep.subr.bf16.mxu1 %v5698_v42 }
 0xf5a   :  { %5048 = vmatpush3.bf16.msra.mxu0 %v5339_v22 }
 0xf5b   :  { %5093 = vmatprep.subr.bf16.mxu0 %v5698_v42 }
0x1010   :  { %v4175_v46 = vpop.f32.mrb[92].mxu0  ;;  %v4216_v47 = vpop.f32.mrb[92].mxu1 }
0x1011   :  { %v4223_v48 = vadd.f32 %v4175_v46, %v3073_v49  ;;  %v4225_v31 = vadd.f32 %v4216_v47, %v3146_v17  ;;  %v4177_v15 = vpop.f32.mrb[93].mxu0  ;;  %v4218_v18 = vpop.f32.mrb[93].mxu1 }
0x1012   :  { %v4224_v20 = vadd.f32 %v4177_v15, %v3075_v8  ;;  %v4226_v21 = vadd.f32 %v4218_v18, %v3148_v12  ;;  %v4179_v39 = vpop.f32.mrb[94].mxu0  ;;  %v4220_v4 = vpop.f32.mrb[94].mxu1  ;;  %v5024_v8 = vld [vmem:[%s7115_s12] ss:$0 sm:$0xff] }
0x1013   :  { %v4227_v62 = vmul.f32 0.5, %v4223_v48  ;;  %v4180_v16 = vpop.f32.mrb[95].mxu0  ;;  %v4221_v27 = vpop.f32.mrb[95].mxu1 }
0x1014   :  { %v4231_v59 = vmul.f32 0.5, %v4224_v20  ;;  %v4236_v23 = vmul.f32 0.5, %v4226_v21 }
0x1015   :  { %5506 = vtanh.f32 %v4227_v62 }
0x1016   :  { %5508 = vtanh.f32 %v4231_v59 }
0x1017   :  { %5510 = vtanh.f32 %v4225_v31 }
0x1018   :  { %5512 = vtanh.f32 %v4236_v23 }
0x101f   :  { %v5507_v2 = vpop.eup %5506 }
0x1020   :  { %v5509_v14 = vpop.eup %5508  ;;  %v4229_v53 = vmul.f32 0.5, %v5507_v2 }
0x1021   :  { %v4233_v0 = vmul.f32 0.5, %v5509_v14  ;;  %v5511_v24 = vpop.eup %5510 }
0x1022   :  { %v4230_v30 = vadd.f32 0.5, %v4229_v53  ;;  %v5513_v58 = vpop.eup %5512 }
0x1023   :  { %v4234_v57 = vadd.f32 0.5, %v4233_v0  ;;  %v4238_v13 = vmul.f32 0.5, %v5513_v58 }
0x1024   :  { %v4241_v28 = vmul.f32 %v5511_v24, %v4230_v30 }
0x1025   :  { %v4240_v29 = vmul.f32 %v4234_v57, %v7026_v60  ;;  %v4239_v55 = vadd.f32 0.5, %v4238_v13  ;;  %v5347_v60 = vld [vmem:[%s7112_s9 + $0x38] sm:$0xff]  }
0x1026   :  { %5088 = vmatpush3.bf16.msra.mxu1 %v5347_v60 }
0x1027   :  { %v4242_v36 = vadd.f32 %v4241_v28, %v4240_v29 }
0x1029   :  { %5514 = vtanh.f32 %v4242_v36 }
0x1033   :  { %v5515_v34 = vpop.eup %5514 }
0x1034   :  { %v4244_v35 = vmul.f32 %v5515_v34, %v4239_v55 }
0x1036   :  { %v4246_v25 = vpack.c.bf16 %v4244_v35, %v4244_v35 }
0x1038   :  { %4414 = vmatprep.mubr.bf16.mxu0 %v4246_v25 }
0x1039   :  { %4415 = vmatmul.mubr.bf16.vlgmr.msra.gmra.mrb[96].mxu0 %v4245_v52 }
0x103a   :  { %5109 = vmatprep.mubr.msk.bf16.mxu0 %vm5699_vm1, %v5698_v42  ;;  %5094 = vmatpush3.bf16.msra.mxu0 %v5348_v56 }
0x103b   :  { %5095 = vmatprep.subr.bf16.mxu0 %v5698_v42 }
0x103e   :  { %5096 = vmatpush3.bf16.msra.mxu0 %v5349_v61 }
0x103f   :  { %5097 = vmatprep.subr.bf16.mxu0 %v5698_v42 }
0x1042   :  { %5098 = vmatpush3.bf16.msra.mxu0 %v5350_v6 }
0x1043   :  { %5099 = vmatprep.subr.bf16.mxu0 %v5698_v42 }
0x1046   :  { %5100 = vmatpush3.bf16.msra.mxu0 %v5351_v51 }
0x1047   :  { %5101 = vmatprep.subr.bf16.mxu0 %v5698_v42 }
0x104a   :  { %5102 = vmatpush3.bf16.msra.mxu0 %v5352_v38 }
0x104b   :  { %5103 = vmatprep.subr.bf16.mxu0 %v5698_v42 }
0x104e   :  { %5104 = vmatpush3.bf16.msra.mxu0 %v5353_v41 }
0x104f   :  { %5105 = vmatprep.subr.bf16.mxu0 %v5698_v42 }
0x1052   :  { %5106 = vmatpush3.bf16.msra.mxu0 %v5354_v3 }
0x1053   :  { %5107 = vmatprep.subr.bf16.mxu0 %v5698_v42 }
0x1056   :  { %5108 = vmatpush3.bf16.msra.mxu0 %v5355_v50 }
0x110c   :  { %v5049_v32 = vpop.f32.mrb[96].mxu0 }
0x110d   :  { %v5050_v63 = vpop.f32.mrb[97].mxu0 }
0x110e   :  { %v5051_v37 = vadd.f32 %v5050_v63, %v5049_v32  ;;  %v5052_v40 = vpop.f32.mrb[98].mxu0 }
0x110f   :  { %v5053_v44 = vpop.f32.mrb[99].mxu0 }
0x1110   :  { %v4417_v26 = vadd.f32 %v5051_v37, %v4998_v11 }
0x1112   :  { %v4422_v22 = vmax.f32 %v4417_v26, 0.0 }
0x1114   :  { %v4423_v33 = vpack.c.bf16 %v4422_v22, %v4422_v22 }
0x1116   :  { %5090 = vmatmul.mubr.bf16.vlgmr.msra.gmra.mrb[96].mxu1 %v4423_v33 }
0x11e9   :  { %v4529_v19 = vpop.f32.mrb[96].mxu1 }
0x11ea   :  { %v4530_v43 = vadd.f32 %v5015_v5, %v4529_v19  ;;  %v5091_v7 = vpop.f32.mrb[97].mxu1 }
0x11eb   :  { %v4532_v49 = vpop.f32.mrb[98].mxu1 }
0x11ec   :  { %v4535_v1 = vmax.f32 %v4530_v43, 0.0  ;;  %v5092_v17 = vpop.f32.mrb[99].mxu1 }
0x11ee   :  { %v4536_v54 = vpack.c.bf16 %v4535_v1, %v4535_v1 }
0x11f0   :  { %5110 = vmatmul.mubr.bf16.vlgmr.msra.gmra.mrb[100].mxu0 %v4536_v54 }
0x12c3   :  { %v4642_v42 = vpop.f32.mrb[100].mxu0 }
0x12c4   :  { %v4643_v10 = vadd.f32 %v5024_v8, %v4642_v42  ;;  %v5111_v12 = vpop.f32.mrb[101].mxu0 }
0x12c5   :  { %v4645_v46 = vpop.f32.mrb[102].mxu0 }
0x12c6   :  { %4648 = vst [vmem:[#allocation13] sm:$0xff] %v4643_v10  ;;  %v5112_v47 = vpop.f32.mrb[103].mxu0 }
0x12c7   :  { %5669 = shalt.err (!%p5666_p2)
}
0x12c8   :  { %s5670_s12 = scalar_lea.hbm %s7116_s13, 128 }
0x12c9   :  { %p5671_p3 = scmp.ne.s32.totalorder %s7116_s13, %s5670_s12  ;;  %p5674_p4 = scmp.lt.u32.totalorder %s5670_s12, %s7116_s13 }
0x12cb   :  { %p5676_p5 = pnand %p5674_p4, %p5671_p3 }
0x12cd   :  { %5679 = shalt.err (!%p5676_p5)
}
0x12ce   :  { %4658 = dma.vmem_to_hbm [thread:$0]  %s4656_s21, 128, %s7116_s13, [#allocation6]  }
0x12cf   :  { %5686 = dma.done.wait [#allocation6], 128  }
0x12d0   :  { %5687 = vsyncadd [#allocation6], 4294967168 }
0x12d1   :  { %4662 = vsyncpa [#allocation5], 1 }
0x12d2   :  { %4663 = vsyncpa [#allocation8], 1 }
0x12d3   :  { %4664 = vsyncpa [#allocation11], 1 }
0x12d4   :  { %4665 = vsyncpa [#allocation6], 1 }

</bundles_post_ra>
